<compile_context>
chip_gen: v7x
topology: tpu7x:2x2x1
jax: 0.10.0
libtpu: 0.0.40
codegen_flags: <defaults>
</compile_context>

<pallas_src>
import functools
import math

import jax
import jax.numpy as jnp
from jax.experimental import pallas as pl
from jax.experimental.pallas import tpu as pltpu


_NEG_BIG = -1e30  # key-padding bias (finite -> fully-masked rows give uniform attn, not NaN)


def _gelu_tanh(x):
    """tanh-approximate GELU (EUP tanh).  ~3e-4 max abs error vs torch.nn.GELU() (exact erf)."""
    c = 0.7978845608028654  # sqrt(2/pi)
    return 0.5 * x * (1.0 + jnp.tanh(c * (x + 0.044715 * x * x * x)))


# ---------------------------------------------------------------------------
# Pallas kernel: one BLOCK of batch elements per grid step.
# ---------------------------------------------------------------------------
def _aligner_kernel(ts_ref, text_ref, maskb_ref,
                    wq_ref, bq_ref, wkv_ref, bkv_ref,
                    wo_ref, bo_ref, gamma_ref, beta_ref,
                    w1_ref, b1_ref, w2_ref, b2_ref,
                    out_ref, *, n_heads):
    bt, lq, d_model = ts_ref.shape
    _, lk, d_llm = text_ref.shape
    hd = d_model // n_heads
    m_rows = bt * lq
    scale = 1.0 / math.sqrt(hd)
    bf16 = jnp.bfloat16
    f32 = jnp.float32

    ts = ts_ref[...]                                # (bt, lq, d_model) f32 (residual source)
    x = ts.reshape(m_rows, d_model)                 # flattened M rows for dense matmuls
    text = text_ref[...].reshape(bt * lk, d_llm)    # (bt*lk, d_llm) bf16 (MXU operand only)

    # ---- projections: bf16 operands, f32 accumulation on the MXU ----------
    q = jnp.dot(x.astype(bf16), wq_ref[...], preferred_element_type=f32) + bq_ref[...]
    q = q * scale                                   # fold 1/sqrt(hd) into Q once
    kv = jnp.dot(text, wkv_ref[...], preferred_element_type=f32) + bkv_ref[...]
    q3 = q.reshape(bt, lq, d_model)                 # minor-dim-unchanged reshapes (cheap)
    kv3 = kv.reshape(bt, lk, 2 * d_model)

    # key-padding bias broadcast once (JAX does not CSE broadcast_in_dim in unrolled loops)
    bias = jnp.broadcast_to(maskb_ref[...], (bt, lq, lk))   # f32

    # ---- per-head scaled-dot-product attention, batched over the batch block.
    # Each head's context is folded straight into the output projection (rows
    # h*hd:(h+1)*hd of wo) and accumulated in f32 -> no lane-dim concat and no
    # n_heads live f32 context tensors.
    attn = jnp.zeros((m_rows, d_model), f32)
    for h in range(n_heads):
        lo = h * hd
        qh = q3[:, :, lo:lo + hd].astype(bf16)                        # (bt, lq, hd)
        kh = kv3[:, :, lo:lo + hd].astype(bf16)                       # (bt, lk, hd)
        vh = kv3[:, :, d_model + lo:d_model + lo + hd].astype(bf16)   # (bt, lk, hd)
        s = jnp.einsum("bqd,bkd->bqk", qh, kh,
                       preferred_element_type=f32) + bias
        mx = jnp.max(s, axis=-1, keepdims=True)
        p = jnp.exp(s - mx)
        a = p * pl.reciprocal(jnp.sum(p, axis=-1, keepdims=True), approx=True)
        ctx_h = jnp.einsum("bqk,bkd->bqd", a.astype(bf16), vh,
                           preferred_element_type=f32).reshape(m_rows, hd)
        attn = attn + jnp.dot(ctx_h.astype(bf16), wo_ref[lo:lo + hd, :],
                              preferred_element_type=f32)
    attn = attn + bo_ref[...]

    # ---- residual 1 + pre-LN GELU FFN + residual 2 (dropouts = identity) ----
    out1 = x + attn                                  # f32
    mu = jnp.mean(out1, axis=-1, keepdims=True)
    var = jnp.mean(jnp.square(out1 - mu), axis=-1, keepdims=True)
    ln = (out1 - mu) * jax.lax.rsqrt(var + 1e-5) * gamma_ref[...] + beta_ref[...]
    # TODO(synk): for very large d_model/d_llm on v7x, stream w1/w2 (and wkv) in K-chunks
    # (pl.ANY weights + pltpu.emit_pipeline) instead of keeping them fully VMEM-resident.
    hid = jnp.dot(ln.astype(bf16), w1_ref[...], preferred_element_type=f32) + b1_ref[...]
    hid = _gelu_tanh(hid)
    ffn = jnp.dot(hid.astype(bf16), w2_ref[...], preferred_element_type=f32) + b2_ref[...]

    out_ref[...] = (out1 + ffn).reshape(bt, lq, d_model).astype(out_ref.dtype)


# ---------------------------------------------------------------------------
# Wrapper: generation-aware sizing, grid / BlockSpec setup.
# ---------------------------------------------------------------------------
def _vmem_budget_and_target_rows():
    """Per-generation VMEM budget (headroom for Mosaic scratch) and M-row target per block."""
    try:
        cap = int(pltpu.get_tpu_info().vmem_capacity_bytes)
    except Exception:
        cap = 64 * 1024 * 1024                 # conservative fallback, safe on every generation
    if cap <= 64 * 1024 * 1024:                # v7x-class: 64 MiB physical -> ~56 MiB budget
        return cap - 8 * 1024 * 1024, 256
    return (cap * 7) // 8, 512                 # v5e/v6e: 128 MiB physical -> ~112 MiB, big blocks


def _pick_block_batch(batch, lq, target_rows):
    """Largest divisor of `batch` with block_batch*lq near target_rows; prefer an even grid
    length so v7x's two TensorCores split the 'parallel' batch axis evenly."""
    want = max(1, target_rows // max(lq, 1))
    divs = [d for d in range(1, batch + 1) if batch % d == 0 and d <= want]
    best = max(divs)
    if (batch // best) % 2 == 1:               # odd grid -> one TC idles on v7x
        even = [d for d in divs if (batch // d) % 2 == 0 and d * 2 >= best]
        if even:
            best = max(even)
    return best


def _const_spec(a, single_buffer):
    nd = a.ndim
    idx = lambda i, _nd=nd: (0,) * _nd
    if single_buffer:
        # Constant index_map: double-buffering buys nothing; a single buffer halves the
        # resident-weight VMEM footprint (the difference between fitting and spilling on v7x).
        return pl.BlockSpec(a.shape, idx, pipeline_mode=pl.Buffered(1))
    return pl.BlockSpec(a.shape, idx)


def time_text_aligner_forward(ts_embed, text_embed, text_mask, params, n_heads,
                              block_batch=None, out_dtype=None,
                              single_buffer_weights=True):
    B, Lq, d_model = ts_embed.shape
    _, Lk, d_llm = text_embed.shape
    assert d_model % n_heads == 0
    out_dtype = ts_embed.dtype if out_dtype is None else out_dtype

    vmem_budget, target_rows = _vmem_budget_and_target_rows()
    if block_batch is None:
        block_batch = _pick_block_batch(B, Lq, target_rows)
    assert B % block_batch == 0, "block_batch must divide the batch size"
    grid = (B // block_batch,)

    if text_mask is None:
        mask_bias = jnp.zeros((B, 1, Lk), jnp.float32)
    else:
        mask_bias = jnp.where(text_mask, jnp.float32(_NEG_BIG),
                              jnp.float32(0.0)).reshape(B, 1, Lk)

    # text_embed is only ever a bf16 MXU operand -> stream it in bf16 (halves its HBM DMA and
    # its double-buffered VMEM block).  ts_embed stays f32 so the residual path stays f32.
    text_bf = text_embed.astype(jnp.bfloat16)

    weights = [params["wq"], params["bq"], params["wkv"], params["bkv"],
               params["wo"], params["bo"], params["gamma"], params["beta"],
               params["w1"], params["b1"], params["w2"], params["b2"]]

    # Advisory cost estimate so XLA schedules surrounding ops around the custom call.
    m_total = B * Lq
    flops = (2 * m_total * d_model * d_model                  # Q projection
             + 2 * B * Lk * d_llm * (2 * d_model)             # fused KV projection
             + 2 * 2 * B * Lq * Lk * d_model                  # scores + context
             + 2 * m_total * d_model * d_model                # attention output projection
             + 2 * 2 * m_total * d_model * (4 * d_model))     # FFN
    transcendentals = (B * n_heads * Lq * Lk                  # exp
                       + m_total * 4 * d_model                # tanh (GELU)
                       + m_total)                             # rsqrt (LayerNorm)
    ins = [ts_embed, text_bf, mask_bias] + weights
    bytes_accessed = (sum(int(a.size) * a.dtype.itemsize for a in ins)
                      + m_total * d_model * jnp.dtype(out_dtype).itemsize)
    cost = pl.CostEstimate(flops=int(flops), transcendentals=int(transcendentals),
                           bytes_accessed=int(bytes_accessed))

    kernel = functools.partial(_aligner_kernel, n_heads=n_heads)

    def _call(single_buf):
        in_specs = [
            pl.BlockSpec((block_batch, Lq, d_model), lambda i: (i, 0, 0)),   # ts_embed (f32)
            pl.BlockSpec((block_batch, Lk, d_llm), lambda i: (i, 0, 0)),     # text_embed (bf16)
            pl.BlockSpec((block_batch, 1, Lk), lambda i: (i, 0, 0)),         # mask bias (f32)
        ] + [_const_spec(w, single_buf) for w in weights]
        return pl.pallas_call(
            kernel,
            out_shape=jax.ShapeDtypeStruct((B, Lq, d_model), out_dtype),
            grid=grid,
            in_specs=in_specs,
            out_specs=pl.BlockSpec((block_batch, Lq, d_model), lambda i: (i, 0, 0)),
            compiler_params=pltpu.CompilerParams(
                dimension_semantics=("parallel",),    # v7x: shard batch blocks over both TCs
                vmem_limit_bytes=int(vmem_budget)),
            cost_estimate=cost,
        )(ts_embed, text_bf, mask_bias, *weights)

    if single_buffer_weights:
        try:
            return _call(True)
        except Exception:
            # Fallback for jax versions that reject pl.Buffered(1) on a BlockSpec.
            return _call(False)
    return _call(False)


# ---------------------------------------------------------------------------
# Deterministic parameter init (same shapes as the PyTorch module's __init__).
# Weight matrices stored transposed (in, out) and in bf16 (MXU operands); the K and V
# projections are pre-fused into one packed (d_llm, 2*d_model) operand at init time.
# Biases / LayerNorm affine stay f32.
# ---------------------------------------------------------------------------
def init_params(key, d_model, d_llm):
    ks = jax.random.split(key, 10)
    s = 0.05
    bf16 = jnp.bfloat16
    wq_pt = s * jax.random.normal(ks[0], (d_model, d_model), jnp.float32)
    wk_pt = s * jax.random.normal(ks[1], (d_model, d_llm), jnp.float32)
    wv_pt = s * jax.random.normal(ks[2], (d_model, d_llm), jnp.float32)
    in_bias = s * jax.random.normal(ks[3], (3 * d_model,), jnp.float32)
    wo_pt = s * jax.random.normal(ks[4], (d_model, d_model), jnp.float32)
    bo = s * jax.random.normal(ks[5], (d_model,), jnp.float32)
    w1_pt = s * jax.random.normal(ks[6], (4 * d_model, d_model), jnp.float32)
    b1 = s * jax.random.normal(ks[7], (4 * d_model,), jnp.float32)
    w2_pt = s * jax.random.normal(ks[8], (d_model, 4 * d_model), jnp.float32)
    b2 = s * jax.random.normal(ks[9], (d_model,), jnp.float32)
    wkv = jnp.concatenate([wk_pt.T, wv_pt.T], axis=1).astype(bf16)     # (d_llm, 2*d_model)
    bkv = jnp.concatenate([in_bias[d_model:2 * d_model],
                           in_bias[2 * d_model:]]).reshape(1, 2 * d_model)
    return dict(
        wq=wq_pt.T.astype(bf16),
        bq=in_bias[:d_model].reshape(1, d_model),
        wkv=wkv, bkv=bkv,
        wo=wo_pt.T.astype(bf16), bo=bo.reshape(1, d_model),
        gamma=jnp.ones((1, d_model), jnp.float32),   # nn.LayerNorm default init
        beta=jnp.zeros((1, d_model), jnp.float32),
        w1=w1_pt.T.astype(bf16), b1=b1.reshape(1, 4 * d_model),
        w2=w2_pt.T.astype(bf16), b2=b2.reshape(1, d_model),
    )


# ---------------------------------------------------------------------------
# Pure-JAX reference mirroring the kernel's bf16-operand / f32-accumulate numerics
# (so the correctness check can stay tight).  Differences vs. the kernel: exact softmax
# reciprocal (kernel uses the EUP approximate reciprocal) and a single full-width output
# projection (kernel accumulates per-head partials in f32).
# ---------------------------------------------------------------------------
def reference_forward(ts, text, text_mask, params, n_heads):
    B, Lq, d_model = ts.shape
    Lk = text.shape[1]
    hd = d_model // n_heads
    scale = 1.0 / math.sqrt(hd)
    bf16, f32 = jnp.bfloat16, jnp.float32
    bias = (jnp.where(text_mask, _NEG_BIG, 0.0).astype(f32)
            if text_mask is not None else jnp.zeros((B, Lk), f32))

    q = jnp.einsum("bld,dk->blk", ts.astype(bf16), params["wq"],
                   preferred_element_type=f32) + params["bq"]
    q = q * scale
    kv = jnp.einsum("bld,dk->blk", text.astype(bf16), params["wkv"],
                    preferred_element_type=f32) + params["bkv"]
    k, v = kv[..., :d_model], kv[..., d_model:]
    qh = q.reshape(B, Lq, n_heads, hd).astype(bf16)
    kh = k.reshape(B, Lk, n_heads, hd).astype(bf16)
    vh = v.reshape(B, Lk, n_heads, hd).astype(bf16)
    s = jnp.einsum("bqhd,bkhd->bhqk", qh, kh, preferred_element_type=f32)
    s = s + bias[:, None, None, :]
    a = jax.nn.softmax(s, axis=-1)
    ctx = jnp.einsum("bhqk,bkhd->bqhd", a.astype(bf16), vh,
                     preferred_element_type=f32).reshape(B, Lq, d_model)
    attn = jnp.einsum("bld,dk->blk", ctx.astype(bf16), params["wo"],
                      preferred_element_type=f32) + params["bo"]
    out1 = ts + attn
    mu = out1.mean(-1, keepdims=True)
    var = ((out1 - mu) ** 2).mean(-1, keepdims=True)
    ln = (out1 - mu) * jax.lax.rsqrt(var + 1e-5) * params["gamma"] + params["beta"]
    hid = _gelu_tanh(jnp.einsum("bld,dk->blk", ln.astype(bf16), params["w1"],
                                preferred_element_type=f32) + params["b1"])
    ffn = jnp.einsum("bld,dk->blk", hid.astype(bf16), params["w2"],
                     preferred_element_type=f32) + params["b2"]
    return out1 + ffn


if __name__ == "__main__":
    B, Lq, Lk = 4, 8, 16
    d_model, n_heads, d_llm = 32, 4, 64

    key = jax.random.PRNGKey(0)
    k_ts, k_text, k_par = jax.random.split(key, 3)
    ts_embed = jax.random.normal(k_ts, (B, Lq, d_model), jnp.float32)
    text_embed = jax.random.normal(k_text, (B, Lk, d_llm), jnp.float32)
    # key_padding_mask: True = padded (ignored) key position; varies per batch row.
    lengths = jnp.array([[Lk], [Lk - 4], [Lk - 7], [Lk - 2]])
    text_mask = jnp.arange(Lk)[None, :] >= lengths

    params = init_params(k_par, d_model, d_llm)

    out = time_text_aligner_forward(ts_embed, text_embed, text_mask, params, n_heads)
    out = jax.block_until_ready(out)

    ref = reference_forward(ts_embed, text_embed, text_mask, params, n_heads)
    assert out.shape == (B, Lq, d_model)
    max_err = float(jnp.max(jnp.abs(out - ref)))
    # Tolerance covers the EUP approximate reciprocal (softmax denom) and the per-head f32
    # accumulation of the output projection; matmul/GELU numerics are mirrored in the reference.
    assert jnp.allclose(out, ref, rtol=3e-3, atol=3e-3), f"mismatch vs reference: {max_err}"

    print("KERNEL_OK")
</pallas_src>

<mosaic_0001>
module attributes {stable_mosaic.version = 11 : i64} {
  func.func @_aligner_kernel(%arg0: i32, %arg1: memref<2x8x32xf32, #tpu.memory_space<vmem>>, %arg2: memref<2x16x64xbf16, #tpu.memory_space<vmem>>, %arg3: memref<2x1x16xf32, #tpu.memory_space<vmem>>, %arg4: memref<32x32xbf16, #tpu.memory_space<vmem>>, %arg5: memref<1x32xf32, #tpu.memory_space<vmem>>, %arg6: memref<64x64xbf16, #tpu.memory_space<vmem>>, %arg7: memref<1x64xf32, #tpu.memory_space<vmem>>, %arg8: memref<32x32xbf16, #tpu.memory_space<vmem>>, %arg9: memref<1x32xf32, #tpu.memory_space<vmem>>, %arg10: memref<1x32xf32, #tpu.memory_space<vmem>>, %arg11: memref<1x32xf32, #tpu.memory_space<vmem>>, %arg12: memref<32x128xbf16, #tpu.memory_space<vmem>>, %arg13: memref<1x128xf32, #tpu.memory_space<vmem>>, %arg14: memref<128x32xbf16, #tpu.memory_space<vmem>>, %arg15: memref<1x32xf32, #tpu.memory_space<vmem>>, %arg16: memref<2x8x32xf32, #tpu.memory_space<vmem>>) attributes {dimension_semantics = [#tpu.dimension_semantics<parallel>], iteration_bounds = array<i64: 2>, scalar_prefetch = 0 : i64, scratch_operands = 0 : i64, tpu.core_type = #tpu.core_type<tc>, window_params = [{transform_indices = @transform_0, window_bounds = array<i64: 2, 8, 32>}, {transform_indices = @transform_1, window_bounds = array<i64: 2, 16, 64>}, {transform_indices = @transform_2, window_bounds = array<i64: 2, 1, 16>}, {pipeline_mode = #tpu.pipeline_mode<synchronous>, transform_indices = @transform_3, window_bounds = array<i64: 32, 32>}, {pipeline_mode = #tpu.pipeline_mode<synchronous>, transform_indices = @transform_4, window_bounds = array<i64: 1, 32>}, {pipeline_mode = #tpu.pipeline_mode<synchronous>, transform_indices = @transform_5, window_bounds = array<i64: 64, 64>}, {pipeline_mode = #tpu.pipeline_mode<synchronous>, transform_indices = @transform_6, window_bounds = array<i64: 1, 64>}, {pipeline_mode = #tpu.pipeline_mode<synchronous>, transform_indices = @transform_7, window_bounds = array<i64: 32, 32>}, {pipeline_mode = #tpu.pipeline_mode<synchronous>, transform_indices = @transform_8, window_bounds = array<i64: 1, 32>}, {pipeline_mode = #tpu.pipeline_mode<synchronous>, transform_indices = @transform_9, window_bounds = array<i64: 1, 32>}, {pipeline_mode = #tpu.pipeline_mode<synchronous>, transform_indices = @transform_10, window_bounds = array<i64: 1, 32>}, {pipeline_mode = #tpu.pipeline_mode<synchronous>, transform_indices = @transform_11, window_bounds = array<i64: 32, 128>}, {pipeline_mode = #tpu.pipeline_mode<synchronous>, transform_indices = @transform_12, window_bounds = array<i64: 1, 128>}, {pipeline_mode = #tpu.pipeline_mode<synchronous>, transform_indices = @transform_13, window_bounds = array<i64: 128, 32>}, {pipeline_mode = #tpu.pipeline_mode<synchronous>, transform_indices = @transform_14, window_bounds = array<i64: 1, 32>}, {transform_indices = @transform_15, window_bounds = array<i64: 2, 8, 32>}]} {
    %c0 = arith.constant 0 : index
    %c0_0 = arith.constant 0 : index
    %c0_1 = arith.constant 0 : index
    %0 = vector.load %arg1[%c0, %c0_0, %c0_1] : memref<2x8x32xf32, #tpu.memory_space<vmem>>, vector<2x8x32xf32>
    %1 = vector.shape_cast %0 : vector<2x8x32xf32> to vector<16x32xf32>
    %c0_2 = arith.constant 0 : index
    %c0_3 = arith.constant 0 : index
    %c0_4 = arith.constant 0 : index
    %2 = vector.load %arg2[%c0_2, %c0_3, %c0_4] : memref<2x16x64xbf16, #tpu.memory_space<vmem>>, vector<2x16x64xbf16>
    %3 = vector.shape_cast %2 : vector<2x16x64xbf16> to vector<32x64xbf16>
    %4 = arith.truncf %1 : vector<16x32xf32> to vector<16x32xbf16>
    %c0_5 = arith.constant 0 : index
    %c0_6 = arith.constant 0 : index
    %5 = vector.load %arg4[%c0_5, %c0_6] : memref<32x32xbf16, #tpu.memory_space<vmem>>, vector<32x32xbf16>
    %cst = arith.constant dense<0.000000e+00> : vector<16x32xf32>
    %6 = tpu.matmul %4, %5, %cst {dimension_numbers = #tpu.dot_dimension_numbers<[1], [0], [0], [1], [0, 0, 1, 1], [], []>} : vector<16x32xbf16>, vector<32x32xbf16>, vector<16x32xf32> -> vector<16x32xf32>
    %c0_7 = arith.constant 0 : index
    %c0_8 = arith.constant 0 : index
    %7 = vector.load %arg5[%c0_7, %c0_8] : memref<1x32xf32, #tpu.memory_space<vmem>>, vector<1x32xf32>
    %8 = vector.broadcast %7 : vector<1x32xf32> to vector<16x32xf32>
    %9 = arith.addf %6, %8 : vector<16x32xf32>
    %cst_9 = arith.constant 0.353553385 : f32
    %10 = vector.broadcast %cst_9 : f32 to vector<16x32xf32>
    %11 = arith.mulf %9, %10 : vector<16x32xf32>
    %c0_10 = arith.constant 0 : index
    %c0_11 = arith.constant 0 : index
    %12 = vector.load %arg6[%c0_10, %c0_11] : memref<64x64xbf16, #tpu.memory_space<vmem>>, vector<64x64xbf16>
    %cst_12 = arith.constant dense<0.000000e+00> : vector<32x64xf32>
    %13 = tpu.matmul %3, %12, %cst_12 {dimension_numbers = #tpu.dot_dimension_numbers<[1], [0], [0], [1], [0, 0, 1, 1], [], []>} : vector<32x64xbf16>, vector<64x64xbf16>, vector<32x64xf32> -> vector<32x64xf32>
    %c0_13 = arith.constant 0 : index
    %c0_14 = arith.constant 0 : index
    %14 = vector.load %arg7[%c0_13, %c0_14] : memref<1x64xf32, #tpu.memory_space<vmem>>, vector<1x64xf32>
    %15 = vector.broadcast %14 : vector<1x64xf32> to vector<32x64xf32>
    %16 = arith.addf %13, %15 : vector<32x64xf32>
    %17 = vector.shape_cast %11 : vector<16x32xf32> to vector<2x8x32xf32>
    %18 = vector.shape_cast %16 : vector<32x64xf32> to vector<2x16x64xf32>
    %c0_15 = arith.constant 0 : index
    %c0_16 = arith.constant 0 : index
    %c0_17 = arith.constant 0 : index
    %19 = vector.load %arg3[%c0_15, %c0_16, %c0_17] : memref<2x1x16xf32, #tpu.memory_space<vmem>>, vector<2x1x16xf32>
    %20 = vector.shape_cast %19 : vector<2x1x16xf32> to vector<2x1x16xf32>
    %21 = vector.broadcast %20 : vector<2x1x16xf32> to vector<2x8x16xf32>
    %cst_18 = arith.constant 0.000000e+00 : f32
    %22 = vector.broadcast %cst_18 : f32 to vector<16x32xf32>
    %23 = vector.extract_strided_slice %17 {offsets = [0, 0, 0], sizes = [2, 8, 8], strides = [1, 1, 1]} : vector<2x8x32xf32> to vector<2x8x8xf32>
    %24 = arith.truncf %23 : vector<2x8x8xf32> to vector<2x8x8xbf16>
    %25 = vector.extract_strided_slice %18 {offsets = [0, 0, 0], sizes = [2, 16, 8], strides = [1, 1, 1]} : vector<2x16x64xf32> to vector<2x16x8xf32>
    %26 = arith.truncf %25 : vector<2x16x8xf32> to vector<2x16x8xbf16>
    %27 = vector.extract_strided_slice %18 {offsets = [0, 0, 32], sizes = [2, 16, 8], strides = [1, 1, 1]} : vector<2x16x64xf32> to vector<2x16x8xf32>
    %28 = arith.truncf %27 : vector<2x16x8xf32> to vector<2x16x8xbf16>
    "tpu.trace_start"() <{level = 10 : i32, message = "bqd,bkd->bqk"}> : () -> ()
    %cst_19 = arith.constant dense<0.000000e+00> : vector<2x8x16xf32>
    %29 = tpu.matmul %24, %26, %cst_19 {dimension_numbers = #tpu.dot_dimension_numbers<[2], [2], [1], [1], [0, 0, 0, 1, 1, 1], [0], [0]>} : vector<2x8x8xbf16>, vector<2x16x8xbf16>, vector<2x8x16xf32> -> vector<2x8x16xf32>
    "tpu.trace_stop"() : () -> ()
    %30 = arith.addf %29, %21 : vector<2x8x16xf32>
    %cst_20 = arith.constant dense<0xFF800000> : vector<2x8xf32>
    %31 = vector.multi_reduction <maximumf>, %30, %cst_20 [2] : vector<2x8x16xf32> to vector<2x8xf32>
    %32 = vector.shape_cast %31 : vector<2x8xf32> to vector<2x8x1xf32>
    %33 = vector.broadcast %32 : vector<2x8x1xf32> to vector<2x8x16xf32>
    %34 = arith.subf %30, %33 : vector<2x8x16xf32>
    %35 = math.exp %34 : vector<2x8x16xf32>
    %cst_21 = arith.constant dense<0.000000e+00> : vector<2x8xf32>
    %36 = vector.multi_reduction <add>, %35, %cst_21 [2] : vector<2x8x16xf32> to vector<2x8xf32>
    %37 = vector.shape_cast %36 : vector<2x8xf32> to vector<2x8x1xf32>
    %38 = tpu.reciprocal %37 {approx = true} : vector<2x8x1xf32> -> vector<2x8x1xf32>
    %39 = vector.broadcast %38 : vector<2x8x1xf32> to vector<2x8x16xf32>
    %40 = arith.mulf %35, %39 : vector<2x8x16xf32>
    %41 = arith.truncf %40 : vector<2x8x16xf32> to vector<2x8x16xbf16>
    "tpu.trace_start"() <{level = 10 : i32, message = "bqk,bkd->bqd"}> : () -> ()
    %cst_22 = arith.constant dense<0.000000e+00> : vector<2x8x8xf32>
    %42 = tpu.matmul %41, %28, %cst_22 {dimension_numbers = #tpu.dot_dimension_numbers<[2], [1], [1], [2], [0, 0, 0, 1, 1, 2], [0], [0]>} : vector<2x8x16xbf16>, vector<2x16x8xbf16>, vector<2x8x8xf32> -> vector<2x8x8xf32>
    "tpu.trace_stop"() : () -> ()
    %43 = vector.shape_cast %42 : vector<2x8x8xf32> to vector<16x8xf32>
    %44 = arith.truncf %43 : vector<16x8xf32> to vector<16x8xbf16>
    %c0_23 = arith.constant 0 : index
    %c0_24 = arith.constant 0 : index
    %45 = vector.load %arg8[%c0_23, %c0_24] : memref<32x32xbf16, #tpu.memory_space<vmem>>, vector<8x32xbf16>
    %cst_25 = arith.constant dense<0.000000e+00> : vector<16x32xf32>
    %46 = tpu.matmul %44, %45, %cst_25 {dimension_numbers = #tpu.dot_dimension_numbers<[1], [0], [0], [1], [0, 0, 1, 1], [], []>} : vector<16x8xbf16>, vector<8x32xbf16>, vector<16x32xf32> -> vector<16x32xf32>
    %47 = arith.addf %22, %46 : vector<16x32xf32>
    %48 = vector.extract_strided_slice %17 {offsets = [0, 0, 8], sizes = [2, 8, 8], strides = [1, 1, 1]} : vector<2x8x32xf32> to vector<2x8x8xf32>
    %49 = arith.truncf %48 : vector<2x8x8xf32> to vector<2x8x8xbf16>
    %50 = vector.extract_strided_slice %18 {offsets = [0, 0, 8], sizes = [2, 16, 8], strides = [1, 1, 1]} : vector<2x16x64xf32> to vector<2x16x8xf32>
    %51 = arith.truncf %50 : vector<2x16x8xf32> to vector<2x16x8xbf16>
    %52 = vector.extract_strided_slice %18 {offsets = [0, 0, 40], sizes = [2, 16, 8], strides = [1, 1, 1]} : vector<2x16x64xf32> to vector<2x16x8xf32>
    %53 = arith.truncf %52 : vector<2x16x8xf32> to vector<2x16x8xbf16>
    "tpu.trace_start"() <{level = 10 : i32, message = "bqd,bkd->bqk"}> : () -> ()
    %cst_26 = arith.constant dense<0.000000e+00> : vector<2x8x16xf32>
    %54 = tpu.matmul %49, %51, %cst_26 {dimension_numbers = #tpu.dot_dimension_numbers<[2], [2], [1], [1], [0, 0, 0, 1, 1, 1], [0], [0]>} : vector<2x8x8xbf16>, vector<2x16x8xbf16>, vector<2x8x16xf32> -> vector<2x8x16xf32>
    "tpu.trace_stop"() : () -> ()
    %55 = arith.addf %54, %21 : vector<2x8x16xf32>
    %cst_27 = arith.constant dense<0xFF800000> : vector<2x8xf32>
    %56 = vector.multi_reduction <maximumf>, %55, %cst_27 [2] : vector<2x8x16xf32> to vector<2x8xf32>
    %57 = vector.shape_cast %56 : vector<2x8xf32> to vector<2x8x1xf32>
    %58 = vector.broadcast %57 : vector<2x8x1xf32> to vector<2x8x16xf32>
    %59 = arith.subf %55, %58 : vector<2x8x16xf32>
    %60 = math.exp %59 : vector<2x8x16xf32>
    %cst_28 = arith.constant dense<0.000000e+00> : vector<2x8xf32>
    %61 = vector.multi_reduction <add>, %60, %cst_28 [2] : vector<2x8x16xf32> to vector<2x8xf32>
    %62 = vector.shape_cast %61 : vector<2x8xf32> to vector<2x8x1xf32>
    %63 = tpu.reciprocal %62 {approx = true} : vector<2x8x1xf32> -> vector<2x8x1xf32>
    %64 = vector.broadcast %63 : vector<2x8x1xf32> to vector<2x8x16xf32>
    %65 = arith.mulf %60, %64 : vector<2x8x16xf32>
    %66 = arith.truncf %65 : vector<2x8x16xf32> to vector<2x8x16xbf16>
    "tpu.trace_start"() <{level = 10 : i32, message = "bqk,bkd->bqd"}> : () -> ()
    %cst_29 = arith.constant dense<0.000000e+00> : vector<2x8x8xf32>
    %67 = tpu.matmul %66, %53, %cst_29 {dimension_numbers = #tpu.dot_dimension_numbers<[2], [1], [1], [2], [0, 0, 0, 1, 1, 2], [0], [0]>} : vector<2x8x16xbf16>, vector<2x16x8xbf16>, vector<2x8x8xf32> -> vector<2x8x8xf32>
    "tpu.trace_stop"() : () -> ()
    %68 = vector.shape_cast %67 : vector<2x8x8xf32> to vector<16x8xf32>
    %69 = arith.truncf %68 : vector<16x8xf32> to vector<16x8xbf16>
    %c8 = arith.constant 8 : index
    %c0_30 = arith.constant 0 : index
    %70 = vector.load %arg8[%c8, %c0_30] : memref<32x32xbf16, #tpu.memory_space<vmem>>, vector<8x32xbf16>
    %cst_31 = arith.constant dense<0.000000e+00> : vector<16x32xf32>
    %71 = tpu.matmul %69, %70, %cst_31 {dimension_numbers = #tpu.dot_dimension_numbers<[1], [0], [0], [1], [0, 0, 1, 1], [], []>} : vector<16x8xbf16>, vector<8x32xbf16>, vector<16x32xf32> -> vector<16x32xf32>
    %72 = arith.addf %47, %71 : vector<16x32xf32>
    %73 = vector.extract_strided_slice %17 {offsets = [0, 0, 16], sizes = [2, 8, 8], strides = [1, 1, 1]} : vector<2x8x32xf32> to vector<2x8x8xf32>
    %74 = arith.truncf %73 : vector<2x8x8xf32> to vector<2x8x8xbf16>
    %75 = vector.extract_strided_slice %18 {offsets = [0, 0, 16], sizes = [2, 16, 8], strides = [1, 1, 1]} : vector<2x16x64xf32> to vector<2x16x8xf32>
    %76 = arith.truncf %75 : vector<2x16x8xf32> to vector<2x16x8xbf16>
    %77 = vector.extract_strided_slice %18 {offsets = [0, 0, 48], sizes = [2, 16, 8], strides = [1, 1, 1]} : vector<2x16x64xf32> to vector<2x16x8xf32>
    %78 = arith.truncf %77 : vector<2x16x8xf32> to vector<2x16x8xbf16>
    "tpu.trace_start"() <{level = 10 : i32, message = "bqd,bkd->bqk"}> : () -> ()
    %cst_32 = arith.constant dense<0.000000e+00> : vector<2x8x16xf32>
    %79 = tpu.matmul %74, %76, %cst_32 {dimension_numbers = #tpu.dot_dimension_numbers<[2], [2], [1], [1], [0, 0, 0, 1, 1, 1], [0], [0]>} : vector<2x8x8xbf16>, vector<2x16x8xbf16>, vector<2x8x16xf32> -> vector<2x8x16xf32>
    "tpu.trace_stop"() : () -> ()
    %80 = arith.addf %79, %21 : vector<2x8x16xf32>
    %cst_33 = arith.constant dense<0xFF800000> : vector<2x8xf32>
    %81 = vector.multi_reduction <maximumf>, %80, %cst_33 [2] : vector<2x8x16xf32> to vector<2x8xf32>
    %82 = vector.shape_cast %81 : vector<2x8xf32> to vector<2x8x1xf32>
    %83 = vector.broadcast %82 : vector<2x8x1xf32> to vector<2x8x16xf32>
    %84 = arith.subf %80, %83 : vector<2x8x16xf32>
    %85 = math.exp %84 : vector<2x8x16xf32>
    %cst_34 = arith.constant dense<0.000000e+00> : vector<2x8xf32>
    %86 = vector.multi_reduction <add>, %85, %cst_34 [2] : vector<2x8x16xf32> to vector<2x8xf32>
    %87 = vector.shape_cast %86 : vector<2x8xf32> to vector<2x8x1xf32>
    %88 = tpu.reciprocal %87 {approx = true} : vector<2x8x1xf32> -> vector<2x8x1xf32>
    %89 = vector.broadcast %88 : vector<2x8x1xf32> to vector<2x8x16xf32>
    %90 = arith.mulf %85, %89 : vector<2x8x16xf32>
    %91 = arith.truncf %90 : vector<2x8x16xf32> to vector<2x8x16xbf16>
    "tpu.trace_start"() <{level = 10 : i32, message = "bqk,bkd->bqd"}> : () -> ()
    %cst_35 = arith.constant dense<0.000000e+00> : vector<2x8x8xf32>
    %92 = tpu.matmul %91, %78, %cst_35 {dimension_numbers = #tpu.dot_dimension_numbers<[2], [1], [1], [2], [0, 0, 0, 1, 1, 2], [0], [0]>} : vector<2x8x16xbf16>, vector<2x16x8xbf16>, vector<2x8x8xf32> -> vector<2x8x8xf32>
    "tpu.trace_stop"() : () -> ()
    %93 = vector.shape_cast %92 : vector<2x8x8xf32> to vector<16x8xf32>
    %94 = arith.truncf %93 : vector<16x8xf32> to vector<16x8xbf16>
    %c16 = arith.constant 16 : index
    %c0_36 = arith.constant 0 : index
    %95 = vector.load %arg8[%c16, %c0_36] : memref<32x32xbf16, #tpu.memory_space<vmem>>, vector<8x32xbf16>
    %cst_37 = arith.constant dense<0.000000e+00> : vector<16x32xf32>
    %96 = tpu.matmul %94, %95, %cst_37 {dimension_numbers = #tpu.dot_dimension_numbers<[1], [0], [0], [1], [0, 0, 1, 1], [], []>} : vector<16x8xbf16>, vector<8x32xbf16>, vector<16x32xf32> -> vector<16x32xf32>
    %97 = arith.addf %72, %96 : vector<16x32xf32>
    %98 = vector.extract_strided_slice %17 {offsets = [0, 0, 24], sizes = [2, 8, 8], strides = [1, 1, 1]} : vector<2x8x32xf32> to vector<2x8x8xf32>
    %99 = arith.truncf %98 : vector<2x8x8xf32> to vector<2x8x8xbf16>
    %100 = vector.extract_strided_slice %18 {offsets = [0, 0, 24], sizes = [2, 16, 8], strides = [1, 1, 1]} : vector<2x16x64xf32> to vector<2x16x8xf32>
    %101 = arith.truncf %100 : vector<2x16x8xf32> to vector<2x16x8xbf16>
    %102 = vector.extract_strided_slice %18 {offsets = [0, 0, 56], sizes = [2, 16, 8], strides = [1, 1, 1]} : vector<2x16x64xf32> to vector<2x16x8xf32>
    %103 = arith.truncf %102 : vector<2x16x8xf32> to vector<2x16x8xbf16>
    "tpu.trace_start"() <{level = 10 : i32, message = "bqd,bkd->bqk"}> : () -> ()
    %cst_38 = arith.constant dense<0.000000e+00> : vector<2x8x16xf32>
    %104 = tpu.matmul %99, %101, %cst_38 {dimension_numbers = #tpu.dot_dimension_numbers<[2], [2], [1], [1], [0, 0, 0, 1, 1, 1], [0], [0]>} : vector<2x8x8xbf16>, vector<2x16x8xbf16>, vector<2x8x16xf32> -> vector<2x8x16xf32>
    "tpu.trace_stop"() : () -> ()
    %105 = arith.addf %104, %21 : vector<2x8x16xf32>
    %cst_39 = arith.constant dense<0xFF800000> : vector<2x8xf32>
    %106 = vector.multi_reduction <maximumf>, %105, %cst_39 [2] : vector<2x8x16xf32> to vector<2x8xf32>
    %107 = vector.shape_cast %106 : vector<2x8xf32> to vector<2x8x1xf32>
    %108 = vector.broadcast %107 : vector<2x8x1xf32> to vector<2x8x16xf32>
    %109 = arith.subf %105, %108 : vector<2x8x16xf32>
    %110 = math.exp %109 : vector<2x8x16xf32>
    %cst_40 = arith.constant dense<0.000000e+00> : vector<2x8xf32>
    %111 = vector.multi_reduction <add>, %110, %cst_40 [2] : vector<2x8x16xf32> to vector<2x8xf32>
    %112 = vector.shape_cast %111 : vector<2x8xf32> to vector<2x8x1xf32>
    %113 = tpu.reciprocal %112 {approx = true} : vector<2x8x1xf32> -> vector<2x8x1xf32>
    %114 = vector.broadcast %113 : vector<2x8x1xf32> to vector<2x8x16xf32>
    %115 = arith.mulf %110, %114 : vector<2x8x16xf32>
    %116 = arith.truncf %115 : vector<2x8x16xf32> to vector<2x8x16xbf16>
    "tpu.trace_start"() <{level = 10 : i32, message = "bqk,bkd->bqd"}> : () -> ()
    %cst_41 = arith.constant dense<0.000000e+00> : vector<2x8x8xf32>
    %117 = tpu.matmul %116, %103, %cst_41 {dimension_numbers = #tpu.dot_dimension_numbers<[2], [1], [1], [2], [0, 0, 0, 1, 1, 2], [0], [0]>} : vector<2x8x16xbf16>, vector<2x16x8xbf16>, vector<2x8x8xf32> -> vector<2x8x8xf32>
    "tpu.trace_stop"() : () -> ()
    %118 = vector.shape_cast %117 : vector<2x8x8xf32> to vector<16x8xf32>
    %119 = arith.truncf %118 : vector<16x8xf32> to vector<16x8xbf16>
    %c24 = arith.constant 24 : index
    %c0_42 = arith.constant 0 : index
    %120 = vector.load %arg8[%c24, %c0_42] : memref<32x32xbf16, #tpu.memory_space<vmem>>, vector<8x32xbf16>
    %cst_43 = arith.constant dense<0.000000e+00> : vector<16x32xf32>
    %121 = tpu.matmul %119, %120, %cst_43 {dimension_numbers = #tpu.dot_dimension_numbers<[1], [0], [0], [1], [0, 0, 1, 1], [], []>} : vector<16x8xbf16>, vector<8x32xbf16>, vector<16x32xf32> -> vector<16x32xf32>
    %122 = arith.addf %97, %121 : vector<16x32xf32>
    %c0_44 = arith.constant 0 : index
    %c0_45 = arith.constant 0 : index
    %123 = vector.load %arg9[%c0_44, %c0_45] : memref<1x32xf32, #tpu.memory_space<vmem>>, vector<1x32xf32>
    %124 = vector.broadcast %123 : vector<1x32xf32> to vector<16x32xf32>
    %125 = arith.addf %122, %124 : vector<16x32xf32>
    %126 = arith.addf %1, %125 : vector<16x32xf32>
    %cst_46 = arith.constant dense<0.000000e+00> : vector<16xf32>
    %127 = vector.multi_reduction <add>, %126, %cst_46 [1] : vector<16x32xf32> to vector<16xf32>
    %128 = vector.shape_cast %127 : vector<16xf32> to vector<16x1xf32>
    %cst_47 = arith.constant 3.200000e+01 : f32
    %129 = vector.broadcast %cst_47 : f32 to vector<16x1xf32>
    %130 = arith.divf %128, %129 : vector<16x1xf32>
    %131 = vector.broadcast %130 : vector<16x1xf32> to vector<16x32xf32>
    %132 = arith.subf %126, %131 : vector<16x32xf32>
    %133 = arith.mulf %132, %132 : vector<16x32xf32>
    %cst_48 = arith.constant dense<0.000000e+00> : vector<16xf32>
    %134 = vector.multi_reduction <add>, %133, %cst_48 [1] : vector<16x32xf32> to vector<16xf32>
    %135 = vector.shape_cast %134 : vector<16xf32> to vector<16x1xf32>
    %cst_49 = arith.constant 3.200000e+01 : f32
    %136 = vector.broadcast %cst_49 : f32 to vector<16x1xf32>
    %137 = arith.divf %135, %136 : vector<16x1xf32>
    %138 = vector.broadcast %130 : vector<16x1xf32> to vector<16x32xf32>
    %139 = arith.subf %126, %138 : vector<16x32xf32>
    %cst_50 = arith.constant 9.99999974E-6 : f32
    %140 = vector.broadcast %cst_50 : f32 to vector<16x1xf32>
    %141 = arith.addf %137, %140 : vector<16x1xf32>
    %142 = math.rsqrt %141 : vector<16x1xf32>
    %143 = vector.broadcast %142 : vector<16x1xf32> to vector<16x32xf32>
    %144 = arith.mulf %139, %143 : vector<16x32xf32>
    %c0_51 = arith.constant 0 : index
    %c0_52 = arith.constant 0 : index
    %145 = vector.load %arg10[%c0_51, %c0_52] : memref<1x32xf32, #tpu.memory_space<vmem>>, vector<1x32xf32>
    %146 = vector.broadcast %145 : vector<1x32xf32> to vector<16x32xf32>
    %147 = arith.mulf %144, %146 : vector<16x32xf32>
    %c0_53 = arith.constant 0 : index
    %c0_54 = arith.constant 0 : index
    %148 = vector.load %arg11[%c0_53, %c0_54] : memref<1x32xf32, #tpu.memory_space<vmem>>, vector<1x32xf32>
    %149 = vector.broadcast %148 : vector<1x32xf32> to vector<16x32xf32>
    %150 = arith.addf %147, %149 : vector<16x32xf32>
    %151 = arith.truncf %150 : vector<16x32xf32> to vector<16x32xbf16>
    %c0_55 = arith.constant 0 : index
    %c0_56 = arith.constant 0 : index
    %152 = vector.load %arg12[%c0_55, %c0_56] : memref<32x128xbf16, #tpu.memory_space<vmem>>, vector<32x128xbf16>
    %cst_57 = arith.constant dense<0.000000e+00> : vector<16x128xf32>
    %153 = tpu.matmul %151, %152, %cst_57 {dimension_numbers = #tpu.dot_dimension_numbers<[1], [0], [0], [1], [0, 0, 1, 1], [], []>} : vector<16x32xbf16>, vector<32x128xbf16>, vector<16x128xf32> -> vector<16x128xf32>
    %c0_58 = arith.constant 0 : index
    %c0_59 = arith.constant 0 : index
    %154 = vector.load %arg13[%c0_58, %c0_59] : memref<1x128xf32, #tpu.memory_space<vmem>>, vector<1x128xf32>
    %155 = vector.broadcast %154 : vector<1x128xf32> to vector<16x128xf32>
    %156 = arith.addf %153, %155 : vector<16x128xf32>
    %cst_60 = arith.constant 5.000000e-01 : f32
    %157 = vector.broadcast %cst_60 : f32 to vector<16x128xf32>
    %158 = arith.mulf %157, %156 : vector<16x128xf32>
    %cst_61 = arith.constant 4.471500e-02 : f32
    %159 = vector.broadcast %cst_61 : f32 to vector<16x128xf32>
    %160 = arith.mulf %159, %156 : vector<16x128xf32>
    %161 = arith.mulf %160, %156 : vector<16x128xf32>
    %162 = arith.mulf %161, %156 : vector<16x128xf32>
    %163 = arith.addf %156, %162 : vector<16x128xf32>
    %cst_62 = arith.constant 0.797884583 : f32
    %164 = vector.broadcast %cst_62 : f32 to vector<16x128xf32>
    %165 = arith.mulf %164, %163 : vector<16x128xf32>
    %166 = math.tanh %165 : vector<16x128xf32>
    %cst_63 = arith.constant 1.000000e+00 : f32
    %167 = vector.broadcast %cst_63 : f32 to vector<16x128xf32>
    %168 = arith.addf %167, %166 : vector<16x128xf32>
    %169 = arith.mulf %158, %168 : vector<16x128xf32>
    %170 = arith.truncf %169 : vector<16x128xf32> to vector<16x128xbf16>
    %c0_64 = arith.constant 0 : index
    %c0_65 = arith.constant 0 : index
    %171 = vector.load %arg14[%c0_64, %c0_65] : memref<128x32xbf16, #tpu.memory_space<vmem>>, vector<128x32xbf16>
    %cst_66 = arith.constant dense<0.000000e+00> : vector<16x32xf32>
    %172 = tpu.matmul %170, %171, %cst_66 {dimension_numbers = #tpu.dot_dimension_numbers<[1], [0], [0], [1], [0, 0, 1, 1], [], []>} : vector<16x128xbf16>, vector<128x32xbf16>, vector<16x32xf32> -> vector<16x32xf32>
    %c0_67 = arith.constant 0 : index
    %c0_68 = arith.constant 0 : index
    %173 = vector.load %arg15[%c0_67, %c0_68] : memref<1x32xf32, #tpu.memory_space<vmem>>, vector<1x32xf32>
    %174 = vector.broadcast %173 : vector<1x32xf32> to vector<16x32xf32>
    %175 = arith.addf %172, %174 : vector<16x32xf32>
    %176 = arith.addf %126, %175 : vector<16x32xf32>
    %177 = vector.shape_cast %176 : vector<16x32xf32> to vector<2x8x32xf32>
    %c0_69 = arith.constant 0 : index
    %c0_70 = arith.constant 0 : index
    %c0_71 = arith.constant 0 : index
    %178 = vector.load %arg16[%c0_69, %c0_70, %c0_71] : memref<2x8x32xf32, #tpu.memory_space<vmem>>, vector<2x8x32xf32>
    tpu.vector_store %arg16[%c0_69, %c0_70, %c0_71], %177 {strides = array<i32>} : memref<2x8x32xf32, #tpu.memory_space<vmem>>, vector<2x8x32xf32>,
    return
  }
  func.func @transform_0(%arg0: i32) -> (i32, i32, i32) {
    %c0_i32 = arith.constant 0 : i32
    %c0_i32_0 = arith.constant 0 : i32
    %c0_i32_1 = arith.constant 0 : i32
    return %arg0, %c0_i32, %c0_i32_0 : i32, i32, i32
  }
  func.func @transform_1(%arg0: i32) -> (i32, i32, i32) {
    %c0_i32 = arith.constant 0 : i32
    %c0_i32_0 = arith.constant 0 : i32
    %c0_i32_1 = arith.constant 0 : i32
    return %arg0, %c0_i32, %c0_i32_0 : i32, i32, i32
  }
  func.func @transform_2(%arg0: i32) -> (i32, i32, i32) {
    %c0_i32 = arith.constant 0 : i32
    %c0_i32_0 = arith.constant 0 : i32
    %c0_i32_1 = arith.constant 0 : i32
    return %arg0, %c0_i32, %c0_i32_0 : i32, i32, i32
  }
  func.func @transform_3(%arg0: i32) -> (i32, i32) {
    %c0_i32 = arith.constant 0 : i32
    %c0_i32_0 = arith.constant 0 : i32
    %c0_i32_1 = arith.constant 0 : i32
    return %c0_i32, %c0_i32_0 : i32, i32
  }
  func.func @transform_4(%arg0: i32) -> (i32, i32) {
    %c0_i32 = arith.constant 0 : i32
    %c0_i32_0 = arith.constant 0 : i32
    %c0_i32_1 = arith.constant 0 : i32
    return %c0_i32, %c0_i32_0 : i32, i32
  }
  func.func @transform_5(%arg0: i32) -> (i32, i32) {
    %c0_i32 = arith.constant 0 : i32
    %c0_i32_0 = arith.constant 0 : i32
    %c0_i32_1 = arith.constant 0 : i32
    return %c0_i32, %c0_i32_0 : i32, i32
  }
  func.func @transform_6(%arg0: i32) -> (i32, i32) {
    %c0_i32 = arith.constant 0 : i32
    %c0_i32_0 = arith.constant 0 : i32
    %c0_i32_1 = arith.constant 0 : i32
    return %c0_i32, %c0_i32_0 : i32, i32
  }
  func.func @transform_7(%arg0: i32) -> (i32, i32) {
    %c0_i32 = arith.constant 0 : i32
    %c0_i32_0 = arith.constant 0 : i32
    %c0_i32_1 = arith.constant 0 : i32
    return %c0_i32, %c0_i32_0 : i32, i32
  }
  func.func @transform_8(%arg0: i32) -> (i32, i32) {
    %c0_i32 = arith.constant 0 : i32
    %c0_i32_0 = arith.constant 0 : i32
    %c0_i32_1 = arith.constant 0 : i32
    return %c0_i32, %c0_i32_0 : i32, i32
  }
  func.func @transform_9(%arg0: i32) -> (i32, i32) {
    %c0_i32 = arith.constant 0 : i32
    %c0_i32_0 = arith.constant 0 : i32
    %c0_i32_1 = arith.constant 0 : i32
    return %c0_i32, %c0_i32_0 : i32, i32
  }
  func.func @transform_10(%arg0: i32) -> (i32, i32) {
    %c0_i32 = arith.constant 0 : i32
    %c0_i32_0 = arith.constant 0 : i32
    %c0_i32_1 = arith.constant 0 : i32
    return %c0_i32, %c0_i32_0 : i32, i32
  }
  func.func @transform_11(%arg0: i32) -> (i32, i32) {
    %c0_i32 = arith.constant 0 : i32
    %c0_i32_0 = arith.constant 0 : i32
    %c0_i32_1 = arith.constant 0 : i32
    return %c0_i32, %c0_i32_0 : i32, i32
  }
  func.func @transform_12(%arg0: i32) -> (i32, i32) {
    %c0_i32 = arith.constant 0 : i32
    %c0_i32_0 = arith.constant 0 : i32
    %c0_i32_1 = arith.constant 0 : i32
    return %c0_i32, %c0_i32_0 : i32, i32
  }
  func.func @transform_13(%arg0: i32) -> (i32, i32) {
    %c0_i32 = arith.constant 0 : i32
    %c0_i32_0 = arith.constant 0 : i32
    %c0_i32_1 = arith.constant 0 : i32
    return %c0_i32, %c0_i32_0 : i32, i32
  }
  func.func @transform_14(%arg0: i32) -> (i32, i32) {
    %c0_i32 = arith.constant 0 : i32
    %c0_i32_0 = arith.constant 0 : i32
    %c0_i32_1 = arith.constant 0 : i32
    return %c0_i32, %c0_i32_0 : i32, i32
  }
  func.func @transform_15(%arg0: i32) -> (i32, i32, i32) {
    %c0_i32 = arith.constant 0 : i32
    %c0_i32_0 = arith.constant 0 : i32
    %c0_i32_1 = arith.constant 0 : i32
    return %arg0, %c0_i32, %c0_i32_0 : i32, i32, i32
  }
}

module attributes {stable_mosaic.version = 11 : i64} {
  func.func @_aligner_kernel(%arg0: i32, %arg1: memref<2x8x32xf32, #tpu.memory_space<vmem>>, %arg2: memref<2x16x64xbf16, #tpu.memory_space<vmem>>, %arg3: memref<2x1x16xf32, #tpu.memory_space<vmem>>, %arg4: memref<32x32xbf16, #tpu.memory_space<vmem>>, %arg5: memref<1x32xf32, #tpu.memory_space<vmem>>, %arg6: memref<64x64xbf16, #tpu.memory_space<vmem>>, %arg7: memref<1x64xf32, #tpu.memory_space<vmem>>, %arg8: memref<32x32xbf16, #tpu.memory_space<vmem>>, %arg9: memref<1x32xf32, #tpu.memory_space<vmem>>, %arg10: memref<1x32xf32, #tpu.memory_space<vmem>>, %arg11: memref<1x32xf32, #tpu.memory_space<vmem>>, %arg12: memref<32x128xbf16, #tpu.memory_space<vmem>>, %arg13: memref<1x128xf32, #tpu.memory_space<vmem>>, %arg14: memref<128x32xbf16, #tpu.memory_space<vmem>>, %arg15: memref<1x32xf32, #tpu.memory_space<vmem>>, %arg16: memref<2x8x32xf32, #tpu.memory_space<vmem>>) attributes {dimension_semantics = [#tpu.dimension_semantics<parallel>], iteration_bounds = array<i64: 2>, scalar_prefetch = 0 : i64, scratch_operands = 0 : i64, tpu.core_type = #tpu.core_type<tc>, window_params = [{transform_indices = @transform_0, window_bounds = array<i64: 2, 8, 32>}, {transform_indices = @transform_1, window_bounds = array<i64: 2, 16, 64>}, {transform_indices = @transform_2, window_bounds = array<i64: 2, 1, 16>}, {pipeline_mode = #tpu.pipeline_mode<synchronous>, transform_indices = @transform_3, window_bounds = array<i64: 32, 32>}, {pipeline_mode = #tpu.pipeline_mode<synchronous>, transform_indices = @transform_4, window_bounds = array<i64: 1, 32>}, {pipeline_mode = #tpu.pipeline_mode<synchronous>, transform_indices = @transform_5, window_bounds = array<i64: 64, 64>}, {pipeline_mode = #tpu.pipeline_mode<synchronous>, transform_indices = @transform_6, window_bounds = array<i64: 1, 64>}, {pipeline_mode = #tpu.pipeline_mode<synchronous>, transform_indices = @transform_7, window_bounds = array<i64: 32, 32>}, {pipeline_mode = #tpu.pipeline_mode<synchronous>, transform_indices = @transform_8, window_bounds = array<i64: 1, 32>}, {pipeline_mode = #tpu.pipeline_mode<synchronous>, transform_indices = @transform_9, window_bounds = array<i64: 1, 32>}, {pipeline_mode = #tpu.pipeline_mode<synchronous>, transform_indices = @transform_10, window_bounds = array<i64: 1, 32>}, {pipeline_mode = #tpu.pipeline_mode<synchronous>, transform_indices = @transform_11, window_bounds = array<i64: 32, 128>}, {pipeline_mode = #tpu.pipeline_mode<synchronous>, transform_indices = @transform_12, window_bounds = array<i64: 1, 128>}, {pipeline_mode = #tpu.pipeline_mode<synchronous>, transform_indices = @transform_13, window_bounds = array<i64: 128, 32>}, {pipeline_mode = #tpu.pipeline_mode<synchronous>, transform_indices = @transform_14, window_bounds = array<i64: 1, 32>}, {transform_indices = @transform_15, window_bounds = array<i64: 2, 8, 32>}]} {
    %c0 = arith.constant 0 : index
    %c0_0 = arith.constant 0 : index
    %c0_1 = arith.constant 0 : index
    %0 = vector.load %arg1[%c0, %c0_0, %c0_1] : memref<2x8x32xf32, #tpu.memory_space<vmem>>, vector<2x8x32xf32>
    %1 = vector.shape_cast %0 : vector<2x8x32xf32> to vector<16x32xf32>
    %c0_2 = arith.constant 0 : index
    %c0_3 = arith.constant 0 : index
    %c0_4 = arith.constant 0 : index
    %2 = vector.load %arg2[%c0_2, %c0_3, %c0_4] : memref<2x16x64xbf16, #tpu.memory_space<vmem>>, vector<2x16x64xbf16>
    %3 = vector.shape_cast %2 : vector<2x16x64xbf16> to vector<32x64xbf16>
    %4 = arith.truncf %1 : vector<16x32xf32> to vector<16x32xbf16>
    %c0_5 = arith.constant 0 : index
    %c0_6 = arith.constant 0 : index
    %5 = vector.load %arg4[%c0_5, %c0_6] : memref<32x32xbf16, #tpu.memory_space<vmem>>, vector<32x32xbf16>
    %cst = arith.constant dense<0.000000e+00> : vector<16x32xf32>
    %6 = tpu.matmul %4, %5, %cst {dimension_numbers = #tpu.dot_dimension_numbers<[1], [0], [0], [1], [0, 0, 1, 1], [], []>} : vector<16x32xbf16>, vector<32x32xbf16>, vector<16x32xf32> -> vector<16x32xf32>
    %c0_7 = arith.constant 0 : index
    %c0_8 = arith.constant 0 : index
    %7 = vector.load %arg5[%c0_7, %c0_8] : memref<1x32xf32, #tpu.memory_space<vmem>>, vector<1x32xf32>
    %8 = vector.broadcast %7 : vector<1x32xf32> to vector<16x32xf32>
    %9 = arith.addf %6, %8 : vector<16x32xf32>
    %cst_9 = arith.constant 0.353553385 : f32
    %10 = vector.broadcast %cst_9 : f32 to vector<16x32xf32>
    %11 = arith.mulf %9, %10 : vector<16x32xf32>
    %c0_10 = arith.constant 0 : index
    %c0_11 = arith.constant 0 : index
    %12 = vector.load %arg6[%c0_10, %c0_11] : memref<64x64xbf16, #tpu.memory_space<vmem>>, vector<64x64xbf16>
    %cst_12 = arith.constant dense<0.000000e+00> : vector<32x64xf32>
    %13 = tpu.matmul %3, %12, %cst_12 {dimension_numbers = #tpu.dot_dimension_numbers<[1], [0], [0], [1], [0, 0, 1, 1], [], []>} : vector<32x64xbf16>, vector<64x64xbf16>, vector<32x64xf32> -> vector<32x64xf32>
    %c0_13 = arith.constant 0 : index
    %c0_14 = arith.constant 0 : index
    %14 = vector.load %arg7[%c0_13, %c0_14] : memref<1x64xf32, #tpu.memory_space<vmem>>, vector<1x64xf32>
    %15 = vector.broadcast %14 : vector<1x64xf32> to vector<32x64xf32>
    %16 = arith.addf %13, %15 : vector<32x64xf32>
    %17 = vector.shape_cast %11 : vector<16x32xf32> to vector<2x8x32xf32>
    %18 = vector.shape_cast %16 : vector<32x64xf32> to vector<2x16x64xf32>
    %c0_15 = arith.constant 0 : index
    %c0_16 = arith.constant 0 : index
    %c0_17 = arith.constant 0 : index
    %19 = vector.load %arg3[%c0_15, %c0_16, %c0_17] : memref<2x1x16xf32, #tpu.memory_space<vmem>>, vector<2x1x16xf32>
    %20 = vector.shape_cast %19 : vector<2x1x16xf32> to vector<2x1x16xf32>
    %21 = vector.broadcast %20 : vector<2x1x16xf32> to vector<2x8x16xf32>
    %cst_18 = arith.constant 0.000000e+00 : f32
    %22 = vector.broadcast %cst_18 : f32 to vector<16x32xf32>
    %23 = vector.extract_strided_slice %17 {offsets = [0, 0, 0], sizes = [2, 8, 8], strides = [1, 1, 1]} : vector<2x8x32xf32> to vector<2x8x8xf32>
    %24 = arith.truncf %23 : vector<2x8x8xf32> to vector<2x8x8xbf16>
    %25 = vector.extract_strided_slice %18 {offsets = [0, 0, 0], sizes = [2, 16, 8], strides = [1, 1, 1]} : vector<2x16x64xf32> to vector<2x16x8xf32>
    %26 = arith.truncf %25 : vector<2x16x8xf32> to vector<2x16x8xbf16>
    %27 = vector.extract_strided_slice %18 {offsets = [0, 0, 32], sizes = [2, 16, 8], strides = [1, 1, 1]} : vector<2x16x64xf32> to vector<2x16x8xf32>
    %28 = arith.truncf %27 : vector<2x16x8xf32> to vector<2x16x8xbf16>
    "tpu.trace_start"() <{level = 10 : i32, message = "bqd,bkd->bqk"}> : () -> ()
    %cst_19 = arith.constant dense<0.000000e+00> : vector<2x8x16xf32>
    %29 = tpu.matmul %24, %26, %cst_19 {dimension_numbers = #tpu.dot_dimension_numbers<[2], [2], [1], [1], [0, 0, 0, 1, 1, 1], [0], [0]>} : vector<2x8x8xbf16>, vector<2x16x8xbf16>, vector<2x8x16xf32> -> vector<2x8x16xf32>
    "tpu.trace_stop"() : () -> ()
    %30 = arith.addf %29, %21 : vector<2x8x16xf32>
    %cst_20 = arith.constant dense<0xFF800000> : vector<2x8xf32>
    %31 = vector.multi_reduction <maximumf>, %30, %cst_20 [2] : vector<2x8x16xf32> to vector<2x8xf32>
    %32 = vector.shape_cast %31 : vector<2x8xf32> to vector<2x8x1xf32>
    %33 = vector.broadcast %32 : vector<2x8x1xf32> to vector<2x8x16xf32>
    %34 = arith.subf %30, %33 : vector<2x8x16xf32>
    %35 = math.exp %34 : vector<2x8x16xf32>
    %cst_21 = arith.constant dense<0.000000e+00> : vector<2x8xf32>
    %36 = vector.multi_reduction <add>, %35, %cst_21 [2] : vector<2x8x16xf32> to vector<2x8xf32>
    %37 = vector.shape_cast %36 : vector<2x8xf32> to vector<2x8x1xf32>
    %38 = tpu.reciprocal %37 {approx = true} : vector<2x8x1xf32> -> vector<2x8x1xf32>
    %39 = vector.broadcast %38 : vector<2x8x1xf32> to vector<2x8x16xf32>
    %40 = arith.mulf %35, %39 : vector<2x8x16xf32>
    %41 = arith.truncf %40 : vector<2x8x16xf32> to vector<2x8x16xbf16>
    "tpu.trace_start"() <{level = 10 : i32, message = "bqk,bkd->bqd"}> : () -> ()
    %cst_22 = arith.constant dense<0.000000e+00> : vector<2x8x8xf32>
    %42 = tpu.matmul %41, %28, %cst_22 {dimension_numbers = #tpu.dot_dimension_numbers<[2], [1], [1], [2], [0, 0, 0, 1, 1, 2], [0], [0]>} : vector<2x8x16xbf16>, vector<2x16x8xbf16>, vector<2x8x8xf32> -> vector<2x8x8xf32>
    "tpu.trace_stop"() : () -> ()
    %43 = vector.shape_cast %42 : vector<2x8x8xf32> to vector<16x8xf32>
    %44 = arith.truncf %43 : vector<16x8xf32> to vector<16x8xbf16>
    %c0_23 = arith.constant 0 : index
    %c0_24 = arith.constant 0 : index
    %45 = vector.load %arg8[%c0_23, %c0_24] : memref<32x32xbf16, #tpu.memory_space<vmem>>, vector<8x32xbf16>
    %cst_25 = arith.constant dense<0.000000e+00> : vector<16x32xf32>
    %46 = tpu.matmul %44, %45, %cst_25 {dimension_numbers = #tpu.dot_dimension_numbers<[1], [0], [0], [1], [0, 0, 1, 1], [], []>} : vector<16x8xbf16>, vector<8x32xbf16>, vector<16x32xf32> -> vector<16x32xf32>
    %47 = arith.addf %22, %46 : vector<16x32xf32>
    %48 = vector.extract_strided_slice %17 {offsets = [0, 0, 8], sizes = [2, 8, 8], strides = [1, 1, 1]} : vector<2x8x32xf32> to vector<2x8x8xf32>
    %49 = arith.truncf %48 : vector<2x8x8xf32> to vector<2x8x8xbf16>
    %50 = vector.extract_strided_slice %18 {offsets = [0, 0, 8], sizes = [2, 16, 8], strides = [1, 1, 1]} : vector<2x16x64xf32> to vector<2x16x8xf32>
    %51 = arith.truncf %50 : vector<2x16x8xf32> to vector<2x16x8xbf16>
    %52 = vector.extract_strided_slice %18 {offsets = [0, 0, 40], sizes = [2, 16, 8], strides = [1, 1, 1]} : vector<2x16x64xf32> to vector<2x16x8xf32>
    %53 = arith.truncf %52 : vector<2x16x8xf32> to vector<2x16x8xbf16>
    "tpu.trace_start"() <{level = 10 : i32, message = "bqd,bkd->bqk"}> : () -> ()
    %cst_26 = arith.constant dense<0.000000e+00> : vector<2x8x16xf32>
    %54 = tpu.matmul %49, %51, %cst_26 {dimension_numbers = #tpu.dot_dimension_numbers<[2], [2], [1], [1], [0, 0, 0, 1, 1, 1], [0], [0]>} : vector<2x8x8xbf16>, vector<2x16x8xbf16>, vector<2x8x16xf32> -> vector<2x8x16xf32>
    "tpu.trace_stop"() : () -> ()
    %55 = arith.addf %54, %21 : vector<2x8x16xf32>
    %cst_27 = arith.constant dense<0xFF800000> : vector<2x8xf32>
    %56 = vector.multi_reduction <maximumf>, %55, %cst_27 [2] : vector<2x8x16xf32> to vector<2x8xf32>
    %57 = vector.shape_cast %56 : vector<2x8xf32> to vector<2x8x1xf32>
    %58 = vector.broadcast %57 : vector<2x8x1xf32> to vector<2x8x16xf32>
    %59 = arith.subf %55, %58 : vector<2x8x16xf32>
    %60 = math.exp %59 : vector<2x8x16xf32>
    %cst_28 = arith.constant dense<0.000000e+00> : vector<2x8xf32>
    %61 = vector.multi_reduction <add>, %60, %cst_28 [2] : vector<2x8x16xf32> to vector<2x8xf32>
    %62 = vector.shape_cast %61 : vector<2x8xf32> to vector<2x8x1xf32>
    %63 = tpu.reciprocal %62 {approx = true} : vector<2x8x1xf32> -> vector<2x8x1xf32>
    %64 = vector.broadcast %63 : vector<2x8x1xf32> to vector<2x8x16xf32>
    %65 = arith.mulf %60, %64 : vector<2x8x16xf32>
    %66 = arith.truncf %65 : vector<2x8x16xf32> to vector<2x8x16xbf16>
    "tpu.trace_start"() <{level = 10 : i32, message = "bqk,bkd->bqd"}> : () -> ()
    %cst_29 = arith.constant dense<0.000000e+00> : vector<2x8x8xf32>
    %67 = tpu.matmul %66, %53, %cst_29 {dimension_numbers = #tpu.dot_dimension_numbers<[2], [1], [1], [2], [0, 0, 0, 1, 1, 2], [0], [0]>} : vector<2x8x16xbf16>, vector<2x16x8xbf16>, vector<2x8x8xf32> -> vector<2x8x8xf32>
    "tpu.trace_stop"() : () -> ()
    %68 = vector.shape_cast %67 : vector<2x8x8xf32> to vector<16x8xf32>
    %69 = arith.truncf %68 : vector<16x8xf32> to vector<16x8xbf16>
    %c8 = arith.constant 8 : index
    %c0_30 = arith.constant 0 : index
    %70 = vector.load %arg8[%c8, %c0_30] : memref<32x32xbf16, #tpu.memory_space<vmem>>, vector<8x32xbf16>
    %cst_31 = arith.constant dense<0.000000e+00> : vector<16x32xf32>
    %71 = tpu.matmul %69, %70, %cst_31 {dimension_numbers = #tpu.dot_dimension_numbers<[1], [0], [0], [1], [0, 0, 1, 1], [], []>} : vector<16x8xbf16>, vector<8x32xbf16>, vector<16x32xf32> -> vector<16x32xf32>
    %72 = arith.addf %47, %71 : vector<16x32xf32>
    %73 = vector.extract_strided_slice %17 {offsets = [0, 0, 16], sizes = [2, 8, 8], strides = [1, 1, 1]} : vector<2x8x32xf32> to vector<2x8x8xf32>
    %74 = arith.truncf %73 : vector<2x8x8xf32> to vector<2x8x8xbf16>
    %75 = vector.extract_strided_slice %18 {offsets = [0, 0, 16], sizes = [2, 16, 8], strides = [1, 1, 1]} : vector<2x16x64xf32> to vector<2x16x8xf32>
    %76 = arith.truncf %75 : vector<2x16x8xf32> to vector<2x16x8xbf16>
    %77 = vector.extract_strided_slice %18 {offsets = [0, 0, 48], sizes = [2, 16, 8], strides = [1, 1, 1]} : vector<2x16x64xf32> to vector<2x16x8xf32>
    %78 = arith.truncf %77 : vector<2x16x8xf32> to vector<2x16x8xbf16>
    "tpu.trace_start"() <{level = 10 : i32, message = "bqd,bkd->bqk"}> : () -> ()
    %cst_32 = arith.constant dense<0.000000e+00> : vector<2x8x16xf32>
    %79 = tpu.matmul %74, %76, %cst_32 {dimension_numbers = #tpu.dot_dimension_numbers<[2], [2], [1], [1], [0, 0, 0, 1, 1, 1], [0], [0]>} : vector<2x8x8xbf16>, vector<2x16x8xbf16>, vector<2x8x16xf32> -> vector<2x8x16xf32>
    "tpu.trace_stop"() : () -> ()
    %80 = arith.addf %79, %21 : vector<2x8x16xf32>
    %cst_33 = arith.constant dense<0xFF800000> : vector<2x8xf32>
    %81 = vector.multi_reduction <maximumf>, %80, %cst_33 [2] : vector<2x8x16xf32> to vector<2x8xf32>
    %82 = vector.shape_cast %81 : vector<2x8xf32> to vector<2x8x1xf32>
    %83 = vector.broadcast %82 : vector<2x8x1xf32> to vector<2x8x16xf32>
    %84 = arith.subf %80, %83 : vector<2x8x16xf32>
    %85 = math.exp %84 : vector<2x8x16xf32>
    %cst_34 = arith.constant dense<0.000000e+00> : vector<2x8xf32>
    %86 = vector.multi_reduction <add>, %85, %cst_34 [2] : vector<2x8x16xf32> to vector<2x8xf32>
    %87 = vector.shape_cast %86 : vector<2x8xf32> to vector<2x8x1xf32>
    %88 = tpu.reciprocal %87 {approx = true} : vector<2x8x1xf32> -> vector<2x8x1xf32>
    %89 = vector.broadcast %88 : vector<2x8x1xf32> to vector<2x8x16xf32>
    %90 = arith.mulf %85, %89 : vector<2x8x16xf32>
    %91 = arith.truncf %90 : vector<2x8x16xf32> to vector<2x8x16xbf16>
    "tpu.trace_start"() <{level = 10 : i32, message = "bqk,bkd->bqd"}> : () -> ()
    %cst_35 = arith.constant dense<0.000000e+00> : vector<2x8x8xf32>
    %92 = tpu.matmul %91, %78, %cst_35 {dimension_numbers = #tpu.dot_dimension_numbers<[2], [1], [1], [2], [0, 0, 0, 1, 1, 2], [0], [0]>} : vector<2x8x16xbf16>, vector<2x16x8xbf16>, vector<2x8x8xf32> -> vector<2x8x8xf32>
    "tpu.trace_stop"() : () -> ()
    %93 = vector.shape_cast %92 : vector<2x8x8xf32> to vector<16x8xf32>
    %94 = arith.truncf %93 : vector<16x8xf32> to vector<16x8xbf16>
    %c16 = arith.constant 16 : index
    %c0_36 = arith.constant 0 : index
    %95 = vector.load %arg8[%c16, %c0_36] : memref<32x32xbf16, #tpu.memory_space<vmem>>, vector<8x32xbf16>
    %cst_37 = arith.constant dense<0.000000e+00> : vector<16x32xf32>
    %96 = tpu.matmul %94, %95, %cst_37 {dimension_numbers = #tpu.dot_dimension_numbers<[1], [0], [0], [1], [0, 0, 1, 1], [], []>} : vector<16x8xbf16>, vector<8x32xbf16>, vector<16x32xf32> -> vector<16x32xf32>
    %97 = arith.addf %72, %96 : vector<16x32xf32>
    %98 = vector.extract_strided_slice %17 {offsets = [0, 0, 24], sizes = [2, 8, 8], strides = [1, 1, 1]} : vector<2x8x32xf32> to vector<2x8x8xf32>
    %99 = arith.truncf %98 : vector<2x8x8xf32> to vector<2x8x8xbf16>
    %100 = vector.extract_strided_slice %18 {offsets = [0, 0, 24], sizes = [2, 16, 8], strides = [1, 1, 1]} : vector<2x16x64xf32> to vector<2x16x8xf32>
    %101 = arith.truncf %100 : vector<2x16x8xf32> to vector<2x16x8xbf16>
    %102 = vector.extract_strided_slice %18 {offsets = [0, 0, 56], sizes = [2, 16, 8], strides = [1, 1, 1]} : vector<2x16x64xf32> to vector<2x16x8xf32>
    %103 = arith.truncf %102 : vector<2x16x8xf32> to vector<2x16x8xbf16>
    "tpu.trace_start"() <{level = 10 : i32, message = "bqd,bkd->bqk"}> : () -> ()
    %cst_38 = arith.constant dense<0.000000e+00> : vector<2x8x16xf32>
    %104 = tpu.matmul %99, %101, %cst_38 {dimension_numbers = #tpu.dot_dimension_numbers<[2], [2], [1], [1], [0, 0, 0, 1, 1, 1], [0], [0]>} : vector<2x8x8xbf16>, vector<2x16x8xbf16>, vector<2x8x16xf32> -> vector<2x8x16xf32>
    "tpu.trace_stop"() : () -> ()
    %105 = arith.addf %104, %21 : vector<2x8x16xf32>
    %cst_39 = arith.constant dense<0xFF800000> : vector<2x8xf32>
    %106 = vector.multi_reduction <maximumf>, %105, %cst_39 [2] : vector<2x8x16xf32> to vector<2x8xf32>
    %107 = vector.shape_cast %106 : vector<2x8xf32> to vector<2x8x1xf32>
    %108 = vector.broadcast %107 : vector<2x8x1xf32> to vector<2x8x16xf32>
    %109 = arith.subf %105, %108 : vector<2x8x16xf32>
    %110 = math.exp %109 : vector<2x8x16xf32>
    %cst_40 = arith.constant dense<0.000000e+00> : vector<2x8xf32>
    %111 = vector.multi_reduction <add>, %110, %cst_40 [2] : vector<2x8x16xf32> to vector<2x8xf32>
    %112 = vector.shape_cast %111 : vector<2x8xf32> to vector<2x8x1xf32>
    %113 = tpu.reciprocal %112 {approx = true} : vector<2x8x1xf32> -> vector<2x8x1xf32>
    %114 = vector.broadcast %113 : vector<2x8x1xf32> to vector<2x8x16xf32>
    %115 = arith.mulf %110, %114 : vector<2x8x16xf32>
    %116 = arith.truncf %115 : vector<2x8x16xf32> to vector<2x8x16xbf16>
    "tpu.trace_start"() <{level = 10 : i32, message = "bqk,bkd->bqd"}> : () -> ()
    %cst_41 = arith.constant dense<0.000000e+00> : vector<2x8x8xf32>
    %117 = tpu.matmul %116, %103, %cst_41 {dimension_numbers = #tpu.dot_dimension_numbers<[2], [1], [1], [2], [0, 0, 0, 1, 1, 2], [0], [0]>} : vector<2x8x16xbf16>, vector<2x16x8xbf16>, vector<2x8x8xf32> -> vector<2x8x8xf32>
    "tpu.trace_stop"() : () -> ()
    %118 = vector.shape_cast %117 : vector<2x8x8xf32> to vector<16x8xf32>
    %119 = arith.truncf %118 : vector<16x8xf32> to vector<16x8xbf16>
    %c24 = arith.constant 24 : index
    %c0_42 = arith.constant 0 : index
    %120 = vector.load %arg8[%c24, %c0_42] : memref<32x32xbf16, #tpu.memory_space<vmem>>, vector<8x32xbf16>
    %cst_43 = arith.constant dense<0.000000e+00> : vector<16x32xf32>
    %121 = tpu.matmul %119, %120, %cst_43 {dimension_numbers = #tpu.dot_dimension_numbers<[1], [0], [0], [1], [0, 0, 1, 1], [], []>} : vector<16x8xbf16>, vector<8x32xbf16>, vector<16x32xf32> -> vector<16x32xf32>
    %122 = arith.addf %97, %121 : vector<16x32xf32>
    %c0_44 = arith.constant 0 : index
    %c0_45 = arith.constant 0 : index
    %123 = vector.load %arg9[%c0_44, %c0_45] : memref<1x32xf32, #tpu.memory_space<vmem>>, vector<1x32xf32>
    %124 = vector.broadcast %123 : vector<1x32xf32> to vector<16x32xf32>
    %125 = arith.addf %122, %124 : vector<16x32xf32>
    %126 = arith.addf %1, %125 : vector<16x32xf32>
    %cst_46 = arith.constant dense<0.000000e+00> : vector<16xf32>
    %127 = vector.multi_reduction <add>, %126, %cst_46 [1] : vector<16x32xf32> to vector<16xf32>
    %128 = vector.shape_cast %127 : vector<16xf32> to vector<16x1xf32>
    %cst_47 = arith.constant 3.200000e+01 : f32
    %129 = vector.broadcast %cst_47 : f32 to vector<16x1xf32>
    %130 = arith.divf %128, %129 : vector<16x1xf32>
    %131 = vector.broadcast %130 : vector<16x1xf32> to vector<16x32xf32>
    %132 = arith.subf %126, %131 : vector<16x32xf32>
    %133 = arith.mulf %132, %132 : vector<16x32xf32>
    %cst_48 = arith.constant dense<0.000000e+00> : vector<16xf32>
    %134 = vector.multi_reduction <add>, %133, %cst_48 [1] : vector<16x32xf32> to vector<16xf32>
    %135 = vector.shape_cast %134 : vector<16xf32> to vector<16x1xf32>
    %cst_49 = arith.constant 3.200000e+01 : f32
    %136 = vector.broadcast %cst_49 : f32 to vector<16x1xf32>
    %137 = arith.divf %135, %136 : vector<16x1xf32>
    %138 = vector.broadcast %130 : vector<16x1xf32> to vector<16x32xf32>
    %139 = arith.subf %126, %138 : vector<16x32xf32>
    %cst_50 = arith.constant 9.99999974E-6 : f32
    %140 = vector.broadcast %cst_50 : f32 to vector<16x1xf32>
    %141 = arith.addf %137, %140 : vector<16x1xf32>
    %142 = math.rsqrt %141 : vector<16x1xf32>
    %143 = vector.broadcast %142 : vector<16x1xf32> to vector<16x32xf32>
    %144 = arith.mulf %139, %143 : vector<16x32xf32>
    %c0_51 = arith.constant 0 : index
    %c0_52 = arith.constant 0 : index
    %145 = vector.load %arg10[%c0_51, %c0_52] : memref<1x32xf32, #tpu.memory_space<vmem>>, vector<1x32xf32>
    %146 = vector.broadcast %145 : vector<1x32xf32> to vector<16x32xf32>
    %147 = arith.mulf %144, %146 : vector<16x32xf32>
    %c0_53 = arith.constant 0 : index
    %c0_54 = arith.constant 0 : index
    %148 = vector.load %arg11[%c0_53, %c0_54] : memref<1x32xf32, #tpu.memory_space<vmem>>, vector<1x32xf32>
    %149 = vector.broadcast %148 : vector<1x32xf32> to vector<16x32xf32>
    %150 = arith.addf %147, %149 : vector<16x32xf32>
    %151 = arith.truncf %150 : vector<16x32xf32> to vector<16x32xbf16>
    %c0_55 = arith.constant 0 : index
    %c0_56 = arith.constant 0 : index
    %152 = vector.load %arg12[%c0_55, %c0_56] : memref<32x128xbf16, #tpu.memory_space<vmem>>, vector<32x128xbf16>
    %cst_57 = arith.constant dense<0.000000e+00> : vector<16x128xf32>
    %153 = tpu.matmul %151, %152, %cst_57 {dimension_numbers = #tpu.dot_dimension_numbers<[1], [0], [0], [1], [0, 0, 1, 1], [], []>} : vector<16x32xbf16>, vector<32x128xbf16>, vector<16x128xf32> -> vector<16x128xf32>
    %c0_58 = arith.constant 0 : index
    %c0_59 = arith.constant 0 : index
    %154 = vector.load %arg13[%c0_58, %c0_59] : memref<1x128xf32, #tpu.memory_space<vmem>>, vector<1x128xf32>
    %155 = vector.broadcast %154 : vector<1x128xf32> to vector<16x128xf32>
    %156 = arith.addf %153, %155 : vector<16x128xf32>
    %cst_60 = arith.constant 5.000000e-01 : f32
    %157 = vector.broadcast %cst_60 : f32 to vector<16x128xf32>
    %158 = arith.mulf %157, %156 : vector<16x128xf32>
    %cst_61 = arith.constant 4.471500e-02 : f32
    %159 = vector.broadcast %cst_61 : f32 to vector<16x128xf32>
    %160 = arith.mulf %159, %156 : vector<16x128xf32>
    %161 = arith.mulf %160, %156 : vector<16x128xf32>
    %162 = arith.mulf %161, %156 : vector<16x128xf32>
    %163 = arith.addf %156, %162 : vector<16x128xf32>
    %cst_62 = arith.constant 0.797884583 : f32
    %164 = vector.broadcast %cst_62 : f32 to vector<16x128xf32>
    %165 = arith.mulf %164, %163 : vector<16x128xf32>
    %166 = math.tanh %165 : vector<16x128xf32>
    %cst_63 = arith.constant 1.000000e+00 : f32
    %167 = vector.broadcast %cst_63 : f32 to vector<16x128xf32>
    %168 = arith.addf %167, %166 : vector<16x128xf32>
    %169 = arith.mulf %158, %168 : vector<16x128xf32>
    %170 = arith.truncf %169 : vector<16x128xf32> to vector<16x128xbf16>
    %c0_64 = arith.constant 0 : index
    %c0_65 = arith.constant 0 : index
    %171 = vector.load %arg14[%c0_64, %c0_65] : memref<128x32xbf16, #tpu.memory_space<vmem>>, vector<128x32xbf16>
    %cst_66 = arith.constant dense<0.000000e+00> : vector<16x32xf32>
    %172 = tpu.matmul %170, %171, %cst_66 {dimension_numbers = #tpu.dot_dimension_numbers<[1], [0], [0], [1], [0, 0, 1, 1], [], []>} : vector<16x128xbf16>, vector<128x32xbf16>, vector<16x32xf32> -> vector<16x32xf32>
    %c0_67 = arith.constant 0 : index
    %c0_68 = arith.constant 0 : index
    %173 = vector.load %arg15[%c0_67, %c0_68] : memref<1x32xf32, #tpu.memory_space<vmem>>, vector<1x32xf32>
    %174 = vector.broadcast %173 : vector<1x32xf32> to vector<16x32xf32>
    %175 = arith.addf %172, %174 : vector<16x32xf32>
    %176 = arith.addf %126, %175 : vector<16x32xf32>
    %177 = vector.shape_cast %176 : vector<16x32xf32> to vector<2x8x32xf32>
    %c0_69 = arith.constant 0 : index
    %c0_70 = arith.constant 0 : index
    %c0_71 = arith.constant 0 : index
    %178 = vector.load %arg16[%c0_69, %c0_70, %c0_71] : memref<2x8x32xf32, #tpu.memory_space<vmem>>, vector<2x8x32xf32>
    tpu.vector_store %arg16[%c0_69, %c0_70, %c0_71], %177 {strides = array<i32>} : memref<2x8x32xf32, #tpu.memory_space<vmem>>, vector<2x8x32xf32>,
    return
  }
  func.func @transform_0(%arg0: i32) -> (i32, i32, i32) {
    %c0_i32 = arith.constant 0 : i32
    %c0_i32_0 = arith.constant 0 : i32
    %c0_i32_1 = arith.constant 0 : i32
    return %arg0, %c0_i32, %c0_i32_0 : i32, i32, i32
  }
  func.func @transform_1(%arg0: i32) -> (i32, i32, i32) {
    %c0_i32 = arith.constant 0 : i32
    %c0_i32_0 = arith.constant 0 : i32
    %c0_i32_1 = arith.constant 0 : i32
    return %arg0, %c0_i32, %c0_i32_0 : i32, i32, i32
  }
  func.func @transform_2(%arg0: i32) -> (i32, i32, i32) {
    %c0_i32 = arith.constant 0 : i32
    %c0_i32_0 = arith.constant 0 : i32
    %c0_i32_1 = arith.constant 0 : i32
    return %arg0, %c0_i32, %c0_i32_0 : i32, i32, i32
  }
  func.func @transform_3(%arg0: i32) -> (i32, i32) {
    %c0_i32 = arith.constant 0 : i32
    %c0_i32_0 = arith.constant 0 : i32
    %c0_i32_1 = arith.constant 0 : i32
    return %c0_i32, %c0_i32_0 : i32, i32
  }
  func.func @transform_4(%arg0: i32) -> (i32, i32) {
    %c0_i32 = arith.constant 0 : i32
    %c0_i32_0 = arith.constant 0 : i32
    %c0_i32_1 = arith.constant 0 : i32
    return %c0_i32, %c0_i32_0 : i32, i32
  }
  func.func @transform_5(%arg0: i32) -> (i32, i32) {
    %c0_i32 = arith.constant 0 : i32
    %c0_i32_0 = arith.constant 0 : i32
    %c0_i32_1 = arith.constant 0 : i32
    return %c0_i32, %c0_i32_0 : i32, i32
  }
  func.func @transform_6(%arg0: i32) -> (i32, i32) {
    %c0_i32 = arith.constant 0 : i32
    %c0_i32_0 = arith.constant 0 : i32
    %c0_i32_1 = arith.constant 0 : i32
    return %c0_i32, %c0_i32_0 : i32, i32
  }
  func.func @transform_7(%arg0: i32) -> (i32, i32) {
    %c0_i32 = arith.constant 0 : i32
    %c0_i32_0 = arith.constant 0 : i32
    %c0_i32_1 = arith.constant 0 : i32
    return %c0_i32, %c0_i32_0 : i32, i32
  }
  func.func @transform_8(%arg0: i32) -> (i32, i32) {
    %c0_i32 = arith.constant 0 : i32
    %c0_i32_0 = arith.constant 0 : i32
    %c0_i32_1 = arith.constant 0 : i32
    return %c0_i32, %c0_i32_0 : i32, i32
  }
  func.func @transform_9(%arg0: i32) -> (i32, i32) {
    %c0_i32 = arith.constant 0 : i32
    %c0_i32_0 = arith.constant 0 : i32
    %c0_i32_1 = arith.constant 0 : i32
    return %c0_i32, %c0_i32_0 : i32, i32
  }
  func.func @transform_10(%arg0: i32) -> (i32, i32) {
    %c0_i32 = arith.constant 0 : i32
    %c0_i32_0 = arith.constant 0 : i32
    %c0_i32_1 = arith.constant 0 : i32
    return %c0_i32, %c0_i32_0 : i32, i32
  }
  func.func @transform_11(%arg0: i32) -> (i32, i32) {
    %c0_i32 = arith.constant 0 : i32
    %c0_i32_0 = arith.constant 0 : i32
    %c0_i32_1 = arith.constant 0 : i32
    return %c0_i32, %c0_i32_0 : i32, i32
  }
  func.func @transform_12(%arg0: i32) -> (i32, i32) {
    %c0_i32 = arith.constant 0 : i32
    %c0_i32_0 = arith.constant 0 : i32
    %c0_i32_1 = arith.constant 0 : i32
    return %c0_i32, %c0_i32_0 : i32, i32
  }
  func.func @transform_13(%arg0: i32) -> (i32, i32) {
    %c0_i32 = arith.constant 0 : i32
    %c0_i32_0 = arith.constant 0 : i32
    %c0_i32_1 = arith.constant 0 : i32
    return %c0_i32, %c0_i32_0 : i32, i32
  }
  func.func @transform_14(%arg0: i32) -> (i32, i32) {
    %c0_i32 = arith.constant 0 : i32
    %c0_i32_0 = arith.constant 0 : i32
    %c0_i32_1 = arith.constant 0 : i32
    return %c0_i32, %c0_i32_0 : i32, i32
  }
  func.func @transform_15(%arg0: i32) -> (i32, i32, i32) {
    %c0_i32 = arith.constant 0 : i32
    %c0_i32_0 = arith.constant 0 : i32
    %c0_i32_1 = arith.constant 0 : i32
    return %arg0, %c0_i32, %c0_i32_0 : i32, i32, i32
  }
}

</mosaic_0001>

<bundles_post_ra>
// kernel: tpu_custom_call.1
= control target key start
LH: loop header
LB: loop body
LE: loop exit
PB: predicated region body
PF: predicated region fallthrough
CT: control target
= control target key end

     0   :  { %s3744_s0 = inlined_call_operand.vmem [shape: f32[4,8,32], index: 0, kind: input, shape index: {}]   ;;  %s3745_s1 = inlined_call_operand.vmem [shape: bf16[4,16,64], index: 1, kind: input, shape index: {}]   ;;  %s3746_s2 = inlined_call_operand.hbm [shape: f32[4,1,16], index: 2, kind: input, shape index: {}]   ;;  %s3747_s3 = inlined_call_operand.hbm [shape: bf16[32,32], index: 3, kind: input, shape index: {}]   ;;  %s3748_s4 = inlined_call_operand.vmem [shape: f32[1,32], index: 4, kind: input, shape index: {}]   ;;  %s3749_s5 = inlined_call_operand.vmem [shape: bf16[64,64], index: 5, kind: input, shape index: {}]   ;;  %s3750_s6 = inlined_call_operand.vmem [shape: f32[1,64], index: 6, kind: input, shape index: {}]   ;;  %s3751_s7 = inlined_call_operand.hbm [shape: bf16[32,32], index: 7, kind: input, shape index: {}]   ;;  %s3752_s8 = inlined_call_operand.hbm [shape: f32[1,32], index: 8, kind: input, shape index: {}]   ;;  %s3753_s9 = inlined_call_operand.hbm [shape: f32[1,32], index: 9, kind: input, shape index: {}]   ;;  %s3754_s10 = inlined_call_operand.vmem [shape: f32[1,32], index: 10, kind: input, shape index: {}]   ;;  %s3755_s11 = inlined_call_operand.hbm [shape: bf16[32,128], index: 11, kind: input, shape index: {}]   ;;  %s3756_s12 = inlined_call_operand.vmem [shape: f32[1,128], index: 12, kind: input, shape index: {}]   ;;  %s3757_s13 = inlined_call_operand.vmem [shape: bf16[128,32], index: 13, kind: input, shape index: {}]   ;;  %s3758_s14 = inlined_call_operand.vmem [shape: f32[1,32], index: 14, kind: input, shape index: {}]   ;;  %s3759_s15 = inlined_call_operand.hbm [shape: f32[4,8,32], index: 15, kind: output, shape index: {}]  }
   0x1   :  { %3765 = sst [smem:[#allocation19_spill]] %s3747_s3 }
   0x2   :  { %3766 = sst [smem:[#allocation20_spill]] %s3748_s4 }
   0x3   :  { %3767 = sst [smem:[#allocation21_spill]] %s3750_s6 }
   0x4   :  { %3768 = sst [smem:[#allocation22_spill]] %s3754_s10 }
   0x5   :  { %3769 = sst [smem:[#allocation23_spill]] %s3756_s12 }
   0x6   :  { %3770 = sst [smem:[#allocation24_spill]] %s3757_s13 }
   0x7   :  { %3771 = sst [smem:[#allocation25_spill]] %s3758_s14 }
   0x8   :  { %3772 = sst [smem:[#allocation26_spill]] %s3759_s15 }
   0x9   :  { %20 = vsyncpa [#allocation3], 0 }
   0xa   :  { %22 = vsyncpa [#allocation3 + $0x1], 0 }
   0xb   :  { %23 = vsyncpa [#allocation6], 0 }
   0xc   :  { %24 = vsyncpa [#allocation9], 0 }
   0xd   :  { %25 = vsyncpa [#allocation12], 0 }
   0xe   :  { %26 = vsyncpa [#allocation4], 0 }
   0xf   :  { %28 = vsyncpa [#allocation4 + $0x1], 0  ;;  %s3147_s18 = smov 0   ;;  %s3149_s19 = smov 0  }
  0x10   :  { %s3151_s20 = smov 0   ;;  %s3153_s21 = smov 0  }
  0x11 LB: > { %s3045_s22 = smov [#allocation5]   ;;  %s3168_s24 = sadd.s32 4294967295, %s3043_s21   ;;  %s3043_s21 = sphi %s3153_s21, %s3802_s21   ;;  %s3039_s20 = sphi %s3151_s20, %s3801_s20   ;;  %s3035_s19 = sphi %s3149_s19, %s3800_s19   ;;  %s3031_s18 = sphi %s3147_s18, %s3799_s18  }
  0x12   : > { %s407_s23 = sshll.u32 %s3045_s22, 4  ;;  %p2314_p0 = scmp.ge.s32.totalorder %s3043_s21, 1  ;;  %s3173_s23 = int_to_ptr.vmem [resolvable:$true] %s407_s23 }
  0x13   : > { %p3762_p1 = scmp.eq.s32.totalorder %s3168_s24, 0  ;;  %p395_p2 = scmp.lt.s32.totalorder %s3043_s21, 3 }
  0x14   : > { %s3046_s26 = smov [#allocation8]   ;;  %s3047_s29 = smov [#allocation7]  }
  0x15   : > { %p3175_p3 = pnand %p2314_p0, %p395_p2  ;;  %s443_s27 = sshll.u32 %s3046_s26, 4  ;;  %s3188_s27 = int_to_ptr.vmem [resolvable:$true] %s443_s27 }
  0x16   : > { %s429_s30 = sshll.u32 %s3047_s29, 4  ;;  %s3775_s3 = sld [smem:[#allocation19_spill]]  ;;  %s3190_s30 = int_to_ptr.vmem [resolvable:$true] %s429_s30 }
  0x17   : > { %s3773_s25 = scalar_select %p3175_p3, 1, 0 }
  0x18   : > { %p2649_p5 = pneg %p3175_p3 }
  0x1a   : > { %p3184_p6 = pnand %p2649_p5, %p3762_p1 }
  0x1c   : > { %s2795_s22 = scalar_lea.hbm %s3775_s3, 256  ;;  %p3200_p8 = pneg %p3184_p6 }
  0x1d   : > { %p2796_p7 = scmp.ne.s32.totalorder %s3775_s3, %s2795_s22  ;;  %p2802_p11 = scmp.lt.u32.totalorder %s2795_s22, %s3775_s3 }
  0x1f   : > { %p2798_p9 = pnand %p3200_p8, %p2796_p7 }
  0x21   : > { %p2799_p10 = pneg %p2798_p9 }
  0x23   : > { %p2804_p12 = pnand %p2802_p11, %p2799_p10 }
  0x25   : > { %2807 = shalt.err (!%p2804_p12)
}
  0x26   : > { %s2808_s14 = scalar_lea.vmem %s3173_s23, 256  ;;  %p2816_p5 = scmp.lt.s32.totalorder %s3173_s23, %s3173_s23 }
  0x27   : > { %p2809_p13 = scmp.ne.s32.totalorder %s3173_s23, %s2808_s14  ;;  %p2817_p4 = scmp.lt.s32.totalorder %s2808_s14, %s2808_s14 }
  0x29   : > { %p2811_p0 = pnand %p2809_p13, %p3200_p8  ;;  %p2818_p7 = por %p2817_p4, %p2816_p5 }
  0x2b   : > { %p2812_p2 = pneg %p2811_p0 }
  0x2d   : > { %p2819_p9 = pnand %p2818_p7, %p2812_p2 }
  0x2f   : > { %2822 = shalt.err (!%p2819_p9)
}
  0x30   : > { %s3048_s15 = smov 64   ;;  %s3049_s12 = smov 4  }
  0x31   : > { %2652 = dma.hbm_to_vmem [thread:$0]  (!%p3184_p6), %s3775_s3, 256, %s3173_s23, [#allocation6], %s3048_s15, %s3048_s15, %s3049_s12  }
  0x32   : > { %s2823_s14 = scalar_lea.hbm %s3752_s8, 16 }
  0x33   : > { %p2824_p4 = scmp.ne.s32.totalorder %s3752_s8, %s2823_s14  ;;  %p2830_p12 = scmp.lt.u32.totalorder %s2823_s14, %s3752_s8 }
  0x35   : > { %p2826_p10 = pnand %p2824_p4, %p3200_p8 }
  0x37   : > { %p2827_p11 = pneg %p2826_p10 }
  0x39   : > { %p2832_p13 = pnand %p2830_p12, %p2827_p11 }
  0x3b   : > { %2835 = shalt.err (!%p2832_p13)
}
  0x3c   : > { %s2836_s23 = scalar_lea.vmem %s3188_s27, 16  ;;  %s2843_s10 = scalar_lea.vmem %s3188_s27, 32 }
  0x3d   : > { %p2837_p0 = scmp.ne.s32.totalorder %s3188_s27, %s2836_s23  ;;  %p2844_p7 = scmp.lt.s32.totalorder %s3188_s27, %s3188_s27 }
  0x3e   : > { %p2845_p9 = scmp.lt.s32.totalorder %s2843_s10, %s2836_s23 }
  0x3f   : > { %p2839_p2 = pnand %p2837_p0, %p3200_p8 }
  0x40   : > { %p2846_p4 = por %p2845_p9, %p2844_p7 }
  0x41   : > { %p2840_p5 = pneg %p2839_p2 }
  0x43   : > { %p2847_p10 = pnand %p2846_p4, %p2840_p5 }
  0x45   : > { %2850 = shalt.err (!%p2847_p10)
}
  0x46   : > { %2658 = dma.hbm_to_vmem [thread:$0]  (!%p3184_p6), %s3752_s8, 16, %s3188_s27, [#allocation9]  }
  0x47   : > { %s2851_s17 = scalar_lea.hbm %s3751_s7, 256 }
  0x48   : > { %p2852_p11 = scmp.ne.s32.totalorder %s3751_s7, %s2851_s17  ;;  %p2858_p0 = scmp.lt.u32.totalorder %s2851_s17, %s3751_s7 }
  0x4a   : > { %p2854_p12 = pnand %p2852_p11, %p3200_p8 }
  0x4c   : > { %p2855_p13 = pneg %p2854_p12 }
  0x4e   : > { %p2860_p2 = pnand %p2858_p0, %p2855_p13 }
  0x50   : > { %2863 = shalt.err (!%p2860_p2)
}
  0x51   : > { %s2864_s27 = scalar_lea.vmem %s3190_s30, 256  ;;  %p2872_p4 = scmp.lt.s32.totalorder %s3190_s30, %s3190_s30 }
  0x52   : > { %p2865_p5 = scmp.ne.s32.totalorder %s3190_s30, %s2864_s27  ;;  %p2873_p10 = scmp.lt.s32.totalorder %s2864_s27, %s2864_s27 }
  0x54   : > { %p2867_p7 = pnand %p2865_p5, %p3200_p8  ;;  %p2874_p11 = por %p2873_p10, %p2872_p4 }
  0x56   : > { %p2868_p9 = pneg %p2867_p7 }
  0x58   : > { %p2875_p12 = pnand %p2874_p11, %p2868_p9 }
  0x5a   : > { %2878 = shalt.err (!%p2875_p12)
}
  0x5b   : > { %2655 = dma.hbm_to_vmem [thread:$0]  (!%p3184_p6), %s3751_s7, 256, %s3190_s30, [#allocation6], %s3048_s15, %s3048_s15, %s3049_s12  }
  0x5c   : > { %s3050_s6 = smov [#allocation10]   ;;  %s3051_s16 = smov [#allocation11]  }
  0x5d   : > { %s454_s13 = sshll.u32 %s3050_s6, 4  ;;  %s467_s17 = sshll.u32 %s3051_s16, 4  ;;  %s455_s13 = int_to_ptr.vmem [resolvable:$true] %s454_s13  ;;  %s468_s17 = int_to_ptr.vmem [resolvable:$true] %s467_s17 }
  0x5e   : > { %s2879_s14 = scalar_lea.hbm %s3753_s9, 16 }
  0x5f   : > { %p2880_p13 = scmp.ne.s32.totalorder %s3753_s9, %s2879_s14  ;;  %p2886_p5 = scmp.lt.u32.totalorder %s2879_s14, %s3753_s9 }
  0x61   : > { %p2882_p0 = pnand %p2880_p13, %p3200_p8 }
  0x63   : > { %p2883_p2 = pneg %p2882_p0 }
  0x65   : > { %p2888_p7 = pnand %p2886_p5, %p2883_p2 }
  0x67   : > { %2891 = shalt.err (!%p2888_p7)
}
  0x68   : > { %s2892_s30 = scalar_lea.vmem %s455_s13, 16  ;;  %s2899_s4 = scalar_lea.vmem %s455_s13, 32 }
  0x69   : > { %p2893_p9 = scmp.ne.s32.totalorder %s455_s13, %s2892_s30  ;;  %p2900_p11 = scmp.lt.s32.totalorder %s455_s13, %s455_s13 }
  0x6a   : > { %p2901_p12 = scmp.lt.s32.totalorder %s2899_s4, %s2892_s30 }
  0x6b   : > { %p2895_p4 = pnand %p2893_p9, %p3200_p8 }
  0x6c   : > { %p2902_p1 = por %p2901_p12, %p2900_p11 }
  0x6d   : > { %p2896_p10 = pneg %p2895_p4 }
  0x6f   : > { %p2903_p3 = pnand %p2902_p1, %p2896_p10 }
  0x71   : > { %2906 = shalt.err (!%p2903_p3)
}
  0x72   : > { %2661 = dma.hbm_to_vmem [thread:$0]  (!%p3184_p6), %s3753_s9, 16, %s455_s13, [#allocation9]  }
  0x73   : > { %s2907_s29 = scalar_lea.hbm %s3755_s11, 256 }
  0x74   : > { %p2908_p13 = scmp.ne.s32.totalorder %s3755_s11, %s2907_s29  ;;  %p2914_p3 = scmp.lt.u32.totalorder %s2907_s29, %s3755_s11 }
  0x76   : > { %p2910_p0 = pnand %p2908_p13, %p3200_p8 }
  0x78   : > { %p2911_p1 = pneg %p2910_p0 }
  0x7a   : > { %p2916_p2 = pnand %p2914_p3, %p2911_p1 }
  0x7c   : > { %2919 = shalt.err (!%p2916_p2)
}
  0x7d   : > { %s2920_s30 = scalar_lea.vmem %s468_s17, 256  ;;  %p2928_p4 = scmp.lt.s32.totalorder %s468_s17, %s468_s17 }
  0x7e   : > { %p2921_p5 = scmp.ne.s32.totalorder %s468_s17, %s2920_s30  ;;  %p2929_p10 = scmp.lt.s32.totalorder %s2920_s30, %s2920_s30 }
  0x80   : > { %p2923_p7 = pnand %p2921_p5, %p3200_p8  ;;  %p2930_p11 = por %p2929_p10, %p2928_p4 }
  0x82   : > { %p2924_p9 = pneg %p2923_p7 }
  0x84   : > { %p2931_p12 = pnand %p2930_p11, %p2924_p9 }
  0x86   : > { %2934 = shalt.err (!%p2931_p12)
}
  0x87   : > { %2664 = dma.hbm_to_vmem [thread:$0]  (!%p3184_p6), %s3755_s11, 256, %s468_s17, [#allocation12], %s3048_s15, %s3048_s15, %s3049_s12  }
  0x88   : > { %s2313_s28 = sadd.s32 4294967294, %s3043_s21   ;;  %s3315_s26 = sadd.s32 1, %s3043_s21  }
  0x89   : > { %s93_s6 = sadd.s32 1, %s3039_s20  ;;  %s90_s16 = ssub.s32 %s3043_s21, %s3315_s26 }
  0x8a   : > { %p100_p8 = scmp.ne.s32.totalorder %s3039_s20, %s3035_s19  ;;  %p91_p13 = scmp.eq.s32.totalorder %s90_s16, 0 }
  0x8b   : > { %p101_p0 = scmp.eq.s32.totalorder %s3043_s21, 0  ;;  %p106_p1 = scmp.ne.s32.totalorder %s3035_s19, %s3031_s18 }
  0x8c   : > { %p382_p3 = scmp.eq.s32.totalorder %s3168_s24, 1  ;;  %p3777_p5 = scmp.eq.s32.totalorder %s3168_s24, 0 }
  0x8d   : > { %s3327_s3 = scalar_select %p91_p13, %s3039_s20, %s93_s6  }
  0x8e   : > { %p102_p2 = por %p101_p0, %p100_p8  ;;  %p3331_p7 = por %p3777_p5, %p106_p1 }
  0x8f   : > { %p3335_p6 = por %p382_p3, %p100_p8  ;;  %p388_p9 = scmp.eq.s32.totalorder %s2313_s28, 1 }
  0x90   : > { %p2678_p4 = scmp.lt.s32.totalorder %s3043_s21, 2  ;;  %s509_s12 = sand.u32 1, %s3039_s20  }
  0x91   : > { %s3779_s15 = scalar_select %p3335_p6, 1, 0 }
  0x92   : > { %p3341_p10 = por %p388_p9, %p106_p1  ;;  %s2321_s29 = sshll.u32 %s509_s12, 1 }
  0x93   : > { %s2393_s14 = sshll.u32 %s3043_s21, 5  ;;  %s513_s30 = scalar_lea.vmem [#allocation2], %s2321_s29 }
  0x94   : > { %s3780_s17 = scalar_select %p3341_p10, 1, 0 }
  0x95   : > { %s3349_s10 = scalar_lea.hbm %s3746_s2, %s2393_s14  ;;  %s520_s13 = sshll.u32 %s513_s30, 4  ;;  %s3355_s13 = int_to_ptr.vmem [resolvable:$true] %s520_s13 }
  0x96   : > { %p3351_p11 = pnand %p2678_p4, %p102_p2  ;;  %s3357_s28 = scalar_lea.sflag [#allocation3], %s509_s12 }
  0x97   : > { %s2935_s6 = scalar_lea.hbm %s3349_s10, 32  ;;  %s2940_s14 = scalar_lea.hbm %s3746_s2, 64 }
  0x98   : > { %p2936_p12 = scmp.ne.s32.totalorder %s3349_s10, %s2935_s6  ;;  %p2937_p8 = pneg %p3351_p11 }
  0x99   : > { %p2941_p1 = scmp.lt.u32.totalorder %s3349_s10, %s3746_s2  ;;  %p2942_p3 = scmp.lt.u32.totalorder %s2940_s14, %s2935_s6 }
  0x9a   : > { %p2938_p13 = pnand %p2937_p8, %p2936_p12  ;;  %p2944_p5 = scmp.lt.u32.totalorder %s2935_s6, %s3349_s10 }
  0x9b   : > { %p2943_p2 = por %p2942_p3, %p2941_p1 }
  0x9c   : > { %p2939_p0 = pneg %p2938_p13 }
  0x9d   : > { %p2945_p9 = por %p2944_p5, %p2943_p2 }
  0x9f   : > { %p2946_p4 = pnand %p2945_p9, %p2939_p0 }
  0xa1   : > { %2949 = shalt.err (!%p2946_p4)
}
  0xa2   : > { %s2950_s12 = scalar_lea.vmem %s3355_s13, 32  ;;  %s3052_s30 = smov [#allocation2]  }
  0xa3   : > { %p2951_p12 = scmp.ne.s32.totalorder %s3355_s13, %s2950_s12  ;;  %s2955_s16 = sshll.u32 %s3052_s30, 4  ;;  %s2956_s16 = int_to_ptr.vmem [resolvable:$false] %s2955_s16 }
  0xa4   : > { %s2957_s29 = scalar_lea.vmem %s2956_s16, 64  ;;  %p2958_p6 = scmp.lt.s32.totalorder %s3355_s13, %s2956_s16 }
  0xa5   : > { %p2953_p13 = pnand %p2951_p12, %p2937_p8  ;;  %p2959_p1 = scmp.lt.s32.totalorder %s2957_s29, %s2950_s12 }
  0xa7   : > { %p2954_p10 = pneg %p2953_p13  ;;  %p2960_p3 = por %p2959_p1, %p2958_p6 }
  0xa9   : > { %p2961_p2 = pnand %p2960_p3, %p2954_p10 }
  0xab   : > { %2964 = shalt.err (!%p2961_p2)
}
  0xac   : > { %s3053_s6 = smov 16   ;;  %s3054_s14 = smov 1  }
  0xad   : > { %2668 = dma.hbm_to_vmem [thread:$0]  (!%p3351_p11), %s3349_s10, 32, %s3355_s13, %s3357_s28, %s3053_s6, %s3053_s6, %s3054_s14  }
  0xae   : > { %p3782_p8 = scmp.ne.s32.totalorder %s3773_s25, 0 }
  0xaf   : > { %s3388_s23 = sand.u32 (!%p3782_p8), 1, %s3035_s19  }
  0xb0   : > { %532 = sbr.rel (%p3782_p8) target bundleno = 4252 (0x109c), region = 80  ;;  %s2325_s27 = sshll.u32 (!%p3782_p8), %s3388_s23, 1 }
  0xb1   : > { %s535_s12 = scalar_lea.sflag (!%p3782_p8), [#allocation3], %s3388_s23  ;;  %s3392_s30 = scalar_lea.vmem (!%p3782_p8), [#allocation2], %s2325_s27 }
  0xb7   : > { %3010 = dma.done.wait (%p3331_p7), %s535_s12, 32  }
  0xb8   : > { %3012 = vsyncadd (%p3331_p7), %s535_s12, 4294967264  ;;  %p3783_p6 = scmp.eq.s32.totalorder %s3168_s24, 0 }
  0xba   : > { %3014 = dma.done.wait (%p3783_p6), [#allocation6], 512   ;;  %p3784_p10 = pmov %p3783_p6 }
  0xbb   : > { %p3785_p11 = pmov %p3783_p6 }
  0xbc   : > { %3016 = vsyncadd (%p3784_p10), [#allocation6], 4294966784 }
  0xbd   : > { %3018 = dma.done.wait (%p3785_p11), [#allocation9], 32   ;;  %p3786_p0 = pmov %p3783_p6 }
  0xbf   : > { %3020 = vsyncadd (%p3786_p0), [#allocation9], 4294967264  ;;  %p3787_p5 = pmov %p3786_p0 }
  0xc0   : > { %p3788_p9 = pmov %p3786_p0 }
  0xc1   : > { %3022 = dma.done.wait (%p3787_p5), [#allocation12], 256  }
  0xc2   : > { %3024 = vsyncadd (%p3788_p9), [#allocation12], 4294967040  ;;  %s2332_s25 = sshll.u32 %s3168_s24, 1  ;;  %v3055_v0 = vmov 0.0   ;;  %vm3056_vm0 = vmmov 0   ;;  %v2737_v1 = vld [vmem:[#allocation5] sm:$0xff]  }
  0xc3   : > { %2457 = vmatprep.subr.bf16.mxu1 %v3055_v0  ;;  %2461 = vmatprep.mubr.msk.bf16.mxu1 %vm3056_vm0, %v3055_v0  ;;  %p617_p7 = scmp.lt.s32.totalorder %s2332_s25, 3  ;;  %v2738_v2 = vld [vmem:[#allocation5 + $0x8] sm:$0xff]   ;;  %v2739_v5 = vld [vmem:[%s3749_s5] sm:$0xff]   ;;  %vm662_vm1 = vcmask 261120   ;;  %vm758_vm2 = vcmask 523264   ;;  %v2742_v10 = vld [vmem:[%s3749_s5 + $0x18] sm:$0xff]  }
  0xc4   : > { %2483 = vmatprep.subr.bf16.mxu0 %v3055_v0  ;;  %2485 = vmatprep.mubr.msk.bf16.mxu0 %vm3056_vm0, %v3055_v0  ;;  %v2740_v7 = vld [vmem:[%s3749_s5 + $0x8] sm:$0xff]   ;;  %v2741_v9 = vld [vmem:[%s3749_s5 + $0x10] sm:$0xff]   ;;  %s3789_s16 = sld [smem:[#allocation21_spill]]  ;;  %vm832_vm3 = vcmask 64512   ;;  %s3057_s27 = smov 96   ;;  %vm925_vm4 = vcmask 130048  }
  0xc5   : > { %s3804_s25 = smov (!%p617_p7, %s2332_s25), 3  ;;  %2458 = vmatpush3.bf16.msra.mxu1 %v2737_v1  ;;  %s3058_s12 = smov 120   ;;  %v3480_v37 = vld [vmem:[%s3392_s30] ss:$0 sm:$0xff]  ;;  %v3483_v39 = vld [vmem:[%s3392_s30 + $0x1] ss:$0 sm:$0xff] }
  0xc6   : > { %s2333_s22 = sshll.u32 %s3804_s25, 3  ;;  %2459 = vmatprep.subr.bf16.mxu1 %v3055_v0  ;;  %s3059_s30 = smov 88   ;;  %vm1269_vm5 = vcmask 1043456  }
  0xc7   : > { %s620_s4 = scalar_lea.vmem %s3744_s0, %s2333_s22  ;;  %s627_s14 = scalar_lea.vmem %s3745_s1, %s2333_s22 }
  0xc8   : > { %v3420_v3 = vld [vmem:[%s620_s4] sm:$0xff]  ;;  %v3422_v4 = vld [vmem:[%s620_s4 + $0x8] sm:$0xff]  ;;  %s3060_s25 = smov 112   ;;  %s3061_s10 = smov 80  }
  0xc9   : > { %v638_v6 = vpack.c.bf16 %v3422_v4, %v3420_v3  ;;  %2460 = vmatpush3.bf16.msra.mxu1 %v2738_v2  ;;  %v2743_v8 = vld [vmem:[%s627_s14] sm:$0xff]   ;;  %v2744_v11 = vld [vmem:[%s627_s14 + $0x8] sm:$0xff]   ;;  %s3790_s14 = sld [smem:[#allocation20_spill]]  ;;  %s3062_s22 = smov 104  }
  0xca   : > { %2465 = vmatprep.subr.bf16.mxu1 %v2739_v5  ;;  %v2341_v17 = vld [vmem:[%s3789_s16] ss:$0 sm:$0xff]  ;;  %s3063_s13 = smov 72   ;;  %s3791_s16 = sld [smem:[#allocation22_spill]] }
  0xcb   : > { %s3794_s28 = sld [smem:[#allocation25_spill]]  ;;  %p3796_p12 = scmp.ne.s32.totalorder %s3779_s15, 0 }
  0xcc   : > { %2462 = vmatmul.mubr.msk.bf16.vlgmr.msra.gmra.mrb[0].mxu1 %vm662_vm1, %v638_v6 }
  0xcd   : > { %2466 = vmatpush3.bf16.msra.mxu1 %v2739_v5  ;;  %2473 = vmatprep.mubr.msk.bf16.mxu1 %vm758_vm2, %v2743_v8 }
  0xce   : > { %2467 = vmatprep.subr.bf16.mxu1 %v2740_v7 }
  0xcf   : > { %v2337_v19 = vld [vmem:[%s3790_s14] ss:$0 sm:$0xff]  ;;  %s3792_s14 = sld [smem:[#allocation24_spill]] }
  0xd1   : > { %2468 = vmatpush3.bf16.msra.mxu1 %v2740_v7 }
  0xd2   : > { %2469 = vmatprep.subr.bf16.mxu1 %v2741_v9 }
  0xd5   : > { %2470 = vmatpush3.bf16.msra.mxu1 %v2741_v9 }
  0xd6   : > { %2471 = vmatprep.subr.bf16.mxu1 %v2742_v10 }
  0xd9   : > { %2472 = vmatpush3.bf16.msra.mxu1 %v2742_v10 }
  0xda   : > { %2477 = vmatprep.subr.bf16.mxu1 %v3055_v0 }
  0xdc   : > { %2474 = vmatmul.mubr.msk.bf16.vlgmr.msra.gmra.mrb[4].mxu1 %vm758_vm2, %v2744_v11 }
  0xdd   : > { %2479 = vmatprep.mubr.msk.bf16.mxu1 %vm3056_vm0, %v3055_v0 }
 0x19f   : > { %v700_v12 = vpop.f32.mrb[0].mxu1 }
 0x1a0   : > { %v2463_v13 = vpop.f32.mrb[1].mxu1  ;;  %v701_v28 = vadd.f32 %v2337_v19, %v700_v12 }
 0x1a1   : > { %v703_v14 = vpop.f32.mrb[2].mxu1 }
 0x1a2   : > { %v2464_v15 = vpop.f32.mrb[3].mxu1  ;;  %v704_v26 = vadd.f32 %v2337_v19, %v703_v14  ;;  %v707_v33 = vmul.f32 0.35355338, %v701_v28 }
 0x1a4   : > { %v708_v32 = vmul.f32 0.35355338, %v704_v26  ;;  %v3468_v35 = vpack.c.bf16 %v707_v33, %v707_v33 }
 0x1a6   : > { %v3466_v34 = vpack.c.bf16 %v708_v32, %v708_v32 }
 0x1af   : > { %v2475_v16 = vpop.f32.mrb[4].mxu1 }
 0x1b0   : > { %v799_v18 = vpop.f32.mrb[5].mxu1  ;;  %v808_v21 = vadd.f32 %v2475_v16, %v2341_v17 }
 0x1b1   : > { %v2476_v20 = vpop.f32.mrb[6].mxu1  ;;  %v800_v24 = vadd.f32 %v2341_v17, %v799_v18 }
 0x1b2   : > { %v811_v22 = vadd.f32 %v2476_v20, %v2341_v17  ;;  %v802_v23 = vpop.f32.mrb[7].mxu1 }
 0x1b3   : > { %v803_v25 = vadd.f32 %v2341_v17, %v802_v23 }
 0x1b4   : > { %v3452_v27 = vpack.c.bf16 %v811_v22, %v808_v21 }
 0x1b5   : > { %v3454_v29 = vpack.c.bf16 %v803_v25, %v800_v24 }
 0x1b6   : > { %998 = vrot.lane.b32.xlu1 %v3452_v27, %s3057_s27  ;;  %v883_v30 = vsel %vm832_vm3, %v3452_v27, 0 }
 0x1b7   : > { %2484 = vmatpush3.bf16.xpose.msra.mxu0 %v883_v30  ;;  %v837_v31 = vsel %vm832_vm3, %v3454_v29, 0 }
 0x1b8   : > { %2478 = vmatpush3.bf16.xpose.msra.mxu1 %v837_v31  ;;  %2495 = vmatprep.subr.bf16.mxu0 %v3055_v0 }
 0x1b9   : > { %2489 = vmatprep.subr.bf16.mxu1 %v3055_v0 }
 0x1ba   : > { %1049 = vrot.lane.b32.xlu1 %v3454_v29, %s3058_s12 }
 0x1be   : > { %2486 = vmatmul.mubr.msk.bf16.vlgmr.msra.gmra.mrb[0].mxu0 %vm832_vm3, %v3466_v34 }
 0x1bf   : > { %2480 = vmatmul.mubr.msk.bf16.vlgmr.msra.gmra.mrb[8].mxu1 %vm832_vm3, %v3468_v35  ;;  %2497 = vmatprep.mubr.msk.bf16.mxu0 %vm3056_vm0, %v3055_v0 }
 0x1c0   : > { %2491 = vmatprep.mubr.msk.bf16.mxu1 %vm3056_vm0, %v3055_v0 }
 0x228   : > { %v999_v36 = vpop.permute.xlu1 %998 }
 0x229   : > { %2496 = vmatpush3.bf16.msra.mxu0 %v999_v36 }
 0x22a   : > { %2507 = vmatprep.subr.bf16.mxu0 %v3055_v0 }
 0x22c   : > { %v1050_v62 = vpop.permute.xlu1 %1049 }
 0x22d   : > { %v1055_v12 = vsel %vm832_vm3, %v1050_v62, 0  ;;  %v1265_v62 = vld [vmem:[#allocation7 + $0x4] sm:$0xf] }
 0x291   : > { %v919_v38 = vpop.f32.mrb[0].mxu0 }
 0x292   : > { %v873_v40 = vpop.f32.mrb[8].mxu1  ;;  %v2487_v41 = vpop.f32.mrb[1].mxu0  ;;  %v920_v47 = vadd.f32 %v3483_v39, %v919_v38 }
 0x293   : > { %v874_v42 = vadd.f32 %v3480_v37, %v873_v40  ;;  %v2481_v43 = vpop.f32.mrb[9].mxu1  ;;  %v922_v44 = vpop.f32.mrb[2].mxu0 }
 0x294   : > { %v876_v45 = vpop.f32.mrb[10].mxu1  ;;  %v2488_v46 = vpop.f32.mrb[3].mxu0  ;;  %v929_v50 = vsel %vm925_vm4, %v920_v47, -inf }
 0x295   : > { %v2482_v48 = vpop.f32.mrb[11].mxu1  ;;  %v926_v49 = vsel %vm925_vm4, %v874_v42, -inf }
 0x296   : > { %927 = vmax.xlane.f32.xlu0 %v926_v49 }
 0x29a   : > { %930 = vmax.xlane.f32.xlu0 %v929_v50 }
 0x2b0   : > { %951 = vrot.lane.b32.xlu0 %v3454_v29, %s3057_s27 }
 0x2b4   : > { %1047 = vrot.lane.b32.xlu0 %v3468_v35, %s3058_s12 }
 0x323   : > { %v928_v51 = vpop.xlane.xlu0 %927 }
 0x324   : > { %v932_v52 = vsub.f32 %v874_v42, %v928_v51 }
 0x326   : > { %v934_v55 = vmul.f32 1.442695, %v932_v52 }
 0x327   : > { %v931_v53 = vpop.xlane.xlu0 %930 }
 0x328   : > { %v933_v54 = vsub.f32 %v920_v47, %v931_v53 }
 0x32a   : > { %v936_v56 = vmul.f32 1.442695, %v933_v54 }
 0x32b   : > { %v952_v57 = vpop.permute.xlu0 %951 }
 0x32c   : > { %2755 = vpow2.f32 %v936_v56  ;;  %2490 = vmatpush3.bf16.msra.mxu1 %v952_v57  ;;  %v1045_v57 = vld [vmem:[#allocation7] sm:$0xf] }
 0x32d   : > { %2501 = vmatprep.subr.bf16.mxu1 %v3055_v0  ;;  %2757 = vpow2.f32 %v934_v55 }
 0x32f   : > { %v1048_v14 = vpop.permute.xlu0 %1047 }
 0x336   : > { %v2756_v58 = vpop.eup %2755 }
 0x337   : > { %v941_v59 = vsel %vm925_vm4, %v2756_v58, 0.0  ;;  %v2758_v60 = vpop.eup %2757 }
 0x338   : > { %942 = vadd.xlane.f32.xlu1 %v941_v59  ;;  %v938_v61 = vsel %vm925_vm4, %v2758_v60, 0.0 }
 0x33c   : > { %939 = vadd.xlane.f32.xlu1 %v938_v61 }
 0x34d   : > { %1100 = vrot.lane.b32.xlu1 %v3452_v27, %s3058_s12 }
 0x351   : > { %1098 = vrot.lane.b32.xlu1 %v3466_v34, %s3058_s12 }
 0x3c5   : > { %v943_v63 = vpop.xlane.xlu1 %942 }
 0x3c6   : > { %2759 = vrcp.f32 %v943_v63 }
 0x3c9   : > { %v940_v1 = vpop.xlane.xlu1 %939 }
 0x3ca   : > { %2761 = vrcp.f32 %v940_v1 }
 0x3cd   : > { %v1101_v6 = vpop.permute.xlu1 %1100 }
 0x3ce   : > { %v1106_v10 = vsel %vm832_vm3, %v1101_v6, 0 }
 0x3d0   : > { %v2760_v2 = vpop.eup %2759 }
 0x3d1   : > { %v947_v5 = vmul.f32 %v2760_v2, %v2756_v58  ;;  %v1099_v13 = vpop.permute.xlu1 %1098 }
 0x3d3   : > { %v949_v7 = vpack.c.bf16 %v947_v5, %v947_v5  ;;  %v1271_v5 = vsel %vm1269_vm5, %v1265_v62, 0 }
 0x3d4   : > { %v2762_v8 = vpop.eup %2761 }
 0x3d5   : > { %v946_v9 = vmul.f32 %v2762_v8, %v2758_v60  ;;  %2498 = vmatmul.mubr.msk.bf16.vlgmr.msra.gmra.mrb[4].mxu0 %vm925_vm4, %v949_v7  ;;  %v1318_v60 = vsel %vm1269_vm5, %v1045_v57, 0 }
 0x3d6   : > { %2508 = vmatpush3.bf16.xpose.msra.mxu0 %v1106_v10  ;;  %2509 = vmatprep.mubr.msk.bf16.mxu0 %vm3056_vm0, %v3055_v0 }
 0x3d7   : > { %v948_v11 = vpack.c.bf16 %v946_v9, %v946_v9  ;;  %2519 = vmatprep.subr.bf16.mxu0 %v3055_v0 }
 0x3d9   : > { %2492 = vmatmul.mubr.msk.bf16.vlgmr.msra.gmra.mrb[12].mxu1 %vm925_vm4, %v948_v11 }
 0x3da   : > { %2502 = vmatpush3.bf16.xpose.msra.mxu1 %v1055_v12  ;;  %2503 = vmatprep.mubr.msk.bf16.mxu1 %vm3056_vm0, %v3055_v0 }
 0x3db   : > { %2513 = vmatprep.subr.bf16.mxu1 %v3055_v0 }
 0x3dd   : > { %2510 = vmatmul.mubr.msk.bf16.vlgmr.msra.gmra.mrb[8].mxu0 %vm832_vm3, %v1099_v13 }
 0x3de   : > { %2521 = vmatprep.mubr.msk.bf16.mxu0 %vm3056_vm0, %v3055_v0 }
 0x3e1   : > { %2504 = vmatmul.mubr.msk.bf16.vlgmr.msra.gmra.mrb[16].mxu1 %vm832_vm3, %v1048_v14 }
 0x3e2   : > { %2515 = vmatprep.mubr.msk.bf16.mxu1 %vm3056_vm0, %v3055_v0 }
 0x4a8   : > { %v3516_v15 = vpop.f32.mrb[4].mxu0 }
 0x4a9   : > { %v2499_v16 = vpop.f32.mrb[5].mxu0 }
 0x4aa   : > { %v1041_v17 = vpop.f32.mrb[6].mxu0 }
 0x4ab   : > { %v2500_v18 = vpop.f32.mrb[7].mxu0 }
 0x4ac   : > { %v3518_v19 = vpop.f32.mrb[12].mxu1 }
 0x4ad   : > { %v1044_v20 = vpack.c.bf16 %v3516_v15, %v3518_v19  ;;  %v2493_v21 = vpop.f32.mrb[13].mxu1 }
 0x4ae   : > { %v994_v22 = vpop.f32.mrb[14].mxu1 }
 0x4af   : > { %v2494_v23 = vpop.f32.mrb[15].mxu1 }
 0x4b0   : > { %v1142_v24 = vpop.f32.mrb[8].mxu0 }
 0x4b1   : > { %v1143_v25 = vadd.f32 %v3483_v39, %v1142_v24  ;;  %v2511_v26 = vpop.f32.mrb[9].mxu0 }
 0x4b2   : > { %v1145_v28 = vpop.f32.mrb[10].mxu0 }
 0x4b3   : > { %v2512_v30 = vpop.f32.mrb[11].mxu0  ;;  %v1151_v31 = vsel %vm925_vm4, %v1143_v25, -inf }
 0x4b4   : > { %1152 = vmax.xlane.f32.xlu1 %v1151_v31  ;;  %v1091_v32 = vpop.f32.mrb[16].mxu1 }
 0x4b5   : > { %v1092_v33 = vadd.f32 %v3480_v37, %v1091_v32  ;;  %v2505_v36 = vpop.f32.mrb[17].mxu1 }
 0x4b6   : > { %v1094_v38 = vpop.f32.mrb[18].mxu1 }
 0x4b7   : > { %v2506_v40 = vpop.f32.mrb[19].mxu1  ;;  %v1148_v41 = vsel %vm925_vm4, %v1092_v33, -inf }
 0x4b8   : > { %1149 = vmax.xlane.f32.xlu0 %v1148_v41 }
 0x4c5   : > { %1218 = vrot.lane.b32.xlu1 %v3452_v27, %s3059_s30 }
 0x4c9   : > { %1363 = vrot.lane.b32.xlu1 %v3454_v29, %s3060_s25 }
 0x4cd   : > { %1413 = vrot.lane.b32.xlu1 %v3452_v27, %s3060_s25 }
 0x4d1   : > { %1411 = vrot.lane.b32.xlu1 %v3466_v34, %s3060_s25 }
 0x541   : > { %v1153_v42 = vpop.xlane.xlu1 %1152 }
 0x542   : > { %v1155_v43 = vsub.f32 %v1143_v25, %v1153_v42 }
 0x544   : > { %v1158_v44 = vmul.f32 1.442695, %v1155_v43 }
 0x545   : > { %v1219_v45 = vpop.permute.xlu1 %1218  ;;  %v1150_v46 = vpop.xlane.xlu0 %1149 }
 0x546   : > { %2763 = vpow2.f32 %v1158_v44  ;;  %v1154_v47 = vsub.f32 %v1092_v33, %v1150_v46  ;;  %2520 = vmatpush3.bf16.msra.mxu0 %v1219_v45 }
 0x547   : > { %2531 = vmatprep.subr.bf16.mxu0 %v3055_v0 }
 0x548   : > { %v1156_v48 = vmul.f32 1.442695, %v1154_v47 }
 0x549   : > { %v1364_v63 = vpop.permute.xlu1 %1363 }
 0x54a   : > { %2765 = vpow2.f32 %v1156_v48  ;;  %v1369_v17 = vsel %vm832_vm3, %v1364_v63, 0 }
 0x54d   : > { %v1414_v6 = vpop.permute.xlu1 %1413 }
 0x54e   : > { %v1419_v7 = vsel %vm832_vm3, %v1414_v6, 0 }
 0x550   : > { %v2764_v49 = vpop.eup %2763 }
 0x551   : > { %v1163_v50 = vsel %vm925_vm4, %v2764_v49, 0.0  ;;  %v1412_v8 = vpop.permute.xlu1 %1411 }
 0x552   : > { %1164 = vadd.xlane.f32.xlu0 %v1163_v50 }
 0x554   : > { %v2766_v51 = vpop.eup %2765 }
 0x555   : > { %v1160_v52 = vsel %vm925_vm4, %v2766_v51, 0.0 }
 0x556   : > { %1161 = vadd.xlane.f32.xlu0 %v1160_v52 }
 0x56c   : > { %1172 = vrot.lane.b32.xlu0 %v3454_v29, %s3059_s30  ;;  %s3795_s30 = sld [smem:[#allocation26_spill]] }
 0x570   : > { %1361 = vrot.lane.b32.xlu0 %v3468_v35, %s3060_s25 }
 0x5df   : > { %v1165_v53 = vpop.xlane.xlu0 %1164 }
 0x5e0   : > { %2767 = vrcp.f32 %v1165_v53 }
 0x5e3   : > { %v1162_v54 = vpop.xlane.xlu0 %1161 }
 0x5e4   : > { %2769 = vrcp.f32 %v1162_v54 }
 0x5e7   : > { %v1173_v55 = vpop.permute.xlu0 %1172 }
 0x5e8   : > { %2514 = vmatpush3.bf16.msra.mxu1 %v1173_v55 }
 0x5e9   : > { %2525 = vmatprep.subr.bf16.mxu1 %v3055_v0 }
 0x5ea   : > { %v2768_v56 = vpop.eup %2767 }
 0x5eb   : > { %v1169_v58 = vmul.f32 %v2768_v56, %v2764_v49  ;;  %v1362_v23 = vpop.permute.xlu0 %1361 }
 0x5ed   : > { %v1171_v59 = vpack.c.bf16 %v1169_v58, %v1169_v58 }
 0x5ee   : > { %v2770_v61 = vpop.eup %2769 }
 0x5ef   : > { %v1168_v1 = vmul.f32 %v2770_v61, %v2766_v51  ;;  %2522 = vmatmul.mubr.msk.bf16.vlgmr.msra.gmra.mrb[12].mxu0 %vm925_vm4, %v1171_v59 }
 0x5f0   : > { %2532 = vmatpush3.bf16.msra.mxu0 %v1318_v60  ;;  %2533 = vmatprep.mubr.msk.bf16.mxu0 %vm3056_vm0, %v3055_v0 }
 0x5f1   : > { %v1170_v2 = vpack.c.bf16 %v1168_v1, %v1168_v1  ;;  %2543 = vmatprep.subr.bf16.mxu0 %v3055_v0 }
 0x5f3   : > { %2516 = vmatmul.mubr.msk.bf16.vlgmr.msra.gmra.mrb[20].mxu1 %vm925_vm4, %v1170_v2 }
 0x5f4   : > { %2526 = vmatpush3.bf16.msra.mxu1 %v1271_v5  ;;  %2527 = vmatprep.mubr.msk.bf16.mxu1 %vm3056_vm0, %v3055_v0 }
 0x5f5   : > { %2537 = vmatprep.subr.bf16.mxu1 %v3055_v0 }
 0x5f7   : > { %2534 = vmatmul.mubr.msk.bf16.vlgmr.msra.gmra.mrb[16].mxu0 %vm832_vm3, %v1044_v20 }
 0x5f8   : > { %2545 = vmatprep.mubr.msk.bf16.mxu0 %vm3056_vm0, %v3055_v0 }
 0x5f9   : > { %2544 = vmatpush3.bf16.xpose.msra.mxu0 %v1419_v7 }
 0x5fa   : > { %2555 = vmatprep.subr.bf16.mxu0 %v3055_v0 }
 0x600   : > { %2546 = vmatmul.mubr.msk.bf16.vlgmr.msra.gmra.mrb[20].mxu0 %vm832_vm3, %v1412_v8 }
 0x601   : > { %2557 = vmatprep.mubr.msk.bf16.mxu0 %vm3056_vm0, %v3055_v0 }
 0x6c2   : > { %v1258_v9 = vpop.f32.mrb[12].mxu0 }
 0x6c3   : > { %v2523_v10 = vpop.f32.mrb[13].mxu0 }
 0x6c4   : > { %v1261_v11 = vpop.f32.mrb[14].mxu0 }
 0x6c5   : > { %v2524_v12 = vpop.f32.mrb[15].mxu0 }
 0x6c6   : > { %v1212_v13 = vpop.f32.mrb[20].mxu1  ;;  %v1578_v12 = vld [vmem:[#allocation7 + $0x8] sm:$0xf] }
 0x6c7   : > { %v1264_v14 = vpack.c.bf16 %v1258_v9, %v1212_v13  ;;  %v2517_v15 = vpop.f32.mrb[21].mxu1  ;;  %v1583_v13 = vsel %vm1269_vm5, %v1578_v12, 0 }
 0x6c8   : > { %v1215_v16 = vpop.f32.mrb[22].mxu1 }
 0x6c9   : > { %v2518_v18 = vpop.f32.mrb[23].mxu1  ;;  %2528 = vmatmul.mubr.msk.bf16.vlgmr.msra.gmra.mrb[24].mxu1 %vm832_vm3, %v1264_v14 }
 0x6ca   : > { %2538 = vmatpush3.bf16.xpose.msra.mxu1 %v1369_v17  ;;  %v1354_v19 = vpop.f32.mrb[16].mxu0  ;;  %2539 = vmatprep.mubr.msk.bf16.mxu1 %vm3056_vm0, %v3055_v0 }
 0x6cb   : > { %v2535_v20 = vpop.f32.mrb[17].mxu0  ;;  %2549 = vmatprep.subr.bf16.mxu1 %v3055_v0 }
 0x6cc   : > { %v1357_v21 = vpop.f32.mrb[18].mxu0 }
 0x6cd   : > { %v2536_v22 = vpop.f32.mrb[19].mxu0 }
 0x6d1   : > { %2540 = vmatmul.mubr.msk.bf16.vlgmr.msra.gmra.mrb[28].mxu1 %vm832_vm3, %v1362_v23 }
 0x6d2   : > { %2551 = vmatprep.mubr.msk.bf16.mxu1 %vm3056_vm0, %v3055_v0 }
 0x6d3   : > { %v1455_v24 = vpop.f32.mrb[20].mxu0 }
 0x6d4   : > { %v1456_v25 = vadd.f32 %v3483_v39, %v1455_v24  ;;  %v2547_v26 = vpop.f32.mrb[21].mxu0 }
 0x6d5   : > { %v1458_v28 = vpop.f32.mrb[22].mxu0 }
 0x6d6   : > { %v2548_v30 = vpop.f32.mrb[23].mxu0  ;;  %v1464_v31 = vsel %vm925_vm4, %v1456_v25, -inf }
 0x6d7   : > { %1465 = vmax.xlane.f32.xlu1 %v1464_v31 }
 0x6e8   : > { %1531 = vrot.lane.b32.xlu1 %v3452_v27, %s3061_s10 }
 0x6ec   : > { %1630 = vrot.lane.b32.xlu1 %v3454_v29, %s3062_s22 }
 0x6f0   : > { %1680 = vrot.lane.b32.xlu1 %v3452_v27, %s3062_s22 }
 0x6f4   : > { %1678 = vrot.lane.b32.xlu1 %v3466_v34, %s3062_s22 }
 0x764   : > { %v1466_v32 = vpop.xlane.xlu1 %1465 }
 0x765   : > { %v1468_v36 = vsub.f32 %v1456_v25, %v1466_v32 }
 0x767   : > { %v1471_v38 = vmul.f32 1.442695, %v1468_v36 }
 0x768   : > { %v1532_v33 = vpop.permute.xlu1 %1531 }
 0x769   : > { %2556 = vmatpush3.bf16.msra.mxu0 %v1532_v33  ;;  %2771 = vpow2.f32 %v1471_v38 }
 0x76a   : > { %2567 = vmatprep.subr.bf16.mxu0 %v3055_v0 }
 0x76c   : > { %v1631_v61 = vpop.permute.xlu1 %1630 }
 0x76d   : > { %v1636_v63 = vsel %vm832_vm3, %v1631_v61, 0 }
 0x770   : > { %v1681_v20 = vpop.permute.xlu1 %1680 }
 0x771   : > { %v1686_v25 = vsel %vm832_vm3, %v1681_v20, 0 }
 0x773   : > { %v2772_v51 = vpop.eup %2771 }
 0x774   : > { %v1476_v52 = vsel %vm925_vm4, %v2772_v51, 0.0 }
 0x79c   : > { %v1307_v40 = vpop.f32.mrb[24].mxu1 }
 0x79d   : > { %v3576_v41 = vadd.f32 %v1354_v19, %v1307_v40  ;;  %v2529_v42 = vpop.f32.mrb[25].mxu1 }
 0x79e   : > { %v1310_v43 = vpop.f32.mrb[26].mxu1 }
 0x79f   : > { %v3578_v44 = vadd.f32 %v1357_v21, %v1310_v43  ;;  %v2530_v45 = vpop.f32.mrb[27].mxu1 }
 0x7a4   : > { %v1405_v46 = vpop.f32.mrb[28].mxu1 }
 0x7a5   : > { %v1406_v47 = vadd.f32 %v3480_v37, %v1405_v46  ;;  %v2541_v34 = vpop.f32.mrb[29].mxu1 }
 0x7a6   : > { %v1408_v48 = vpop.f32.mrb[30].mxu1 }
 0x7a7   : > { %v2542_v49 = vpop.f32.mrb[31].mxu1  ;;  %v1461_v50 = vsel %vm925_vm4, %v1406_v47, -inf }
 0x7a8   : > { %1462 = vmax.xlane.f32.xlu0 %v1461_v50 }
 0x7ac   : > { %1477 = vadd.xlane.f32.xlu0 %v1476_v52 }
 0x835   : > { %v1463_v53 = vpop.xlane.xlu0 %1462 }
 0x836   : > { %v1467_v54 = vsub.f32 %v1406_v47, %v1463_v53 }
 0x838   : > { %v1469_v55 = vmul.f32 1.442695, %v1467_v54 }
 0x839   : > { %v1478_v56 = vpop.xlane.xlu0 %1477 }
 0x83a   : > { %2773 = vpow2.f32 %v1469_v55 }
 0x83b   : > { %2775 = vrcp.f32 %v1478_v56 }
 0x844   : > { %v2774_v57 = vpop.eup %2773 }
 0x845   : > { %v2776_v58 = vpop.eup %2775  ;;  %v1473_v59 = vsel %vm925_vm4, %v2774_v57, 0.0 }
 0x846   : > { %v1482_v60 = vmul.f32 %v2776_v58, %v2772_v51  ;;  %1474 = vadd.xlane.f32.xlu0 %v1473_v59 }
 0x848   : > { %v1484_v62 = vpack.c.bf16 %v1482_v60, %v1482_v60 }
 0x84a   : > { %2558 = vmatmul.mubr.msk.bf16.vlgmr.msra.gmra.mrb[24].mxu0 %vm925_vm4, %v1484_v62 }
 0x84b   : > { %2568 = vmatpush3.bf16.xpose.msra.mxu0 %v1636_v63  ;;  %2569 = vmatprep.mubr.msk.bf16.mxu0 %vm3056_vm0, %v3055_v0 }
 0x84c   : > { %2579 = vmatprep.subr.bf16.mxu0 %v3055_v0 }
 0x85c   : > { %1485 = vrot.lane.b32.xlu0 %v3454_v29, %s3061_s10  ;;  %s3793_s10 = sld [smem:[#allocation23_spill]] }
 0x860   : > { %1628 = vrot.lane.b32.xlu0 %v3468_v35, %s3062_s22  ;;  %s2331_s22 = sshll.u32 %s3388_s23, 4 }
 0x861   : > { %s615_s29 = scalar_lea.vmem [#allocation13], %s2331_s22  ;;  %s3064_s22 = smov [#allocation13]  }
 0x862   : > { %s2168_s6 = sshll.u32 %s615_s29, 4  ;;  %s3697_s6 = int_to_ptr.vmem [resolvable:$true] %s2168_s6 }
 0x8d3   : > { %v1475_v1 = vpop.xlane.xlu0 %1474 }
 0x8d4   : > { %2777 = vrcp.f32 %v1475_v1 }
 0x8d7   : > { %v1486_v2 = vpop.permute.xlu0 %1485 }
 0x8d8   : > { %2550 = vmatpush3.bf16.msra.mxu1 %v1486_v2 }
 0x8d9   : > { %2561 = vmatprep.subr.bf16.mxu1 %v3055_v0 }
 0x8db   : > { %v1629_v5 = vpop.permute.xlu0 %1628 }
 0x8dc   : > { %2570 = vmatmul.mubr.msk.bf16.vlgmr.msra.gmra.mrb[28].mxu0 %vm832_vm3, %v1629_v5 }
 0x8dd   : > { %2581 = vmatprep.mubr.msk.bf16.mxu0 %vm3056_vm0, %v3055_v0 }
 0x8de   : > { %v2778_v6 = vpop.eup %2777 }
 0x8df   : > { %v1481_v7 = vmul.f32 %v2778_v6, %v2774_v57 }
 0x8e1   : > { %v1483_v8 = vpack.c.bf16 %v1481_v7, %v1481_v7 }
 0x8e3   : > { %2552 = vmatmul.mubr.msk.bf16.vlgmr.msra.gmra.mrb[32].mxu1 %vm925_vm4, %v1483_v8 }
 0x8e4   : > { %2563 = vmatprep.mubr.msk.bf16.mxu1 %vm3056_vm0, %v3055_v0  ;;  %2562 = vmatpush3.bf16.msra.mxu1 %v1583_v13 }
 0x8e5   : > { %2573 = vmatprep.subr.bf16.mxu1 %v3055_v0 }
 0x91d   : > { %v1571_v35 = vpop.f32.mrb[24].mxu0 }
 0x91e   : > { %v2559_v9 = vpop.f32.mrb[25].mxu0 }
 0x91f   : > { %v1574_v10 = vpop.f32.mrb[26].mxu0 }
 0x920   : > { %v2560_v11 = vpop.f32.mrb[27].mxu0 }
 0x921   : > { %v2372_v11 = vld [vmem:[#allocation8] ss:$0 sm:$0xff] }
 0x9af   : > { %v1672_v14 = vpop.f32.mrb[28].mxu0 }
 0x9b0   : > { %v1673_v15 = vadd.f32 %v3480_v37, %v1672_v14  ;;  %v2571_v16 = vpop.f32.mrb[29].mxu0  ;;  %v1679_v37 = vpop.permute.xlu1 %1678 }
 0x9b1   : > { %v1675_v17 = vpop.f32.mrb[30].mxu0 }
 0x9b2   : > { %v2572_v18 = vpop.f32.mrb[31].mxu0  ;;  %v1728_v19 = vsel %vm925_vm4, %v1673_v15, -inf }
 0x9b3   : > { %1729 = vmax.xlane.f32.xlu0 %v1728_v19 }
 0x9b6   : > { %v1525_v21 = vpop.f32.mrb[32].mxu1 }
 0x9b7   : > { %v1577_v22 = vpack.c.bf16 %v1571_v35, %v1525_v21  ;;  %v2553_v23 = vpop.f32.mrb[33].mxu1 }
 0x9b8   : > { %v1528_v24 = vpop.f32.mrb[34].mxu1 }
 0x9b9   : > { %v2554_v26 = vpop.f32.mrb[35].mxu1  ;;  %2564 = vmatmul.mubr.msk.bf16.vlgmr.msra.gmra.mrb[36].mxu1 %vm832_vm3, %v1577_v22 }
 0x9ba   : > { %2574 = vmatpush3.bf16.xpose.msra.mxu1 %v1686_v25  ;;  %2575 = vmatprep.mubr.msk.bf16.mxu1 %vm3056_vm0, %v3055_v0 }
 0x9bb   : > { %2585 = vmatprep.subr.bf16.mxu1 %v3055_v0 }
 0x9c1   : > { %2576 = vmatmul.mubr.msk.bf16.vlgmr.msra.gmra.mrb[40].mxu1 %vm832_vm3, %v1679_v37 }
 0x9c2   : > { %2587 = vmatprep.mubr.msk.bf16.mxu1 %vm3056_vm0, %v3055_v0 }
 0xa40   : > { %v1730_v28 = vpop.xlane.xlu0 %1729 }
 0xa41   : > { %v1734_v30 = vsub.f32 %v1673_v15, %v1730_v28 }
 0xa43   : > { %v1736_v31 = vmul.f32 1.442695, %v1734_v30 }
 0xa45   : > { %2779 = vpow2.f32 %v1736_v31 }
 0xa4f   : > { %v2780_v32 = vpop.eup %2779 }
 0xa50   : > { %v1740_v33 = vsel %vm925_vm4, %v2780_v32, 0.0 }
 0xa51   : > { %1741 = vadd.xlane.f32.xlu0 %v1740_v33  ;;  %v2746_v33 = vld [vmem:[#allocation11 + $0x8] sm:$0xff]  }
 0xa8c   : > { %v1619_v36 = vpop.f32.mrb[36].mxu1 }
 0xa8d   : > { %v1626_v38 = vadd.f32 %v1619_v36, %v3576_v41  ;;  %v2565_v40 = vpop.f32.mrb[37].mxu1 }
 0xa8e   : > { %v1622_v42 = vpop.f32.mrb[38].mxu1 }
 0xa8f   : > { %v1627_v43 = vadd.f32 %v1622_v42, %v3578_v44  ;;  %v2566_v45 = vpop.f32.mrb[39].mxu1 }
 0xa94   : > { %v1722_v46 = vpop.f32.mrb[40].mxu1 }
 0xa95   : > { %v1723_v47 = vadd.f32 %v3483_v39, %v1722_v46  ;;  %v2577_v34 = vpop.f32.mrb[41].mxu1 }
 0xa96   : > { %v1725_v48 = vpop.f32.mrb[42].mxu1 }
 0xa97   : > { %v2578_v49 = vpop.f32.mrb[43].mxu1  ;;  %v1731_v50 = vsel %vm925_vm4, %v1723_v47, -inf }
 0xa98   : > { %1732 = vmax.xlane.f32.xlu1 %v1731_v50 }
 0xaa9   : > { %1798 = vrot.lane.b32.xlu1 %v3452_v27, %s3063_s13 }
 0xade   : > { %v1742_v54 = vpop.xlane.xlu0 %1741 }
 0xb25   : > { %v1733_v51 = vpop.xlane.xlu1 %1732 }
 0xb26   : > { %v1735_v52 = vsub.f32 %v1723_v47, %v1733_v51  ;;  %v2373_v47 = vld [vmem:[#allocation10] ss:$0 sm:$0xff]  ;;  %v2374_v51 = vld [vmem:[%s3791_s16] ss:$0 sm:$0xff]  ;;  %s2395_s16 = sshll.u32 %s3168_s24, 8  ;;  %s2155_s24 = scalar_lea.sflag [#allocation4], %s3388_s23 }
 0xb27   : > { %s3695_s25 = scalar_lea.hbm %s3795_s30, %s2395_s16 }
 0xb28   : > { %v1738_v41 = vmul.f32 1.442695, %v1735_v52 }
 0xb29   : > { %v1799_v53 = vpop.permute.xlu1 %1798 }
 0xb2a   : > { %2781 = vpow2.f32 %v1738_v41  ;;  %2586 = vmatpush3.bf16.msra.mxu1 %v1799_v53 }
 0xb2b   : > { %2597 = vmatprep.subr.bf16.mxu1 %v3055_v0  ;;  %2783 = vrcp.f32 %v1742_v54  ;;  %v2748_v54 = vld [vmem:[%s3792_s14 + $0x8] sm:$0xff]  }
 0xb34   : > { %v2782_v44 = vpop.eup %2781 }
 0xb35   : > { %v1743_v39 = vsel %vm925_vm4, %v2782_v44, 0.0  ;;  %v2784_v55 = vpop.eup %2783 }
 0xb36   : > { %1744 = vadd.xlane.f32.xlu0 %v1743_v39  ;;  %v1748_v27 = vmul.f32 %v2784_v55, %v2780_v32  ;;  %v2745_v32 = vld [vmem:[#allocation11] sm:$0xff]   ;;  %v2747_v39 = vld [vmem:[%s3792_s14] sm:$0xff]   ;;  %v2749_v55 = vld [vmem:[%s3792_s14 + $0x10] sm:$0xff]  }
 0xb38   : > { %v1750_v58 = vpack.c.bf16 %v1748_v27, %v1748_v27  ;;  %v2751_v27 = vld [vmem:[%s3792_s14 + $0x20] sm:$0xff]  }
 0xb4c   : > { %1752 = vrot.lane.b32.xlu0 %v3454_v29, %s3063_s13  ;;  %v1845_v29 = vld [vmem:[#allocation7 + $0xc] sm:$0xf]  ;;  %s2969_s13 = sshll.u32 %s3064_s22, 4  ;;  %s2970_s13 = int_to_ptr.vmem [resolvable:$false] %s2969_s13 }
 0xb4d   : > { %v1850_v62 = vsel %vm1269_vm5, %v1845_v29, 0  ;;  %s2971_s4 = scalar_lea.vmem %s2970_s13, 512  ;;  %p2972_p3 = scmp.lt.s32.totalorder %s3697_s6, %s2970_s13 }
 0xbc3   : > { %v1745_v56 = vpop.xlane.xlu0 %1744 }
 0xbc4   : > { %2785 = vrcp.f32 %v1745_v56  ;;  %v2750_v56 = vld [vmem:[%s3792_s14 + $0x18] sm:$0xff]  }
 0xbc7   : > { %v1753_v57 = vpop.permute.xlu0 %1752 }
 0xbc8   : > { %2580 = vmatpush3.bf16.msra.mxu0 %v1753_v57  ;;  %v2752_v57 = vld [vmem:[%s3792_s14 + $0x28] sm:$0xff]  }
 0xbc9   : > { %2591 = vmatprep.subr.bf16.mxu0 %v3055_v0 }
 0xbcb   : > { %2582 = vmatmul.mubr.msk.bf16.vlgmr.msra.gmra.mrb[32].mxu0 %vm925_vm4, %v1750_v58  ;;  %v2753_v58 = vld [vmem:[%s3792_s14 + $0x30] sm:$0xff]  }
 0xbcc   : > { %2593 = vmatprep.mubr.msk.bf16.mxu0 %vm3056_vm0, %v3055_v0  ;;  %2592 = vmatpush3.bf16.msra.mxu0 %v1850_v62 }
 0xbcd   : > { %2605 = vmatprep.subr.bf16.mxu0 %v3055_v0 }
 0xbce   : > { %v2786_v59 = vpop.eup %2785 }
 0xbcf   : > { %v1749_v60 = vmul.f32 %v2786_v59, %v2782_v44  ;;  %v2754_v59 = vld [vmem:[%s3792_s14 + $0x38] sm:$0xff]  }
 0xbd1   : > { %v1751_v61 = vpack.c.bf16 %v1749_v60, %v1749_v60  ;;  %v2375_v60 = vld [vmem:[%s3793_s10] ss:$0 sm:$0xff]  ;;  %s2965_s10 = scalar_lea.vmem %s3697_s6, 256 }
 0xbd2   : > { %p2966_p4 = scmp.ne.s32.totalorder %s3697_s6, %s2965_s10  ;;  %p2973_p2 = scmp.lt.s32.totalorder %s2971_s4, %s2965_s10 }
 0xbd3   : > { %2588 = vmatmul.mubr.msk.bf16.vlgmr.msra.gmra.mrb[44].mxu1 %vm925_vm4, %v1751_v61 }
 0xbd4   : > { %2601 = vmatprep.mubr.msk.bf16.mxu1 %vm3056_vm0, %v3055_v0  ;;  %2598 = vmatpush3.bf16.msra.mxu1 %v2745_v32  ;;  %p2967_p13 = pnand %p2966_p4, %p3796_p12  ;;  %p2974_p8 = por %p2973_p2, %p2972_p3 }
 0xbd5   : > { %2599 = vmatprep.subr.bf16.mxu1 %v3055_v0 }
 0xbd6   : > { %p2968_p1 = pneg %p2967_p13 }
 0xbd8   : > { %2600 = vmatpush3.bf16.msra.mxu1 %v2746_v33  ;;  %p2975_p6 = pnand %p2974_p8, %p2968_p1 }
 0xc9e   : > { %v1792_v63 = vpop.f32.mrb[32].mxu0 }
 0xc9f   : > { %v2583_v1 = vpop.f32.mrb[33].mxu0 }
 0xca0   : > { %v1795_v2 = vpop.f32.mrb[34].mxu0 }
 0xca1   : > { %v2584_v5 = vpop.f32.mrb[35].mxu0 }
 0xca6   : > { %v1838_v6 = vpop.f32.mrb[44].mxu1 }
 0xca7   : > { %v1844_v7 = vpack.c.bf16 %v1838_v6, %v1792_v63  ;;  %v2589_v8 = vpop.f32.mrb[45].mxu1 }
 0xca8   : > { %v1841_v35 = vpop.f32.mrb[46].mxu1 }
 0xca9   : > { %v2590_v9 = vpop.f32.mrb[47].mxu1  ;;  %2594 = vmatmul.mubr.msk.bf16.vlgmr.msra.gmra.mrb[36].mxu0 %vm832_vm3, %v1844_v7 }
 0xcaa   : > { %2621 = vmatprep.mubr.msk.bf16.mxu0 %vm3056_vm0, %v3055_v0  ;;  %2606 = vmatpush3.bf16.msra.mxu0 %v2747_v39 }
 0xcab   : > { %2607 = vmatprep.subr.bf16.mxu0 %v3055_v0 }
 0xcae   : > { %2608 = vmatpush3.bf16.msra.mxu0 %v2748_v54 }
 0xcaf   : > { %2609 = vmatprep.subr.bf16.mxu0 %v3055_v0 }
 0xcb2   : > { %2610 = vmatpush3.bf16.msra.mxu0 %v2749_v55 }
 0xcb3   : > { %2611 = vmatprep.subr.bf16.mxu0 %v3055_v0 }
 0xcb6   : > { %2612 = vmatpush3.bf16.msra.mxu0 %v2750_v56 }
 0xcb7   : > { %2613 = vmatprep.subr.bf16.mxu0 %v3055_v0 }
 0xcba   : > { %2614 = vmatpush3.bf16.msra.mxu0 %v2751_v27 }
 0xcbb   : > { %2615 = vmatprep.subr.bf16.mxu0 %v3055_v0 }
 0xcbe   : > { %2616 = vmatpush3.bf16.msra.mxu0 %v2752_v57 }
 0xcbf   : > { %2617 = vmatprep.subr.bf16.mxu0 %v3055_v0 }
 0xcc2   : > { %2618 = vmatpush3.bf16.msra.mxu0 %v2753_v58 }
 0xcc3   : > { %2619 = vmatprep.subr.bf16.mxu0 %v3055_v0 }
 0xcc6   : > { %2620 = vmatpush3.bf16.msra.mxu0 %v2754_v59 }
 0xd7c   : > { %v1886_v10 = vpop.f32.mrb[36].mxu0 }
 0xd7d   : > { %v1893_v12 = vadd.f32 %v1886_v10, %v1626_v38  ;;  %v2595_v13 = vpop.f32.mrb[37].mxu0 }
 0xd7e   : > { %v1889_v14 = vpop.f32.mrb[38].mxu0 }
 0xd7f   : > { %v1902_v15 = vadd.f32 %v2372_v11, %v1893_v12  ;;  %v1894_v16 = vadd.f32 %v1889_v14, %v1627_v43  ;;  %v2596_v17 = vpop.f32.mrb[39].mxu0 }
 0xd81   : > { %v3634_v18 = vadd.f32 %v1902_v15, %v3420_v3  ;;  %v1903_v19 = vadd.f32 %v2372_v11, %v1894_v16 }
 0xd83   : > { %v3637_v20 = vadd.f32 %v1903_v19, %v3422_v4  ;;  %v1906_v21 = vsel %vm662_vm1, %v3634_v18, 0.0 }
 0xd84   : > { %1907 = vadd.xlane.f32.xlu1 %v1906_v21 }
 0xd85   : > { %v1909_v22 = vsel %vm662_vm1, %v3637_v20, 0.0 }
 0xd86   : > { %1910 = vadd.xlane.f32.xlu0 %v1909_v22 }
 0xe11   : > { %v1908_v23 = vpop.xlane.xlu1 %1907 }
 0xe12   : > { %v1913_v24 = vmul.f32 0.03125, %v1908_v23 }
 0xe13   : > { %v1911_v25 = vpop.xlane.xlu0 %1910 }
 0xe14   : > { %v1915_v26 = vsub.f32 %v3634_v18, %v1913_v24  ;;  %v1914_v37 = vmul.f32 0.03125, %v1911_v25  ;;  %v2379_v24 = vld [vmem:[%s3794_s28] ss:$0 sm:$0xff] }
 0xe16   : > { %v1916_v3 = vsub.f32 %v3637_v20, %v1914_v37  ;;  %v1917_v28 = vmul.f32 %v1915_v26, %v1915_v26 }
 0xe18   : > { %v1919_v4 = vsel %vm662_vm1, %v1917_v28, 0.0  ;;  %v1918_v30 = vmul.f32 %v1916_v3, %v1916_v3 }
 0xe19   : > { %1920 = vadd.xlane.f32.xlu0 %v1919_v4 }
 0xe1a   : > { %v1922_v31 = vsel %vm662_vm1, %v1918_v30, 0.0 }
 0xe1b   : > { %1923 = vadd.xlane.f32.xlu1 %v1922_v31 }
 0xea6   : > { %v1921_v36 = vpop.xlane.xlu0 %1920 }
 0xea7   : > { %v1925_v38 = vmul.f32 0.03125, %v1921_v36 }
 0xea8   : > { %v1924_v40 = vpop.xlane.xlu1 %1923 }
 0xea9   : > { %v1927_v42 = vadd.f32 1e-05, %v1925_v38  ;;  %v1926_v43 = vmul.f32 0.03125, %v1924_v40 }
 0xeab   : > { %2787 = vrsqrt.f32 %v1927_v42  ;;  %v1928_v45 = vadd.f32 1e-05, %v1926_v43 }
 0xead   : > { %2789 = vrsqrt.f32 %v1928_v45 }
 0xeb5   : > { %v2788_v46 = vpop.eup %2787 }
 0xeb6   : > { %v1931_v34 = vmul.f32 %v2788_v46, %v1915_v26 }
 0xeb7   : > { %v2790_v48 = vpop.eup %2789 }
 0xeb8   : > { %v1940_v49 = vmul.f32 %v2373_v47, %v1931_v34  ;;  %v1932_v50 = vmul.f32 %v2790_v48, %v1916_v3 }
 0xeba   : > { %v1941_v52 = vmul.f32 %v2373_v47, %v1932_v50  ;;  %v1949_v41 = vadd.f32 %v2374_v51, %v1940_v49 }
 0xebc   : > { %v1950_v53 = vadd.f32 %v2374_v51, %v1941_v52 }
 0xebe   : > { %v1951_v44 = vpack.c.bf16 %v1950_v53, %v1949_v41 }
 0xec0   : > { %2602 = vmatmul.mubr.msk.bf16.vlgmr.msra.gmra.mrb[48].mxu1 %vm662_vm1, %v1951_v44 }
 0xf93   : > { %v2012_v61 = vpop.f32.mrb[48].mxu1 }
 0xf94   : > { %v2013_v29 = vadd.f32 %v2375_v60, %v2012_v61  ;;  %v2603_v62 = vpop.f32.mrb[49].mxu1 }
 0xf95   : > { %v2015_v63 = vpop.f32.mrb[50].mxu1 }
 0xf96   : > { %v2021_v1 = vmul.f32 0.044715, %v2013_v29  ;;  %v2016_v2 = vadd.f32 %v2375_v60, %v2015_v63  ;;  %v2604_v5 = vpop.f32.mrb[51].mxu1  ;;  %v2019_v16 = vmul.f32 0.5, %v2013_v29 }
 0xf98   : > { %v2023_v6 = vmul.f32 %v2021_v1, %v2013_v29  ;;  %v2022_v7 = vmul.f32 0.044715, %v2016_v2  ;;  %v2020_v17 = vmul.f32 0.5, %v2016_v2 }
 0xf9a   : > { %v2025_v8 = vmul.f32 %v2023_v6, %v2013_v29  ;;  %v2024_v35 = vmul.f32 %v2022_v7, %v2016_v2 }
 0xf9c   : > { %v2027_v9 = vadd.f32 %v2025_v8, %v2013_v29  ;;  %v2026_v10 = vmul.f32 %v2024_v35, %v2016_v2 }
 0xf9e   : > { %v2029_v0 = vmul.f32 0.7978846, %v2027_v9  ;;  %v2028_v11 = vadd.f32 %v2026_v10, %v2016_v2 }
 0xfa0   : > { %2791 = vtanh.f32 %v2029_v0  ;;  %v2030_v12 = vmul.f32 0.7978846, %v2028_v11 }
 0xfa2   : > { %2793 = vtanh.f32 %v2030_v12 }
 0xfaa   : > { %v2792_v13 = vpop.eup %2791 }
 0xfab   : > { %v2033_v14 = vadd.f32 1.0, %v2792_v13 }
 0xfac   : > { %v2794_v15 = vpop.eup %2793 }
 0xfad   : > { %v2034_v19 = vadd.f32 1.0, %v2794_v15  ;;  %v2035_v21 = vmul.f32 %v2033_v14, %v2019_v16 }
 0xfaf   : > { %v2036_v22 = vmul.f32 %v2034_v19, %v2020_v17 }
 0xfb1   : > { %v2037_v23 = vpack.c.bf16 %v2036_v22, %v2035_v21 }
 0xfb3   : > { %2622 = vmatmul.mubr.bf16.vlgmr.msra.gmra.mrb[40].mxu0 %v2037_v23 }
0x1086   : > { %v2143_v25 = vpop.f32.mrb[40].mxu0 }
0x1087   : > { %v2144_v26 = vadd.f32 %v2379_v24, %v2143_v25  ;;  %v2623_v37 = vpop.f32.mrb[41].mxu0 }
0x1088   : > { %v2146_v3 = vpop.f32.mrb[42].mxu0 }
0x1089   : > { %v2150_v28 = vadd.f32 %v2144_v26, %v3634_v18  ;;  %v2147_v4 = vadd.f32 %v2379_v24, %v2146_v3  ;;  %v2624_v30 = vpop.f32.mrb[43].mxu0 }
0x108b   : > { %2152 = vst.msk [vmem:[%s615_s29] sm:$0xff] %vm662_vm1, %v2150_v28  ;;  %v2151_v31 = vadd.f32 %v2147_v4, %v3637_v20 }
0x108d   : > { %2153 = vst.msk [vmem:[%s615_s29 + $0x8] sm:$0xff] %vm662_vm1, %v2151_v31 }
0x108e   : > { %2978 = shalt.err (!%p2975_p6)
}
0x108f   : > { %s2979_s28 = scalar_lea.hbm %s3695_s25, 256  ;;  %s2983_s27 = scalar_lea.hbm %s3795_s30, 512 }
0x1090   : > { %p2980_p10 = scmp.ne.s32.totalorder %s3695_s25, %s2979_s28  ;;  %p2984_p5 = scmp.lt.u32.totalorder %s3695_s25, %s3795_s30 }
0x1091   : > { %p2985_p9 = scmp.lt.u32.totalorder %s2983_s27, %s2979_s28  ;;  %p2987_p4 = scmp.lt.u32.totalorder %s2979_s28, %s3695_s25 }
0x1092   : > { %p2981_p11 = pnand %p2980_p10, %p3796_p12 }
0x1093   : > { %p2986_p7 = por %p2985_p9, %p2984_p5 }
0x1094   : > { %p2982_p0 = pneg %p2981_p11 }
0x1095   : > { %p2988_p13 = por %p2987_p4, %p2986_p7 }
0x1097   : > { %p2989_p1 = pnand %p2988_p13, %p2982_p0 }
0x1099   : > { %2992 = shalt.err (!%p2989_p1)
}
0x109a   : > { %s3065_s10 = smov 128   ;;  %s3066_s13 = smov 8  }
0x109b   : > { %2647 = dma.vmem_to_hbm [thread:$0]  (%p3796_p12), %s3697_s6, 256, %s3695_s25, %s2155_s24, %s3065_s10, %s3065_s10, %s3066_s13  }
0x109c PF: > { %s2183_s4 = sand.u32 1, %s3031_s18   ;;  %p3797_p3 = scmp.ne.s32.totalorder %s3780_s17, 0 }
0x109d   : > { %p3798_p2 = scmp.ge.s32.totalorder %s3043_s21, 2  ;;  %s2184_s28 = scalar_lea.sflag [#allocation4], %s2183_s4 }
0x109f   : > { %p2670_p8 = pnand %p3798_p2, %p3797_p3 }
0x10a1   : > { %3026 = dma.done.wait (!%p2670_p8), %s2184_s28, 256  }
0x10a2   : > { %3028 = vsyncadd (!%p2670_p8), %s2184_s28, 4294967040  ;;  %p31_p6 = scmp.ge.s32.totalorder %s3315_s26, 4   ;;  %s3799_s18 = smov %s3035_s19 }
0x10a3   : > { %s3800_s19 = smov %s3039_s20  ;;  %s3801_s20 = smov %s3327_s3 }
0x10a4   : > { %s3802_s21 = smov %s3315_s26  ;;  %33 = sbr.rel (!%p31_p6) target bundleno = 17 (0x11), region = 151 }
0x10ab   :  { %2189 = vsyncpa [#allocation3], 1 }
0x10ac   :  { %2191 = vsyncpa [#allocation3 + $0x1], 1 }
0x10ad   :  { %2192 = vsyncpa [#allocation6], 1 }
0x10ae   :  { %2193 = vsyncpa [#allocation9], 1 }
0x10af   :  { %2194 = vsyncpa [#allocation12], 1 }
0x10b0   :  { %2195 = vsyncpa [#allocation4], 1 }
0x10b1   :  { %2197 = vsyncpa [#allocation4 + $0x1], 1 }

// kernel: tpu_custom_call.1
= control target key start
LH: loop header
LB: loop body
LE: loop exit
PB: predicated region body
PF: predicated region fallthrough
CT: control target
= control target key end

     0   :  { %s3744_s0 = inlined_call_operand.vmem [shape: f32[4,8,32], index: 0, kind: input, shape index: {}]   ;;  %s3745_s1 = inlined_call_operand.vmem [shape: bf16[4,16,64], index: 1, kind: input, shape index: {}]   ;;  %s3746_s2 = inlined_call_operand.hbm [shape: f32[4,1,16], index: 2, kind: input, shape index: {}]   ;;  %s3747_s3 = inlined_call_operand.hbm [shape: bf16[32,32], index: 3, kind: input, shape index: {}]   ;;  %s3748_s4 = inlined_call_operand.vmem [shape: f32[1,32], index: 4, kind: input, shape index: {}]   ;;  %s3749_s5 = inlined_call_operand.vmem [shape: bf16[64,64], index: 5, kind: input, shape index: {}]   ;;  %s3750_s6 = inlined_call_operand.vmem [shape: f32[1,64], index: 6, kind: input, shape index: {}]   ;;  %s3751_s7 = inlined_call_operand.hbm [shape: bf16[32,32], index: 7, kind: input, shape index: {}]   ;;  %s3752_s8 = inlined_call_operand.hbm [shape: f32[1,32], index: 8, kind: input, shape index: {}]   ;;  %s3753_s9 = inlined_call_operand.hbm [shape: f32[1,32], index: 9, kind: input, shape index: {}]   ;;  %s3754_s10 = inlined_call_operand.vmem [shape: f32[1,32], index: 10, kind: input, shape index: {}]   ;;  %s3755_s11 = inlined_call_operand.hbm [shape: bf16[32,128], index: 11, kind: input, shape index: {}]   ;;  %s3756_s12 = inlined_call_operand.vmem [shape: f32[1,128], index: 12, kind: input, shape index: {}]   ;;  %s3757_s13 = inlined_call_operand.vmem [shape: bf16[128,32], index: 13, kind: input, shape index: {}]   ;;  %s3758_s14 = inlined_call_operand.vmem [shape: f32[1,32], index: 14, kind: input, shape index: {}]   ;;  %s3759_s15 = inlined_call_operand.hbm [shape: f32[4,8,32], index: 15, kind: output, shape index: {}]  }
   0x1   :  { %3765 = sst [smem:[#allocation19_spill]] %s3747_s3 }
   0x2   :  { %3766 = sst [smem:[#allocation20_spill]] %s3748_s4 }
   0x3   :  { %3767 = sst [smem:[#allocation21_spill]] %s3750_s6 }
   0x4   :  { %3768 = sst [smem:[#allocation22_spill]] %s3754_s10 }
   0x5   :  { %3769 = sst [smem:[#allocation23_spill]] %s3756_s12 }
   0x6   :  { %3770 = sst [smem:[#allocation24_spill]] %s3757_s13 }
   0x7   :  { %3771 = sst [smem:[#allocation25_spill]] %s3758_s14 }
   0x8   :  { %3772 = sst [smem:[#allocation26_spill]] %s3759_s15 }
   0x9   :  { %20 = vsyncpa [#allocation3], 0 }
   0xa   :  { %22 = vsyncpa [#allocation3 + $0x1], 0 }
   0xb   :  { %23 = vsyncpa [#allocation6], 0 }
   0xc   :  { %24 = vsyncpa [#allocation9], 0 }
   0xd   :  { %25 = vsyncpa [#allocation12], 0 }
   0xe   :  { %26 = vsyncpa [#allocation4], 0 }
   0xf   :  { %28 = vsyncpa [#allocation4 + $0x1], 0  ;;  %s3147_s18 = smov 0   ;;  %s3149_s19 = smov 0  }
  0x10   :  { %s3151_s20 = smov 0   ;;  %s3153_s21 = smov 0  }
  0x11 LB: > { %s3045_s22 = smov [#allocation5]   ;;  %s3168_s24 = sadd.s32 4294967295, %s3043_s21   ;;  %s3043_s21 = sphi %s3153_s21, %s3802_s21   ;;  %s3039_s20 = sphi %s3151_s20, %s3801_s20   ;;  %s3035_s19 = sphi %s3149_s19, %s3800_s19   ;;  %s3031_s18 = sphi %s3147_s18, %s3799_s18  }
  0x12   : > { %s407_s23 = sshll.u32 %s3045_s22, 4  ;;  %p2314_p0 = scmp.ge.s32.totalorder %s3043_s21, 1  ;;  %s3173_s23 = int_to_ptr.vmem [resolvable:$true] %s407_s23 }
  0x13   : > { %p3762_p1 = scmp.eq.s32.totalorder %s3168_s24, 0  ;;  %p395_p2 = scmp.lt.s32.totalorder %s3043_s21, 3 }
  0x14   : > { %s3046_s26 = smov [#allocation8]   ;;  %s3047_s29 = smov [#allocation7]  }
  0x15   : > { %p3175_p3 = pnand %p2314_p0, %p395_p2  ;;  %s443_s27 = sshll.u32 %s3046_s26, 4  ;;  %s3188_s27 = int_to_ptr.vmem [resolvable:$true] %s443_s27 }
  0x16   : > { %s429_s30 = sshll.u32 %s3047_s29, 4  ;;  %s3775_s3 = sld [smem:[#allocation19_spill]]  ;;  %s3190_s30 = int_to_ptr.vmem [resolvable:$true] %s429_s30 }
  0x17   : > { %s3773_s25 = scalar_select %p3175_p3, 1, 0 }
  0x18   : > { %p2649_p5 = pneg %p3175_p3 }
  0x1a   : > { %p3184_p6 = pnand %p2649_p5, %p3762_p1 }
  0x1c   : > { %s2795_s22 = scalar_lea.hbm %s3775_s3, 256  ;;  %p3200_p8 = pneg %p3184_p6 }
  0x1d   : > { %p2796_p7 = scmp.ne.s32.totalorder %s3775_s3, %s2795_s22  ;;  %p2802_p11 = scmp.lt.u32.totalorder %s2795_s22, %s3775_s3 }
  0x1f   : > { %p2798_p9 = pnand %p3200_p8, %p2796_p7 }
  0x21   : > { %p2799_p10 = pneg %p2798_p9 }
  0x23   : > { %p2804_p12 = pnand %p2802_p11, %p2799_p10 }
  0x25   : > { %2807 = shalt.err (!%p2804_p12)
}
  0x26   : > { %s2808_s14 = scalar_lea.vmem %s3173_s23, 256  ;;  %p2816_p5 = scmp.lt.s32.totalorder %s3173_s23, %s3173_s23 }
  0x27   : > { %p2809_p13 = scmp.ne.s32.totalorder %s3173_s23, %s2808_s14  ;;  %p2817_p4 = scmp.lt.s32.totalorder %s2808_s14, %s2808_s14 }
  0x29   : > { %p2811_p0 = pnand %p2809_p13, %p3200_p8  ;;  %p2818_p7 = por %p2817_p4, %p2816_p5 }
  0x2b   : > { %p2812_p2 = pneg %p2811_p0 }
  0x2d   : > { %p2819_p9 = pnand %p2818_p7, %p2812_p2 }
  0x2f   : > { %2822 = shalt.err (!%p2819_p9)
}
  0x30   : > { %s3048_s15 = smov 64   ;;  %s3049_s12 = smov 4  }
  0x31   : > { %2652 = dma.hbm_to_vmem [thread:$0]  (!%p3184_p6), %s3775_s3, 256, %s3173_s23, [#allocation6], %s3048_s15, %s3048_s15, %s3049_s12  }
  0x32   : > { %s2823_s14 = scalar_lea.hbm %s3752_s8, 16 }
  0x33   : > { %p2824_p4 = scmp.ne.s32.totalorder %s3752_s8, %s2823_s14  ;;  %p2830_p12 = scmp.lt.u32.totalorder %s2823_s14, %s3752_s8 }
  0x35   : > { %p2826_p10 = pnand %p2824_p4, %p3200_p8 }
  0x37   : > { %p2827_p11 = pneg %p2826_p10 }
  0x39   : > { %p2832_p13 = pnand %p2830_p12, %p2827_p11 }
  0x3b   : > { %2835 = shalt.err (!%p2832_p13)
}
  0x3c   : > { %s2836_s23 = scalar_lea.vmem %s3188_s27, 16  ;;  %s2843_s10 = scalar_lea.vmem %s3188_s27, 32 }
  0x3d   : > { %p2837_p0 = scmp.ne.s32.totalorder %s3188_s27, %s2836_s23  ;;  %p2844_p7 = scmp.lt.s32.totalorder %s3188_s27, %s3188_s27 }
  0x3e   : > { %p2845_p9 = scmp.lt.s32.totalorder %s2843_s10, %s2836_s23 }
  0x3f   : > { %p2839_p2 = pnand %p2837_p0, %p3200_p8 }
  0x40   : > { %p2846_p4 = por %p2845_p9, %p2844_p7 }
  0x41   : > { %p2840_p5 = pneg %p2839_p2 }
  0x43   : > { %p2847_p10 = pnand %p2846_p4, %p2840_p5 }
  0x45   : > { %2850 = shalt.err (!%p2847_p10)
}
  0x46   : > { %2658 = dma.hbm_to_vmem [thread:$0]  (!%p3184_p6), %s3752_s8, 16, %s3188_s27, [#allocation9]  }
  0x47   : > { %s2851_s17 = scalar_lea.hbm %s3751_s7, 256 }
  0x48   : > { %p2852_p11 = scmp.ne.s32.totalorder %s3751_s7, %s2851_s17  ;;  %p2858_p0 = scmp.lt.u32.totalorder %s2851_s17, %s3751_s7 }
  0x4a   : > { %p2854_p12 = pnand %p2852_p11, %p3200_p8 }
  0x4c   : > { %p2855_p13 = pneg %p2854_p12 }
  0x4e   : > { %p2860_p2 = pnand %p2858_p0, %p2855_p13 }
  0x50   : > { %2863 = shalt.err (!%p2860_p2)
}
  0x51   : > { %s2864_s27 = scalar_lea.vmem %s3190_s30, 256  ;;  %p2872_p4 = scmp.lt.s32.totalorder %s3190_s30, %s3190_s30 }
  0x52   : > { %p2865_p5 = scmp.ne.s32.totalorder %s3190_s30, %s2864_s27  ;;  %p2873_p10 = scmp.lt.s32.totalorder %s2864_s27, %s2864_s27 }
  0x54   : > { %p2867_p7 = pnand %p2865_p5, %p3200_p8  ;;  %p2874_p11 = por %p2873_p10, %p2872_p4 }
  0x56   : > { %p2868_p9 = pneg %p2867_p7 }
  0x58   : > { %p2875_p12 = pnand %p2874_p11, %p2868_p9 }
  0x5a   : > { %2878 = shalt.err (!%p2875_p12)
}
  0x5b   : > { %2655 = dma.hbm_to_vmem [thread:$0]  (!%p3184_p6), %s3751_s7, 256, %s3190_s30, [#allocation6], %s3048_s15, %s3048_s15, %s3049_s12  }
  0x5c   : > { %s3050_s6 = smov [#allocation10]   ;;  %s3051_s16 = smov [#allocation11]  }
  0x5d   : > { %s454_s13 = sshll.u32 %s3050_s6, 4  ;;  %s467_s17 = sshll.u32 %s3051_s16, 4  ;;  %s455_s13 = int_to_ptr.vmem [resolvable:$true] %s454_s13  ;;  %s468_s17 = int_to_ptr.vmem [resolvable:$true] %s467_s17 }
  0x5e   : > { %s2879_s14 = scalar_lea.hbm %s3753_s9, 16 }
  0x5f   : > { %p2880_p13 = scmp.ne.s32.totalorder %s3753_s9, %s2879_s14  ;;  %p2886_p5 = scmp.lt.u32.totalorder %s2879_s14, %s3753_s9 }
  0x61   : > { %p2882_p0 = pnand %p2880_p13, %p3200_p8 }
  0x63   : > { %p2883_p2 = pneg %p2882_p0 }
  0x65   : > { %p2888_p7 = pnand %p2886_p5, %p2883_p2 }
  0x67   : > { %2891 = shalt.err (!%p2888_p7)
}
  0x68   : > { %s2892_s30 = scalar_lea.vmem %s455_s13, 16  ;;  %s2899_s4 = scalar_lea.vmem %s455_s13, 32 }
  0x69   : > { %p2893_p9 = scmp.ne.s32.totalorder %s455_s13, %s2892_s30  ;;  %p2900_p11 = scmp.lt.s32.totalorder %s455_s13, %s455_s13 }
  0x6a   : > { %p2901_p12 = scmp.lt.s32.totalorder %s2899_s4, %s2892_s30 }
  0x6b   : > { %p2895_p4 = pnand %p2893_p9, %p3200_p8 }
  0x6c   : > { %p2902_p1 = por %p2901_p12, %p2900_p11 }
  0x6d   : > { %p2896_p10 = pneg %p2895_p4 }
  0x6f   : > { %p2903_p3 = pnand %p2902_p1, %p2896_p10 }
  0x71   : > { %2906 = shalt.err (!%p2903_p3)
}
  0x72   : > { %2661 = dma.hbm_to_vmem [thread:$0]  (!%p3184_p6), %s3753_s9, 16, %s455_s13, [#allocation9]  }
  0x73   : > { %s2907_s29 = scalar_lea.hbm %s3755_s11, 256 }
  0x74   : > { %p2908_p13 = scmp.ne.s32.totalorder %s3755_s11, %s2907_s29  ;;  %p2914_p3 = scmp.lt.u32.totalorder %s2907_s29, %s3755_s11 }
  0x76   : > { %p2910_p0 = pnand %p2908_p13, %p3200_p8 }
  0x78   : > { %p2911_p1 = pneg %p2910_p0 }
  0x7a   : > { %p2916_p2 = pnand %p2914_p3, %p2911_p1 }
  0x7c   : > { %2919 = shalt.err (!%p2916_p2)
}
  0x7d   : > { %s2920_s30 = scalar_lea.vmem %s468_s17, 256  ;;  %p2928_p4 = scmp.lt.s32.totalorder %s468_s17, %s468_s17 }
  0x7e   : > { %p2921_p5 = scmp.ne.s32.totalorder %s468_s17, %s2920_s30  ;;  %p2929_p10 = scmp.lt.s32.totalorder %s2920_s30, %s2920_s30 }
  0x80   : > { %p2923_p7 = pnand %p2921_p5, %p3200_p8  ;;  %p2930_p11 = por %p2929_p10, %p2928_p4 }
  0x82   : > { %p2924_p9 = pneg %p2923_p7 }
  0x84   : > { %p2931_p12 = pnand %p2930_p11, %p2924_p9 }
  0x86   : > { %2934 = shalt.err (!%p2931_p12)
}
  0x87   : > { %2664 = dma.hbm_to_vmem [thread:$0]  (!%p3184_p6), %s3755_s11, 256, %s468_s17, [#allocation12], %s3048_s15, %s3048_s15, %s3049_s12  }
  0x88   : > { %s2313_s28 = sadd.s32 4294967294, %s3043_s21   ;;  %s3315_s26 = sadd.s32 1, %s3043_s21  }
  0x89   : > { %s93_s6 = sadd.s32 1, %s3039_s20  ;;  %s90_s16 = ssub.s32 %s3043_s21, %s3315_s26 }
  0x8a   : > { %p100_p8 = scmp.ne.s32.totalorder %s3039_s20, %s3035_s19  ;;  %p91_p13 = scmp.eq.s32.totalorder %s90_s16, 0 }
  0x8b   : > { %p101_p0 = scmp.eq.s32.totalorder %s3043_s21, 0  ;;  %p106_p1 = scmp.ne.s32.totalorder %s3035_s19, %s3031_s18 }
  0x8c   : > { %p382_p3 = scmp.eq.s32.totalorder %s3168_s24, 1  ;;  %p3777_p5 = scmp.eq.s32.totalorder %s3168_s24, 0 }
  0x8d   : > { %s3327_s3 = scalar_select %p91_p13, %s3039_s20, %s93_s6  }
  0x8e   : > { %p102_p2 = por %p101_p0, %p100_p8  ;;  %p3331_p7 = por %p3777_p5, %p106_p1 }
  0x8f   : > { %p3335_p6 = por %p382_p3, %p100_p8  ;;  %p388_p9 = scmp.eq.s32.totalorder %s2313_s28, 1 }
  0x90   : > { %p2678_p4 = scmp.lt.s32.totalorder %s3043_s21, 2  ;;  %s509_s12 = sand.u32 1, %s3039_s20  }
  0x91   : > { %s3779_s15 = scalar_select %p3335_p6, 1, 0 }
  0x92   : > { %p3341_p10 = por %p388_p9, %p106_p1  ;;  %s2321_s29 = sshll.u32 %s509_s12, 1 }
  0x93   : > { %s2393_s14 = sshll.u32 %s3043_s21, 5  ;;  %s513_s30 = scalar_lea.vmem [#allocation2], %s2321_s29 }
  0x94   : > { %s3780_s17 = scalar_select %p3341_p10, 1, 0 }
  0x95   : > { %s3349_s10 = scalar_lea.hbm %s3746_s2, %s2393_s14  ;;  %s520_s13 = sshll.u32 %s513_s30, 4  ;;  %s3355_s13 = int_to_ptr.vmem [resolvable:$true] %s520_s13 }
  0x96   : > { %p3351_p11 = pnand %p2678_p4, %p102_p2  ;;  %s3357_s28 = scalar_lea.sflag [#allocation3], %s509_s12 }
  0x97   : > { %s2935_s6 = scalar_lea.hbm %s3349_s10, 32  ;;  %s2940_s14 = scalar_lea.hbm %s3746_s2, 64 }
  0x98   : > { %p2936_p12 = scmp.ne.s32.totalorder %s3349_s10, %s2935_s6  ;;  %p2937_p8 = pneg %p3351_p11 }
  0x99   : > { %p2941_p1 = scmp.lt.u32.totalorder %s3349_s10, %s3746_s2  ;;  %p2942_p3 = scmp.lt.u32.totalorder %s2940_s14, %s2935_s6 }
  0x9a   : > { %p2938_p13 = pnand %p2937_p8, %p2936_p12  ;;  %p2944_p5 = scmp.lt.u32.totalorder %s2935_s6, %s3349_s10 }
  0x9b   : > { %p2943_p2 = por %p2942_p3, %p2941_p1 }
  0x9c   : > { %p2939_p0 = pneg %p2938_p13 }
  0x9d   : > { %p2945_p9 = por %p2944_p5, %p2943_p2 }
  0x9f   : > { %p2946_p4 = pnand %p2945_p9, %p2939_p0 }
  0xa1   : > { %2949 = shalt.err (!%p2946_p4)
}
  0xa2   : > { %s2950_s12 = scalar_lea.vmem %s3355_s13, 32  ;;  %s3052_s30 = smov [#allocation2]  }
  0xa3   : > { %p2951_p12 = scmp.ne.s32.totalorder %s3355_s13, %s2950_s12  ;;  %s2955_s16 = sshll.u32 %s3052_s30, 4  ;;  %s2956_s16 = int_to_ptr.vmem [resolvable:$false] %s2955_s16 }
  0xa4   : > { %s2957_s29 = scalar_lea.vmem %s2956_s16, 64  ;;  %p2958_p6 = scmp.lt.s32.totalorder %s3355_s13, %s2956_s16 }
  0xa5   : > { %p2953_p13 = pnand %p2951_p12, %p2937_p8  ;;  %p2959_p1 = scmp.lt.s32.totalorder %s2957_s29, %s2950_s12 }
  0xa7   : > { %p2954_p10 = pneg %p2953_p13  ;;  %p2960_p3 = por %p2959_p1, %p2958_p6 }
  0xa9   : > { %p2961_p2 = pnand %p2960_p3, %p2954_p10 }
  0xab   : > { %2964 = shalt.err (!%p2961_p2)
}
  0xac   : > { %s3053_s6 = smov 16   ;;  %s3054_s14 = smov 1  }
  0xad   : > { %2668 = dma.hbm_to_vmem [thread:$0]  (!%p3351_p11), %s3349_s10, 32, %s3355_s13, %s3357_s28, %s3053_s6, %s3053_s6, %s3054_s14  }
  0xae   : > { %p3782_p8 = scmp.ne.s32.totalorder %s3773_s25, 0 }
  0xaf   : > { %s3388_s23 = sand.u32 (!%p3782_p8), 1, %s3035_s19  }
  0xb0   : > { %532 = sbr.rel (%p3782_p8) target bundleno = 4252 (0x109c), region = 80  ;;  %s2325_s27 = sshll.u32 (!%p3782_p8), %s3388_s23, 1 }
  0xb1   : > { %s535_s12 = scalar_lea.sflag (!%p3782_p8), [#allocation3], %s3388_s23  ;;  %s3392_s30 = scalar_lea.vmem (!%p3782_p8), [#allocation2], %s2325_s27 }
  0xb7   : > { %3010 = dma.done.wait (%p3331_p7), %s535_s12, 32  }
  0xb8   : > { %3012 = vsyncadd (%p3331_p7), %s535_s12, 4294967264  ;;  %p3783_p6 = scmp.eq.s32.totalorder %s3168_s24, 0 }
  0xba   : > { %3014 = dma.done.wait (%p3783_p6), [#allocation6], 512   ;;  %p3784_p10 = pmov %p3783_p6 }
  0xbb   : > { %p3785_p11 = pmov %p3783_p6 }
  0xbc   : > { %3016 = vsyncadd (%p3784_p10), [#allocation6], 4294966784 }
  0xbd   : > { %3018 = dma.done.wait (%p3785_p11), [#allocation9], 32   ;;  %p3786_p0 = pmov %p3783_p6 }
  0xbf   : > { %3020 = vsyncadd (%p3786_p0), [#allocation9], 4294967264  ;;  %p3787_p5 = pmov %p3786_p0 }
  0xc0   : > { %p3788_p9 = pmov %p3786_p0 }
  0xc1   : > { %3022 = dma.done.wait (%p3787_p5), [#allocation12], 256  }
  0xc2   : > { %3024 = vsyncadd (%p3788_p9), [#allocation12], 4294967040  ;;  %s2332_s25 = sshll.u32 %s3168_s24, 1  ;;  %v3055_v0 = vmov 0.0   ;;  %vm3056_vm0 = vmmov 0   ;;  %v2737_v1 = vld [vmem:[#allocation5] sm:$0xff]  }
  0xc3   : > { %2457 = vmatprep.subr.bf16.mxu1 %v3055_v0  ;;  %2461 = vmatprep.mubr.msk.bf16.mxu1 %vm3056_vm0, %v3055_v0  ;;  %p617_p7 = scmp.lt.s32.totalorder %s2332_s25, 3  ;;  %v2738_v2 = vld [vmem:[#allocation5 + $0x8] sm:$0xff]   ;;  %v2739_v5 = vld [vmem:[%s3749_s5] sm:$0xff]   ;;  %vm662_vm1 = vcmask 261120   ;;  %vm758_vm2 = vcmask 523264   ;;  %v2742_v10 = vld [vmem:[%s3749_s5 + $0x18] sm:$0xff]  }
  0xc4   : > { %2483 = vmatprep.subr.bf16.mxu0 %v3055_v0  ;;  %2485 = vmatprep.mubr.msk.bf16.mxu0 %vm3056_vm0, %v3055_v0  ;;  %v2740_v7 = vld [vmem:[%s3749_s5 + $0x8] sm:$0xff]   ;;  %v2741_v9 = vld [vmem:[%s3749_s5 + $0x10] sm:$0xff]   ;;  %s3789_s16 = sld [smem:[#allocation21_spill]]  ;;  %vm832_vm3 = vcmask 64512   ;;  %s3057_s27 = smov 96   ;;  %vm925_vm4 = vcmask 130048  }
  0xc5   : > { %s3804_s25 = smov (!%p617_p7, %s2332_s25), 3  ;;  %2458 = vmatpush3.bf16.msra.mxu1 %v2737_v1  ;;  %s3058_s12 = smov 120   ;;  %v3480_v37 = vld [vmem:[%s3392_s30] ss:$0 sm:$0xff]  ;;  %v3483_v39 = vld [vmem:[%s3392_s30 + $0x1] ss:$0 sm:$0xff] }
  0xc6   : > { %s2333_s22 = sshll.u32 %s3804_s25, 3  ;;  %2459 = vmatprep.subr.bf16.mxu1 %v3055_v0  ;;  %s3059_s30 = smov 88   ;;  %vm1269_vm5 = vcmask 1043456  }
  0xc7   : > { %s620_s4 = scalar_lea.vmem %s3744_s0, %s2333_s22  ;;  %s627_s14 = scalar_lea.vmem %s3745_s1, %s2333_s22 }
  0xc8   : > { %v3420_v3 = vld [vmem:[%s620_s4] sm:$0xff]  ;;  %v3422_v4 = vld [vmem:[%s620_s4 + $0x8] sm:$0xff]  ;;  %s3060_s25 = smov 112   ;;  %s3061_s10 = smov 80  }
  0xc9   : > { %v638_v6 = vpack.c.bf16 %v3422_v4, %v3420_v3  ;;  %2460 = vmatpush3.bf16.msra.mxu1 %v2738_v2  ;;  %v2743_v8 = vld [vmem:[%s627_s14] sm:$0xff]   ;;  %v2744_v11 = vld [vmem:[%s627_s14 + $0x8] sm:$0xff]   ;;  %s3790_s14 = sld [smem:[#allocation20_spill]]  ;;  %s3062_s22 = smov 104  }
  0xca   : > { %2465 = vmatprep.subr.bf16.mxu1 %v2739_v5  ;;  %v2341_v17 = vld [vmem:[%s3789_s16] ss:$0 sm:$0xff]  ;;  %s3063_s13 = smov 72   ;;  %s3791_s16 = sld [smem:[#allocation22_spill]] }
  0xcb   : > { %s3794_s28 = sld [smem:[#allocation25_spill]]  ;;  %p3796_p12 = scmp.ne.s32.totalorder %s3779_s15, 0 }
  0xcc   : > { %2462 = vmatmul.mubr.msk.bf16.vlgmr.msra.gmra.mrb[0].mxu1 %vm662_vm1, %v638_v6 }
  0xcd   : > { %2466 = vmatpush3.bf16.msra.mxu1 %v2739_v5  ;;  %2473 = vmatprep.mubr.msk.bf16.mxu1 %vm758_vm2, %v2743_v8 }
  0xce   : > { %2467 = vmatprep.subr.bf16.mxu1 %v2740_v7 }
  0xcf   : > { %v2337_v19 = vld [vmem:[%s3790_s14] ss:$0 sm:$0xff]  ;;  %s3792_s14 = sld [smem:[#allocation24_spill]] }
  0xd1   : > { %2468 = vmatpush3.bf16.msra.mxu1 %v2740_v7 }
  0xd2   : > { %2469 = vmatprep.subr.bf16.mxu1 %v2741_v9 }
  0xd5   : > { %2470 = vmatpush3.bf16.msra.mxu1 %v2741_v9 }
  0xd6   : > { %2471 = vmatprep.subr.bf16.mxu1 %v2742_v10 }
  0xd9   : > { %2472 = vmatpush3.bf16.msra.mxu1 %v2742_v10 }
  0xda   : > { %2477 = vmatprep.subr.bf16.mxu1 %v3055_v0 }
  0xdc   : > { %2474 = vmatmul.mubr.msk.bf16.vlgmr.msra.gmra.mrb[4].mxu1 %vm758_vm2, %v2744_v11 }
  0xdd   : > { %2479 = vmatprep.mubr.msk.bf16.mxu1 %vm3056_vm0, %v3055_v0 }
 0x19f   : > { %v700_v12 = vpop.f32.mrb[0].mxu1 }
 0x1a0   : > { %v2463_v13 = vpop.f32.mrb[1].mxu1  ;;  %v701_v28 = vadd.f32 %v2337_v19, %v700_v12 }
 0x1a1   : > { %v703_v14 = vpop.f32.mrb[2].mxu1 }
 0x1a2   : > { %v2464_v15 = vpop.f32.mrb[3].mxu1  ;;  %v704_v26 = vadd.f32 %v2337_v19, %v703_v14  ;;  %v707_v33 = vmul.f32 0.35355338, %v701_v28 }
 0x1a4   : > { %v708_v32 = vmul.f32 0.35355338, %v704_v26  ;;  %v3468_v35 = vpack.c.bf16 %v707_v33, %v707_v33 }
 0x1a6   : > { %v3466_v34 = vpack.c.bf16 %v708_v32, %v708_v32 }
 0x1af   : > { %v2475_v16 = vpop.f32.mrb[4].mxu1 }
 0x1b0   : > { %v799_v18 = vpop.f32.mrb[5].mxu1  ;;  %v808_v21 = vadd.f32 %v2475_v16, %v2341_v17 }
 0x1b1   : > { %v2476_v20 = vpop.f32.mrb[6].mxu1  ;;  %v800_v24 = vadd.f32 %v2341_v17, %v799_v18 }
 0x1b2   : > { %v811_v22 = vadd.f32 %v2476_v20, %v2341_v17  ;;  %v802_v23 = vpop.f32.mrb[7].mxu1 }
 0x1b3   : > { %v803_v25 = vadd.f32 %v2341_v17, %v802_v23 }
 0x1b4   : > { %v3452_v27 = vpack.c.bf16 %v811_v22, %v808_v21 }
 0x1b5   : > { %v3454_v29 = vpack.c.bf16 %v803_v25, %v800_v24 }
 0x1b6   : > { %998 = vrot.lane.b32.xlu1 %v3452_v27, %s3057_s27  ;;  %v883_v30 = vsel %vm832_vm3, %v3452_v27, 0 }
 0x1b7   : > { %2484 = vmatpush3.bf16.xpose.msra.mxu0 %v883_v30  ;;  %v837_v31 = vsel %vm832_vm3, %v3454_v29, 0 }
 0x1b8   : > { %2478 = vmatpush3.bf16.xpose.msra.mxu1 %v837_v31  ;;  %2495 = vmatprep.subr.bf16.mxu0 %v3055_v0 }
 0x1b9   : > { %2489 = vmatprep.subr.bf16.mxu1 %v3055_v0 }
 0x1ba   : > { %1049 = vrot.lane.b32.xlu1 %v3454_v29, %s3058_s12 }
 0x1be   : > { %2486 = vmatmul.mubr.msk.bf16.vlgmr.msra.gmra.mrb[0].mxu0 %vm832_vm3, %v3466_v34 }
 0x1bf   : > { %2480 = vmatmul.mubr.msk.bf16.vlgmr.msra.gmra.mrb[8].mxu1 %vm832_vm3, %v3468_v35  ;;  %2497 = vmatprep.mubr.msk.bf16.mxu0 %vm3056_vm0, %v3055_v0 }
 0x1c0   : > { %2491 = vmatprep.mubr.msk.bf16.mxu1 %vm3056_vm0, %v3055_v0 }
 0x228   : > { %v999_v36 = vpop.permute.xlu1 %998 }
 0x229   : > { %2496 = vmatpush3.bf16.msra.mxu0 %v999_v36 }
 0x22a   : > { %2507 = vmatprep.subr.bf16.mxu0 %v3055_v0 }
 0x22c   : > { %v1050_v62 = vpop.permute.xlu1 %1049 }
 0x22d   : > { %v1055_v12 = vsel %vm832_vm3, %v1050_v62, 0  ;;  %v1265_v62 = vld [vmem:[#allocation7 + $0x4] sm:$0xf] }
 0x291   : > { %v919_v38 = vpop.f32.mrb[0].mxu0 }
 0x292   : > { %v873_v40 = vpop.f32.mrb[8].mxu1  ;;  %v2487_v41 = vpop.f32.mrb[1].mxu0  ;;  %v920_v47 = vadd.f32 %v3483_v39, %v919_v38 }
 0x293   : > { %v874_v42 = vadd.f32 %v3480_v37, %v873_v40  ;;  %v2481_v43 = vpop.f32.mrb[9].mxu1  ;;  %v922_v44 = vpop.f32.mrb[2].mxu0 }
 0x294   : > { %v876_v45 = vpop.f32.mrb[10].mxu1  ;;  %v2488_v46 = vpop.f32.mrb[3].mxu0  ;;  %v929_v50 = vsel %vm925_vm4, %v920_v47, -inf }
 0x295   : > { %v2482_v48 = vpop.f32.mrb[11].mxu1  ;;  %v926_v49 = vsel %vm925_vm4, %v874_v42, -inf }
 0x296   : > { %927 = vmax.xlane.f32.xlu0 %v926_v49 }
 0x29a   : > { %930 = vmax.xlane.f32.xlu0 %v929_v50 }
 0x2b0   : > { %951 = vrot.lane.b32.xlu0 %v3454_v29, %s3057_s27 }
 0x2b4   : > { %1047 = vrot.lane.b32.xlu0 %v3468_v35, %s3058_s12 }
 0x323   : > { %v928_v51 = vpop.xlane.xlu0 %927 }
 0x324   : > { %v932_v52 = vsub.f32 %v874_v42, %v928_v51 }
 0x326   : > { %v934_v55 = vmul.f32 1.442695, %v932_v52 }
 0x327   : > { %v931_v53 = vpop.xlane.xlu0 %930 }
 0x328   : > { %v933_v54 = vsub.f32 %v920_v47, %v931_v53 }
 0x32a   : > { %v936_v56 = vmul.f32 1.442695, %v933_v54 }
 0x32b   : > { %v952_v57 = vpop.permute.xlu0 %951 }
 0x32c   : > { %2755 = vpow2.f32 %v936_v56  ;;  %2490 = vmatpush3.bf16.msra.mxu1 %v952_v57  ;;  %v1045_v57 = vld [vmem:[#allocation7] sm:$0xf] }
 0x32d   : > { %2501 = vmatprep.subr.bf16.mxu1 %v3055_v0  ;;  %2757 = vpow2.f32 %v934_v55 }
 0x32f   : > { %v1048_v14 = vpop.permute.xlu0 %1047 }
 0x336   : > { %v2756_v58 = vpop.eup %2755 }
 0x337   : > { %v941_v59 = vsel %vm925_vm4, %v2756_v58, 0.0  ;;  %v2758_v60 = vpop.eup %2757 }
 0x338   : > { %942 = vadd.xlane.f32.xlu1 %v941_v59  ;;  %v938_v61 = vsel %vm925_vm4, %v2758_v60, 0.0 }
 0x33c   : > { %939 = vadd.xlane.f32.xlu1 %v938_v61 }
 0x34d   : > { %1100 = vrot.lane.b32.xlu1 %v3452_v27, %s3058_s12 }
 0x351   : > { %1098 = vrot.lane.b32.xlu1 %v3466_v34, %s3058_s12 }
 0x3c5   : > { %v943_v63 = vpop.xlane.xlu1 %942 }
 0x3c6   : > { %2759 = vrcp.f32 %v943_v63 }
 0x3c9   : > { %v940_v1 = vpop.xlane.xlu1 %939 }
 0x3ca   : > { %2761 = vrcp.f32 %v940_v1 }
 0x3cd   : > { %v1101_v6 = vpop.permute.xlu1 %1100 }
 0x3ce   : > { %v1106_v10 = vsel %vm832_vm3, %v1101_v6, 0 }
 0x3d0   : > { %v2760_v2 = vpop.eup %2759 }
 0x3d1   : > { %v947_v5 = vmul.f32 %v2760_v2, %v2756_v58  ;;  %v1099_v13 = vpop.permute.xlu1 %1098 }
 0x3d3   : > { %v949_v7 = vpack.c.bf16 %v947_v5, %v947_v5  ;;  %v1271_v5 = vsel %vm1269_vm5, %v1265_v62, 0 }
 0x3d4   : > { %v2762_v8 = vpop.eup %2761 }
 0x3d5   : > { %v946_v9 = vmul.f32 %v2762_v8, %v2758_v60  ;;  %2498 = vmatmul.mubr.msk.bf16.vlgmr.msra.gmra.mrb[4].mxu0 %vm925_vm4, %v949_v7  ;;  %v1318_v60 = vsel %vm1269_vm5, %v1045_v57, 0 }
 0x3d6   : > { %2508 = vmatpush3.bf16.xpose.msra.mxu0 %v1106_v10  ;;  %2509 = vmatprep.mubr.msk.bf16.mxu0 %vm3056_vm0, %v3055_v0 }
 0x3d7   : > { %v948_v11 = vpack.c.bf16 %v946_v9, %v946_v9  ;;  %2519 = vmatprep.subr.bf16.mxu0 %v3055_v0 }
 0x3d9   : > { %2492 = vmatmul.mubr.msk.bf16.vlgmr.msra.gmra.mrb[12].mxu1 %vm925_vm4, %v948_v11 }
 0x3da   : > { %2502 = vmatpush3.bf16.xpose.msra.mxu1 %v1055_v12  ;;  %2503 = vmatprep.mubr.msk.bf16.mxu1 %vm3056_vm0, %v3055_v0 }
 0x3db   : > { %2513 = vmatprep.subr.bf16.mxu1 %v3055_v0 }
 0x3dd   : > { %2510 = vmatmul.mubr.msk.bf16.vlgmr.msra.gmra.mrb[8].mxu0 %vm832_vm3, %v1099_v13 }
 0x3de   : > { %2521 = vmatprep.mubr.msk.bf16.mxu0 %vm3056_vm0, %v3055_v0 }
 0x3e1   : > { %2504 = vmatmul.mubr.msk.bf16.vlgmr.msra.gmra.mrb[16].mxu1 %vm832_vm3, %v1048_v14 }
 0x3e2   : > { %2515 = vmatprep.mubr.msk.bf16.mxu1 %vm3056_vm0, %v3055_v0 }
 0x4a8   : > { %v3516_v15 = vpop.f32.mrb[4].mxu0 }
 0x4a9   : > { %v2499_v16 = vpop.f32.mrb[5].mxu0 }
 0x4aa   : > { %v1041_v17 = vpop.f32.mrb[6].mxu0 }
 0x4ab   : > { %v2500_v18 = vpop.f32.mrb[7].mxu0 }
 0x4ac   : > { %v3518_v19 = vpop.f32.mrb[12].mxu1 }
 0x4ad   : > { %v1044_v20 = vpack.c.bf16 %v3516_v15, %v3518_v19  ;;  %v2493_v21 = vpop.f32.mrb[13].mxu1 }
 0x4ae   : > { %v994_v22 = vpop.f32.mrb[14].mxu1 }
 0x4af   : > { %v2494_v23 = vpop.f32.mrb[15].mxu1 }
 0x4b0   : > { %v1142_v24 = vpop.f32.mrb[8].mxu0 }
 0x4b1   : > { %v1143_v25 = vadd.f32 %v3483_v39, %v1142_v24  ;;  %v2511_v26 = vpop.f32.mrb[9].mxu0 }
 0x4b2   : > { %v1145_v28 = vpop.f32.mrb[10].mxu0 }
 0x4b3   : > { %v2512_v30 = vpop.f32.mrb[11].mxu0  ;;  %v1151_v31 = vsel %vm925_vm4, %v1143_v25, -inf }
 0x4b4   : > { %1152 = vmax.xlane.f32.xlu1 %v1151_v31  ;;  %v1091_v32 = vpop.f32.mrb[16].mxu1 }
 0x4b5   : > { %v1092_v33 = vadd.f32 %v3480_v37, %v1091_v32  ;;  %v2505_v36 = vpop.f32.mrb[17].mxu1 }
 0x4b6   : > { %v1094_v38 = vpop.f32.mrb[18].mxu1 }
 0x4b7   : > { %v2506_v40 = vpop.f32.mrb[19].mxu1  ;;  %v1148_v41 = vsel %vm925_vm4, %v1092_v33, -inf }
 0x4b8   : > { %1149 = vmax.xlane.f32.xlu0 %v1148_v41 }
 0x4c5   : > { %1218 = vrot.lane.b32.xlu1 %v3452_v27, %s3059_s30 }
 0x4c9   : > { %1363 = vrot.lane.b32.xlu1 %v3454_v29, %s3060_s25 }
 0x4cd   : > { %1413 = vrot.lane.b32.xlu1 %v3452_v27, %s3060_s25 }
 0x4d1   : > { %1411 = vrot.lane.b32.xlu1 %v3466_v34, %s3060_s25 }
 0x541   : > { %v1153_v42 = vpop.xlane.xlu1 %1152 }
 0x542   : > { %v1155_v43 = vsub.f32 %v1143_v25, %v1153_v42 }
 0x544   : > { %v1158_v44 = vmul.f32 1.442695, %v1155_v43 }
 0x545   : > { %v1219_v45 = vpop.permute.xlu1 %1218  ;;  %v1150_v46 = vpop.xlane.xlu0 %1149 }
 0x546   : > { %2763 = vpow2.f32 %v1158_v44  ;;  %v1154_v47 = vsub.f32 %v1092_v33, %v1150_v46  ;;  %2520 = vmatpush3.bf16.msra.mxu0 %v1219_v45 }
 0x547   : > { %2531 = vmatprep.subr.bf16.mxu0 %v3055_v0 }
 0x548   : > { %v1156_v48 = vmul.f32 1.442695, %v1154_v47 }
 0x549   : > { %v1364_v63 = vpop.permute.xlu1 %1363 }
 0x54a   : > { %2765 = vpow2.f32 %v1156_v48  ;;  %v1369_v17 = vsel %vm832_vm3, %v1364_v63, 0 }
 0x54d   : > { %v1414_v6 = vpop.permute.xlu1 %1413 }
 0x54e   : > { %v1419_v7 = vsel %vm832_vm3, %v1414_v6, 0 }
 0x550   : > { %v2764_v49 = vpop.eup %2763 }
 0x551   : > { %v1163_v50 = vsel %vm925_vm4, %v2764_v49, 0.0  ;;  %v1412_v8 = vpop.permute.xlu1 %1411 }
 0x552   : > { %1164 = vadd.xlane.f32.xlu0 %v1163_v50 }
 0x554   : > { %v2766_v51 = vpop.eup %2765 }
 0x555   : > { %v1160_v52 = vsel %vm925_vm4, %v2766_v51, 0.0 }
 0x556   : > { %1161 = vadd.xlane.f32.xlu0 %v1160_v52 }
 0x56c   : > { %1172 = vrot.lane.b32.xlu0 %v3454_v29, %s3059_s30  ;;  %s3795_s30 = sld [smem:[#allocation26_spill]] }
 0x570   : > { %1361 = vrot.lane.b32.xlu0 %v3468_v35, %s3060_s25 }
 0x5df   : > { %v1165_v53 = vpop.xlane.xlu0 %1164 }
 0x5e0   : > { %2767 = vrcp.f32 %v1165_v53 }
 0x5e3   : > { %v1162_v54 = vpop.xlane.xlu0 %1161 }
 0x5e4   : > { %2769 = vrcp.f32 %v1162_v54 }
 0x5e7   : > { %v1173_v55 = vpop.permute.xlu0 %1172 }
 0x5e8   : > { %2514 = vmatpush3.bf16.msra.mxu1 %v1173_v55 }
 0x5e9   : > { %2525 = vmatprep.subr.bf16.mxu1 %v3055_v0 }
 0x5ea   : > { %v2768_v56 = vpop.eup %2767 }
 0x5eb   : > { %v1169_v58 = vmul.f32 %v2768_v56, %v2764_v49  ;;  %v1362_v23 = vpop.permute.xlu0 %1361 }
 0x5ed   : > { %v1171_v59 = vpack.c.bf16 %v1169_v58, %v1169_v58 }
 0x5ee   : > { %v2770_v61 = vpop.eup %2769 }
 0x5ef   : > { %v1168_v1 = vmul.f32 %v2770_v61, %v2766_v51  ;;  %2522 = vmatmul.mubr.msk.bf16.vlgmr.msra.gmra.mrb[12].mxu0 %vm925_vm4, %v1171_v59 }
 0x5f0   : > { %2532 = vmatpush3.bf16.msra.mxu0 %v1318_v60  ;;  %2533 = vmatprep.mubr.msk.bf16.mxu0 %vm3056_vm0, %v3055_v0 }
 0x5f1   : > { %v1170_v2 = vpack.c.bf16 %v1168_v1, %v1168_v1  ;;  %2543 = vmatprep.subr.bf16.mxu0 %v3055_v0 }
 0x5f3   : > { %2516 = vmatmul.mubr.msk.bf16.vlgmr.msra.gmra.mrb[20].mxu1 %vm925_vm4, %v1170_v2 }
 0x5f4   : > { %2526 = vmatpush3.bf16.msra.mxu1 %v1271_v5  ;;  %2527 = vmatprep.mubr.msk.bf16.mxu1 %vm3056_vm0, %v3055_v0 }
 0x5f5   : > { %2537 = vmatprep.subr.bf16.mxu1 %v3055_v0 }
 0x5f7   : > { %2534 = vmatmul.mubr.msk.bf16.vlgmr.msra.gmra.mrb[16].mxu0 %vm832_vm3, %v1044_v20 }
 0x5f8   : > { %2545 = vmatprep.mubr.msk.bf16.mxu0 %vm3056_vm0, %v3055_v0 }
 0x5f9   : > { %2544 = vmatpush3.bf16.xpose.msra.mxu0 %v1419_v7 }
 0x5fa   : > { %2555 = vmatprep.subr.bf16.mxu0 %v3055_v0 }
 0x600   : > { %2546 = vmatmul.mubr.msk.bf16.vlgmr.msra.gmra.mrb[20].mxu0 %vm832_vm3, %v1412_v8 }
 0x601   : > { %2557 = vmatprep.mubr.msk.bf16.mxu0 %vm3056_vm0, %v3055_v0 }
 0x6c2   : > { %v1258_v9 = vpop.f32.mrb[12].mxu0 }
 0x6c3   : > { %v2523_v10 = vpop.f32.mrb[13].mxu0 }
 0x6c4   : > { %v1261_v11 = vpop.f32.mrb[14].mxu0 }
 0x6c5   : > { %v2524_v12 = vpop.f32.mrb[15].mxu0 }
 0x6c6   : > { %v1212_v13 = vpop.f32.mrb[20].mxu1  ;;  %v1578_v12 = vld [vmem:[#allocation7 + $0x8] sm:$0xf] }
 0x6c7   : > { %v1264_v14 = vpack.c.bf16 %v1258_v9, %v1212_v13  ;;  %v2517_v15 = vpop.f32.mrb[21].mxu1  ;;  %v1583_v13 = vsel %vm1269_vm5, %v1578_v12, 0 }
 0x6c8   : > { %v1215_v16 = vpop.f32.mrb[22].mxu1 }
 0x6c9   : > { %v2518_v18 = vpop.f32.mrb[23].mxu1  ;;  %2528 = vmatmul.mubr.msk.bf16.vlgmr.msra.gmra.mrb[24].mxu1 %vm832_vm3, %v1264_v14 }
 0x6ca   : > { %2538 = vmatpush3.bf16.xpose.msra.mxu1 %v1369_v17  ;;  %v1354_v19 = vpop.f32.mrb[16].mxu0  ;;  %2539 = vmatprep.mubr.msk.bf16.mxu1 %vm3056_vm0, %v3055_v0 }
 0x6cb   : > { %v2535_v20 = vpop.f32.mrb[17].mxu0  ;;  %2549 = vmatprep.subr.bf16.mxu1 %v3055_v0 }
 0x6cc   : > { %v1357_v21 = vpop.f32.mrb[18].mxu0 }
 0x6cd   : > { %v2536_v22 = vpop.f32.mrb[19].mxu0 }
 0x6d1   : > { %2540 = vmatmul.mubr.msk.bf16.vlgmr.msra.gmra.mrb[28].mxu1 %vm832_vm3, %v1362_v23 }
 0x6d2   : > { %2551 = vmatprep.mubr.msk.bf16.mxu1 %vm3056_vm0, %v3055_v0 }
 0x6d3   : > { %v1455_v24 = vpop.f32.mrb[20].mxu0 }
 0x6d4   : > { %v1456_v25 = vadd.f32 %v3483_v39, %v1455_v24  ;;  %v2547_v26 = vpop.f32.mrb[21].mxu0 }
 0x6d5   : > { %v1458_v28 = vpop.f32.mrb[22].mxu0 }
 0x6d6   : > { %v2548_v30 = vpop.f32.mrb[23].mxu0  ;;  %v1464_v31 = vsel %vm925_vm4, %v1456_v25, -inf }
 0x6d7   : > { %1465 = vmax.xlane.f32.xlu1 %v1464_v31 }
 0x6e8   : > { %1531 = vrot.lane.b32.xlu1 %v3452_v27, %s3061_s10 }
 0x6ec   : > { %1630 = vrot.lane.b32.xlu1 %v3454_v29, %s3062_s22 }
 0x6f0   : > { %1680 = vrot.lane.b32.xlu1 %v3452_v27, %s3062_s22 }
 0x6f4   : > { %1678 = vrot.lane.b32.xlu1 %v3466_v34, %s3062_s22 }
 0x764   : > { %v1466_v32 = vpop.xlane.xlu1 %1465 }
 0x765   : > { %v1468_v36 = vsub.f32 %v1456_v25, %v1466_v32 }
 0x767   : > { %v1471_v38 = vmul.f32 1.442695, %v1468_v36 }
 0x768   : > { %v1532_v33 = vpop.permute.xlu1 %1531 }
 0x769   : > { %2556 = vmatpush3.bf16.msra.mxu0 %v1532_v33  ;;  %2771 = vpow2.f32 %v1471_v38 }
 0x76a   : > { %2567 = vmatprep.subr.bf16.mxu0 %v3055_v0 }
 0x76c   : > { %v1631_v61 = vpop.permute.xlu1 %1630 }
 0x76d   : > { %v1636_v63 = vsel %vm832_vm3, %v1631_v61, 0 }
 0x770   : > { %v1681_v20 = vpop.permute.xlu1 %1680 }
 0x771   : > { %v1686_v25 = vsel %vm832_vm3, %v1681_v20, 0 }
 0x773   : > { %v2772_v51 = vpop.eup %2771 }
 0x774   : > { %v1476_v52 = vsel %vm925_vm4, %v2772_v51, 0.0 }
 0x79c   : > { %v1307_v40 = vpop.f32.mrb[24].mxu1 }
 0x79d   : > { %v3576_v41 = vadd.f32 %v1354_v19, %v1307_v40  ;;  %v2529_v42 = vpop.f32.mrb[25].mxu1 }
 0x79e   : > { %v1310_v43 = vpop.f32.mrb[26].mxu1 }
 0x79f   : > { %v3578_v44 = vadd.f32 %v1357_v21, %v1310_v43  ;;  %v2530_v45 = vpop.f32.mrb[27].mxu1 }
 0x7a4   : > { %v1405_v46 = vpop.f32.mrb[28].mxu1 }
 0x7a5   : > { %v1406_v47 = vadd.f32 %v3480_v37, %v1405_v46  ;;  %v2541_v34 = vpop.f32.mrb[29].mxu1 }
 0x7a6   : > { %v1408_v48 = vpop.f32.mrb[30].mxu1 }
 0x7a7   : > { %v2542_v49 = vpop.f32.mrb[31].mxu1  ;;  %v1461_v50 = vsel %vm925_vm4, %v1406_v47, -inf }
 0x7a8   : > { %1462 = vmax.xlane.f32.xlu0 %v1461_v50 }
 0x7ac   : > { %1477 = vadd.xlane.f32.xlu0 %v1476_v52 }
 0x835   : > { %v1463_v53 = vpop.xlane.xlu0 %1462 }
 0x836   : > { %v1467_v54 = vsub.f32 %v1406_v47, %v1463_v53 }
 0x838   : > { %v1469_v55 = vmul.f32 1.442695, %v1467_v54 }
 0x839   : > { %v1478_v56 = vpop.xlane.xlu0 %1477 }
 0x83a   : > { %2773 = vpow2.f32 %v1469_v55 }
 0x83b   : > { %2775 = vrcp.f32 %v1478_v56 }
 0x844   : > { %v2774_v57 = vpop.eup %2773 }
 0x845   : > { %v2776_v58 = vpop.eup %2775  ;;  %v1473_v59 = vsel %vm925_vm4, %v2774_v57, 0.0 }
 0x846   : > { %v1482_v60 = vmul.f32 %v2776_v58, %v2772_v51  ;;  %1474 = vadd.xlane.f32.xlu0 %v1473_v59 }
 0x848   : > { %v1484_v62 = vpack.c.bf16 %v1482_v60, %v1482_v60 }
 0x84a   : > { %2558 = vmatmul.mubr.msk.bf16.vlgmr.msra.gmra.mrb[24].mxu0 %vm925_vm4, %v1484_v62 }
 0x84b   : > { %2568 = vmatpush3.bf16.xpose.msra.mxu0 %v1636_v63  ;;  %2569 = vmatprep.mubr.msk.bf16.mxu0 %vm3056_vm0, %v3055_v0 }
 0x84c   : > { %2579 = vmatprep.subr.bf16.mxu0 %v3055_v0 }
 0x85c   : > { %1485 = vrot.lane.b32.xlu0 %v3454_v29, %s3061_s10  ;;  %s3793_s10 = sld [smem:[#allocation23_spill]] }
 0x860   : > { %1628 = vrot.lane.b32.xlu0 %v3468_v35, %s3062_s22  ;;  %s2331_s22 = sshll.u32 %s3388_s23, 4 }
 0x861   : > { %s615_s29 = scalar_lea.vmem [#allocation13], %s2331_s22  ;;  %s3064_s22 = smov [#allocation13]  }
 0x862   : > { %s2168_s6 = sshll.u32 %s615_s29, 4  ;;  %s3697_s6 = int_to_ptr.vmem [resolvable:$true] %s2168_s6 }
 0x8d3   : > { %v1475_v1 = vpop.xlane.xlu0 %1474 }
 0x8d4   : > { %2777 = vrcp.f32 %v1475_v1 }
 0x8d7   : > { %v1486_v2 = vpop.permute.xlu0 %1485 }
 0x8d8   : > { %2550 = vmatpush3.bf16.msra.mxu1 %v1486_v2 }
 0x8d9   : > { %2561 = vmatprep.subr.bf16.mxu1 %v3055_v0 }
 0x8db   : > { %v1629_v5 = vpop.permute.xlu0 %1628 }
 0x8dc   : > { %2570 = vmatmul.mubr.msk.bf16.vlgmr.msra.gmra.mrb[28].mxu0 %vm832_vm3, %v1629_v5 }
 0x8dd   : > { %2581 = vmatprep.mubr.msk.bf16.mxu0 %vm3056_vm0, %v3055_v0 }
 0x8de   : > { %v2778_v6 = vpop.eup %2777 }
 0x8df   : > { %v1481_v7 = vmul.f32 %v2778_v6, %v2774_v57 }
 0x8e1   : > { %v1483_v8 = vpack.c.bf16 %v1481_v7, %v1481_v7 }
 0x8e3   : > { %2552 = vmatmul.mubr.msk.bf16.vlgmr.msra.gmra.mrb[32].mxu1 %vm925_vm4, %v1483_v8 }
 0x8e4   : > { %2563 = vmatprep.mubr.msk.bf16.mxu1 %vm3056_vm0, %v3055_v0  ;;  %2562 = vmatpush3.bf16.msra.mxu1 %v1583_v13 }
 0x8e5   : > { %2573 = vmatprep.subr.bf16.mxu1 %v3055_v0 }
 0x91d   : > { %v1571_v35 = vpop.f32.mrb[24].mxu0 }
 0x91e   : > { %v2559_v9 = vpop.f32.mrb[25].mxu0 }
 0x91f   : > { %v1574_v10 = vpop.f32.mrb[26].mxu0 }
 0x920   : > { %v2560_v11 = vpop.f32.mrb[27].mxu0 }
 0x921   : > { %v2372_v11 = vld [vmem:[#allocation8] ss:$0 sm:$0xff] }
 0x9af   : > { %v1672_v14 = vpop.f32.mrb[28].mxu0 }
 0x9b0   : > { %v1673_v15 = vadd.f32 %v3480_v37, %v1672_v14  ;;  %v2571_v16 = vpop.f32.mrb[29].mxu0  ;;  %v1679_v37 = vpop.permute.xlu1 %1678 }
 0x9b1   : > { %v1675_v17 = vpop.f32.mrb[30].mxu0 }
 0x9b2   : > { %v2572_v18 = vpop.f32.mrb[31].mxu0  ;;  %v1728_v19 = vsel %vm925_vm4, %v1673_v15, -inf }
 0x9b3   : > { %1729 = vmax.xlane.f32.xlu0 %v1728_v19 }
 0x9b6   : > { %v1525_v21 = vpop.f32.mrb[32].mxu1 }
 0x9b7   : > { %v1577_v22 = vpack.c.bf16 %v1571_v35, %v1525_v21  ;;  %v2553_v23 = vpop.f32.mrb[33].mxu1 }
 0x9b8   : > { %v1528_v24 = vpop.f32.mrb[34].mxu1 }
 0x9b9   : > { %v2554_v26 = vpop.f32.mrb[35].mxu1  ;;  %2564 = vmatmul.mubr.msk.bf16.vlgmr.msra.gmra.mrb[36].mxu1 %vm832_vm3, %v1577_v22 }
 0x9ba   : > { %2574 = vmatpush3.bf16.xpose.msra.mxu1 %v1686_v25  ;;  %2575 = vmatprep.mubr.msk.bf16.mxu1 %vm3056_vm0, %v3055_v0 }
 0x9bb   : > { %2585 = vmatprep.subr.bf16.mxu1 %v3055_v0 }
 0x9c1   : > { %2576 = vmatmul.mubr.msk.bf16.vlgmr.msra.gmra.mrb[40].mxu1 %vm832_vm3, %v1679_v37 }
 0x9c2   : > { %2587 = vmatprep.mubr.msk.bf16.mxu1 %vm3056_vm0, %v3055_v0 }
 0xa40   : > { %v1730_v28 = vpop.xlane.xlu0 %1729 }
 0xa41   : > { %v1734_v30 = vsub.f32 %v1673_v15, %v1730_v28 }
 0xa43   : > { %v1736_v31 = vmul.f32 1.442695, %v1734_v30 }
 0xa45   : > { %2779 = vpow2.f32 %v1736_v31 }
 0xa4f   : > { %v2780_v32 = vpop.eup %2779 }
 0xa50   : > { %v1740_v33 = vsel %vm925_vm4, %v2780_v32, 0.0 }
 0xa51   : > { %1741 = vadd.xlane.f32.xlu0 %v1740_v33  ;;  %v2746_v33 = vld [vmem:[#allocation11 + $0x8] sm:$0xff]  }
 0xa8c   : > { %v1619_v36 = vpop.f32.mrb[36].mxu1 }
 0xa8d   : > { %v1626_v38 = vadd.f32 %v1619_v36, %v3576_v41  ;;  %v2565_v40 = vpop.f32.mrb[37].mxu1 }
 0xa8e   : > { %v1622_v42 = vpop.f32.mrb[38].mxu1 }
 0xa8f   : > { %v1627_v43 = vadd.f32 %v1622_v42, %v3578_v44  ;;  %v2566_v45 = vpop.f32.mrb[39].mxu1 }
 0xa94   : > { %v1722_v46 = vpop.f32.mrb[40].mxu1 }
 0xa95   : > { %v1723_v47 = vadd.f32 %v3483_v39, %v1722_v46  ;;  %v2577_v34 = vpop.f32.mrb[41].mxu1 }
 0xa96   : > { %v1725_v48 = vpop.f32.mrb[42].mxu1 }
 0xa97   : > { %v2578_v49 = vpop.f32.mrb[43].mxu1  ;;  %v1731_v50 = vsel %vm925_vm4, %v1723_v47, -inf }
 0xa98   : > { %1732 = vmax.xlane.f32.xlu1 %v1731_v50 }
 0xaa9   : > { %1798 = vrot.lane.b32.xlu1 %v3452_v27, %s3063_s13 }
 0xade   : > { %v1742_v54 = vpop.xlane.xlu0 %1741 }
 0xb25   : > { %v1733_v51 = vpop.xlane.xlu1 %1732 }
 0xb26   : > { %v1735_v52 = vsub.f32 %v1723_v47, %v1733_v51  ;;  %v2373_v47 = vld [vmem:[#allocation10] ss:$0 sm:$0xff]  ;;  %v2374_v51 = vld [vmem:[%s3791_s16] ss:$0 sm:$0xff]  ;;  %s2395_s16 = sshll.u32 %s3168_s24, 8  ;;  %s2155_s24 = scalar_lea.sflag [#allocation4], %s3388_s23 }
 0xb27   : > { %s3695_s25 = scalar_lea.hbm %s3795_s30, %s2395_s16 }
 0xb28   : > { %v1738_v41 = vmul.f32 1.442695, %v1735_v52 }
 0xb29   : > { %v1799_v53 = vpop.permute.xlu1 %1798 }
 0xb2a   : > { %2781 = vpow2.f32 %v1738_v41  ;;  %2586 = vmatpush3.bf16.msra.mxu1 %v1799_v53 }
 0xb2b   : > { %2597 = vmatprep.subr.bf16.mxu1 %v3055_v0  ;;  %2783 = vrcp.f32 %v1742_v54  ;;  %v2748_v54 = vld [vmem:[%s3792_s14 + $0x8] sm:$0xff]  }
 0xb34   : > { %v2782_v44 = vpop.eup %2781 }
 0xb35   : > { %v1743_v39 = vsel %vm925_vm4, %v2782_v44, 0.0  ;;  %v2784_v55 = vpop.eup %2783 }
 0xb36   : > { %1744 = vadd.xlane.f32.xlu0 %v1743_v39  ;;  %v1748_v27 = vmul.f32 %v2784_v55, %v2780_v32  ;;  %v2745_v32 = vld [vmem:[#allocation11] sm:$0xff]   ;;  %v2747_v39 = vld [vmem:[%s3792_s14] sm:$0xff]   ;;  %v2749_v55 = vld [vmem:[%s3792_s14 + $0x10] sm:$0xff]  }
 0xb38   : > { %v1750_v58 = vpack.c.bf16 %v1748_v27, %v1748_v27  ;;  %v2751_v27 = vld [vmem:[%s3792_s14 + $0x20] sm:$0xff]  }
 0xb4c   : > { %1752 = vrot.lane.b32.xlu0 %v3454_v29, %s3063_s13  ;;  %v1845_v29 = vld [vmem:[#allocation7 + $0xc] sm:$0xf]  ;;  %s2969_s13 = sshll.u32 %s3064_s22, 4  ;;  %s2970_s13 = int_to_ptr.vmem [resolvable:$false] %s2969_s13 }
 0xb4d   : > { %v1850_v62 = vsel %vm1269_vm5, %v1845_v29, 0  ;;  %s2971_s4 = scalar_lea.vmem %s2970_s13, 512  ;;  %p2972_p3 = scmp.lt.s32.totalorder %s3697_s6, %s2970_s13 }
 0xbc3   : > { %v1745_v56 = vpop.xlane.xlu0 %1744 }
 0xbc4   : > { %2785 = vrcp.f32 %v1745_v56  ;;  %v2750_v56 = vld [vmem:[%s3792_s14 + $0x18] sm:$0xff]  }
 0xbc7   : > { %v1753_v57 = vpop.permute.xlu0 %1752 }
 0xbc8   : > { %2580 = vmatpush3.bf16.msra.mxu0 %v1753_v57  ;;  %v2752_v57 = vld [vmem:[%s3792_s14 + $0x28] sm:$0xff]  }
 0xbc9   : > { %2591 = vmatprep.subr.bf16.mxu0 %v3055_v0 }
 0xbcb   : > { %2582 = vmatmul.mubr.msk.bf16.vlgmr.msra.gmra.mrb[32].mxu0 %vm925_vm4, %v1750_v58  ;;  %v2753_v58 = vld [vmem:[%s3792_s14 + $0x30] sm:$0xff]  }
 0xbcc   : > { %2593 = vmatprep.mubr.msk.bf16.mxu0 %vm3056_vm0, %v3055_v0  ;;  %2592 = vmatpush3.bf16.msra.mxu0 %v1850_v62 }
 0xbcd   : > { %2605 = vmatprep.subr.bf16.mxu0 %v3055_v0 }
 0xbce   : > { %v2786_v59 = vpop.eup %2785 }
 0xbcf   : > { %v1749_v60 = vmul.f32 %v2786_v59, %v2782_v44  ;;  %v2754_v59 = vld [vmem:[%s3792_s14 + $0x38] sm:$0xff]  }
 0xbd1   : > { %v1751_v61 = vpack.c.bf16 %v1749_v60, %v1749_v60  ;;  %v2375_v60 = vld [vmem:[%s3793_s10] ss:$0 sm:$0xff]  ;;  %s2965_s10 = scalar_lea.vmem %s3697_s6, 256 }
 0xbd2   : > { %p2966_p4 = scmp.ne.s32.totalorder %s3697_s6, %s2965_s10  ;;  %p2973_p2 = scmp.lt.s32.totalorder %s2971_s4, %s2965_s10 }
 0xbd3   : > { %2588 = vmatmul.mubr.msk.bf16.vlgmr.msra.gmra.mrb[44].mxu1 %vm925_vm4, %v1751_v61 }
 0xbd4   : > { %2601 = vmatprep.mubr.msk.bf16.mxu1 %vm3056_vm0, %v3055_v0  ;;  %2598 = vmatpush3.bf16.msra.mxu1 %v2745_v32  ;;  %p2967_p13 = pnand %p2966_p4, %p3796_p12  ;;  %p2974_p8 = por %p2973_p2, %p2972_p3 }
 0xbd5   : > { %2599 = vmatprep.subr.bf16.mxu1 %v3055_v0 }
 0xbd6   : > { %p2968_p1 = pneg %p2967_p13 }
 0xbd8   : > { %2600 = vmatpush3.bf16.msra.mxu1 %v2746_v33  ;;  %p2975_p6 = pnand %p2974_p8, %p2968_p1 }
 0xc9e   : > { %v1792_v63 = vpop.f32.mrb[32].mxu0 }
 0xc9f   : > { %v2583_v1 = vpop.f32.mrb[33].mxu0 }
 0xca0   : > { %v1795_v2 = vpop.f32.mrb[34].mxu0 }
 0xca1   : > { %v2584_v5 = vpop.f32.mrb[35].mxu0 }
 0xca6   : > { %v1838_v6 = vpop.f32.mrb[44].mxu1 }
 0xca7   : > { %v1844_v7 = vpack.c.bf16 %v1838_v6, %v1792_v63  ;;  %v2589_v8 = vpop.f32.mrb[45].mxu1 }
 0xca8   : > { %v1841_v35 = vpop.f32.mrb[46].mxu1 }
 0xca9   : > { %v2590_v9 = vpop.f32.mrb[47].mxu1  ;;  %2594 = vmatmul.mubr.msk.bf16.vlgmr.msra.gmra.mrb[36].mxu0 %vm832_vm3, %v1844_v7 }
 0xcaa   : > { %2621 = vmatprep.mubr.msk.bf16.mxu0 %vm3056_vm0, %v3055_v0  ;;  %2606 = vmatpush3.bf16.msra.mxu0 %v2747_v39 }
 0xcab   : > { %2607 = vmatprep.subr.bf16.mxu0 %v3055_v0 }
 0xcae   : > { %2608 = vmatpush3.bf16.msra.mxu0 %v2748_v54 }
 0xcaf   : > { %2609 = vmatprep.subr.bf16.mxu0 %v3055_v0 }
 0xcb2   : > { %2610 = vmatpush3.bf16.msra.mxu0 %v2749_v55 }
 0xcb3   : > { %2611 = vmatprep.subr.bf16.mxu0 %v3055_v0 }
 0xcb6   : > { %2612 = vmatpush3.bf16.msra.mxu0 %v2750_v56 }
 0xcb7   : > { %2613 = vmatprep.subr.bf16.mxu0 %v3055_v0 }
 0xcba   : > { %2614 = vmatpush3.bf16.msra.mxu0 %v2751_v27 }
 0xcbb   : > { %2615 = vmatprep.subr.bf16.mxu0 %v3055_v0 }
 0xcbe   : > { %2616 = vmatpush3.bf16.msra.mxu0 %v2752_v57 }
 0xcbf   : > { %2617 = vmatprep.subr.bf16.mxu0 %v3055_v0 }
 0xcc2   : > { %2618 = vmatpush3.bf16.msra.mxu0 %v2753_v58 }
 0xcc3   : > { %2619 = vmatprep.subr.bf16.mxu0 %v3055_v0 }
 0xcc6   : > { %2620 = vmatpush3.bf16.msra.mxu0 %v2754_v59 }
 0xd7c   : > { %v1886_v10 = vpop.f32.mrb[36].mxu0 }
 0xd7d   : > { %v1893_v12 = vadd.f32 %v1886_v10, %v1626_v38  ;;  %v2595_v13 = vpop.f32.mrb[37].mxu0 }
 0xd7e   : > { %v1889_v14 = vpop.f32.mrb[38].mxu0 }
 0xd7f   : > { %v1902_v15 = vadd.f32 %v2372_v11, %v1893_v12  ;;  %v1894_v16 = vadd.f32 %v1889_v14, %v1627_v43  ;;  %v2596_v17 = vpop.f32.mrb[39].mxu0 }
 0xd81   : > { %v3634_v18 = vadd.f32 %v1902_v15, %v3420_v3  ;;  %v1903_v19 = vadd.f32 %v2372_v11, %v1894_v16 }
 0xd83   : > { %v3637_v20 = vadd.f32 %v1903_v19, %v3422_v4  ;;  %v1906_v21 = vsel %vm662_vm1, %v3634_v18, 0.0 }
 0xd84   : > { %1907 = vadd.xlane.f32.xlu1 %v1906_v21 }
 0xd85   : > { %v1909_v22 = vsel %vm662_vm1, %v3637_v20, 0.0 }
 0xd86   : > { %1910 = vadd.xlane.f32.xlu0 %v1909_v22 }
 0xe11   : > { %v1908_v23 = vpop.xlane.xlu1 %1907 }
 0xe12   : > { %v1913_v24 = vmul.f32 0.03125, %v1908_v23 }
 0xe13   : > { %v1911_v25 = vpop.xlane.xlu0 %1910 }
 0xe14   : > { %v1915_v26 = vsub.f32 %v3634_v18, %v1913_v24  ;;  %v1914_v37 = vmul.f32 0.03125, %v1911_v25  ;;  %v2379_v24 = vld [vmem:[%s3794_s28] ss:$0 sm:$0xff] }
 0xe16   : > { %v1916_v3 = vsub.f32 %v3637_v20, %v1914_v37  ;;  %v1917_v28 = vmul.f32 %v1915_v26, %v1915_v26 }
 0xe18   : > { %v1919_v4 = vsel %vm662_vm1, %v1917_v28, 0.0  ;;  %v1918_v30 = vmul.f32 %v1916_v3, %v1916_v3 }
 0xe19   : > { %1920 = vadd.xlane.f32.xlu0 %v1919_v4 }
 0xe1a   : > { %v1922_v31 = vsel %vm662_vm1, %v1918_v30, 0.0 }
 0xe1b   : > { %1923 = vadd.xlane.f32.xlu1 %v1922_v31 }
 0xea6   : > { %v1921_v36 = vpop.xlane.xlu0 %1920 }
 0xea7   : > { %v1925_v38 = vmul.f32 0.03125, %v1921_v36 }
 0xea8   : > { %v1924_v40 = vpop.xlane.xlu1 %1923 }
 0xea9   : > { %v1927_v42 = vadd.f32 1e-05, %v1925_v38  ;;  %v1926_v43 = vmul.f32 0.03125, %v1924_v40 }
 0xeab   : > { %2787 = vrsqrt.f32 %v1927_v42  ;;  %v1928_v45 = vadd.f32 1e-05, %v1926_v43 }
 0xead   : > { %2789 = vrsqrt.f32 %v1928_v45 }
 0xeb5   : > { %v2788_v46 = vpop.eup %2787 }
 0xeb6   : > { %v1931_v34 = vmul.f32 %v2788_v46, %v1915_v26 }
 0xeb7   : > { %v2790_v48 = vpop.eup %2789 }
 0xeb8   : > { %v1940_v49 = vmul.f32 %v2373_v47, %v1931_v34  ;;  %v1932_v50 = vmul.f32 %v2790_v48, %v1916_v3 }
 0xeba   : > { %v1941_v52 = vmul.f32 %v2373_v47, %v1932_v50  ;;  %v1949_v41 = vadd.f32 %v2374_v51, %v1940_v49 }
 0xebc   : > { %v1950_v53 = vadd.f32 %v2374_v51, %v1941_v52 }
 0xebe   : > { %v1951_v44 = vpack.c.bf16 %v1950_v53, %v1949_v41 }
 0xec0   : > { %2602 = vmatmul.mubr.msk.bf16.vlgmr.msra.gmra.mrb[48].mxu1 %vm662_vm1, %v1951_v44 }
 0xf93   : > { %v2012_v61 = vpop.f32.mrb[48].mxu1 }
 0xf94   : > { %v2013_v29 = vadd.f32 %v2375_v60, %v2012_v61  ;;  %v2603_v62 = vpop.f32.mrb[49].mxu1 }
 0xf95   : > { %v2015_v63 = vpop.f32.mrb[50].mxu1 }
 0xf96   : > { %v2021_v1 = vmul.f32 0.044715, %v2013_v29  ;;  %v2016_v2 = vadd.f32 %v2375_v60, %v2015_v63  ;;  %v2604_v5 = vpop.f32.mrb[51].mxu1  ;;  %v2019_v16 = vmul.f32 0.5, %v2013_v29 }
 0xf98   : > { %v2023_v6 = vmul.f32 %v2021_v1, %v2013_v29  ;;  %v2022_v7 = vmul.f32 0.044715, %v2016_v2  ;;  %v2020_v17 = vmul.f32 0.5, %v2016_v2 }
 0xf9a   : > { %v2025_v8 = vmul.f32 %v2023_v6, %v2013_v29  ;;  %v2024_v35 = vmul.f32 %v2022_v7, %v2016_v2 }
 0xf9c   : > { %v2027_v9 = vadd.f32 %v2025_v8, %v2013_v29  ;;  %v2026_v10 = vmul.f32 %v2024_v35, %v2016_v2 }
 0xf9e   : > { %v2029_v0 = vmul.f32 0.7978846, %v2027_v9  ;;  %v2028_v11 = vadd.f32 %v2026_v10, %v2016_v2 }
 0xfa0   : > { %2791 = vtanh.f32 %v2029_v0  ;;  %v2030_v12 = vmul.f32 0.7978846, %v2028_v11 }
 0xfa2   : > { %2793 = vtanh.f32 %v2030_v12 }
 0xfaa   : > { %v2792_v13 = vpop.eup %2791 }
 0xfab   : > { %v2033_v14 = vadd.f32 1.0, %v2792_v13 }
 0xfac   : > { %v2794_v15 = vpop.eup %2793 }
 0xfad   : > { %v2034_v19 = vadd.f32 1.0, %v2794_v15  ;;  %v2035_v21 = vmul.f32 %v2033_v14, %v2019_v16 }
 0xfaf   : > { %v2036_v22 = vmul.f32 %v2034_v19, %v2020_v17 }
 0xfb1   : > { %v2037_v23 = vpack.c.bf16 %v2036_v22, %v2035_v21 }
 0xfb3   : > { %2622 = vmatmul.mubr.bf16.vlgmr.msra.gmra.mrb[40].mxu0 %v2037_v23 }
0x1086   : > { %v2143_v25 = vpop.f32.mrb[40].mxu0 }
0x1087   : > { %v2144_v26 = vadd.f32 %v2379_v24, %v2143_v25  ;;  %v2623_v37 = vpop.f32.mrb[41].mxu0 }
0x1088   : > { %v2146_v3 = vpop.f32.mrb[42].mxu0 }
0x1089   : > { %v2150_v28 = vadd.f32 %v2144_v26, %v3634_v18  ;;  %v2147_v4 = vadd.f32 %v2379_v24, %v2146_v3  ;;  %v2624_v30 = vpop.f32.mrb[43].mxu0 }
0x108b   : > { %2152 = vst.msk [vmem:[%s615_s29] sm:$0xff] %vm662_vm1, %v2150_v28  ;;  %v2151_v31 = vadd.f32 %v2147_v4, %v3637_v20 }
0x108d   : > { %2153 = vst.msk [vmem:[%s615_s29 + $0x8] sm:$0xff] %vm662_vm1, %v2151_v31 }
0x108e   : > { %2978 = shalt.err (!%p2975_p6)
}
0x108f   : > { %s2979_s28 = scalar_lea.hbm %s3695_s25, 256  ;;  %s2983_s27 = scalar_lea.hbm %s3795_s30, 512 }
0x1090   : > { %p2980_p10 = scmp.ne.s32.totalorder %s3695_s25, %s2979_s28  ;;  %p2984_p5 = scmp.lt.u32.totalorder %s3695_s25, %s3795_s30 }
0x1091   : > { %p2985_p9 = scmp.lt.u32.totalorder %s2983_s27, %s2979_s28  ;;  %p2987_p4 = scmp.lt.u32.totalorder %s2979_s28, %s3695_s25 }
0x1092   : > { %p2981_p11 = pnand %p2980_p10, %p3796_p12 }
0x1093   : > { %p2986_p7 = por %p2985_p9, %p2984_p5 }
0x1094   : > { %p2982_p0 = pneg %p2981_p11 }
0x1095   : > { %p2988_p13 = por %p2987_p4, %p2986_p7 }
0x1097   : > { %p2989_p1 = pnand %p2988_p13, %p2982_p0 }
0x1099   : > { %2992 = shalt.err (!%p2989_p1)
}
0x109a   : > { %s3065_s10 = smov 128   ;;  %s3066_s13 = smov 8  }
0x109b   : > { %2647 = dma.vmem_to_hbm [thread:$0]  (%p3796_p12), %s3697_s6, 256, %s3695_s25, %s2155_s24, %s3065_s10, %s3065_s10, %s3066_s13  }
0x109c PF: > { %s2183_s4 = sand.u32 1, %s3031_s18   ;;  %p3797_p3 = scmp.ne.s32.totalorder %s3780_s17, 0 }
0x109d   : > { %p3798_p2 = scmp.ge.s32.totalorder %s3043_s21, 2  ;;  %s2184_s28 = scalar_lea.sflag [#allocation4], %s2183_s4 }
0x109f   : > { %p2670_p8 = pnand %p3798_p2, %p3797_p3 }
0x10a1   : > { %3026 = dma.done.wait (!%p2670_p8), %s2184_s28, 256  }
0x10a2   : > { %3028 = vsyncadd (!%p2670_p8), %s2184_s28, 4294967040  ;;  %p31_p6 = scmp.ge.s32.totalorder %s3315_s26, 4   ;;  %s3799_s18 = smov %s3035_s19 }
0x10a3   : > { %s3800_s19 = smov %s3039_s20  ;;  %s3801_s20 = smov %s3327_s3 }
0x10a4   : > { %s3802_s21 = smov %s3315_s26  ;;  %33 = sbr.rel (!%p31_p6) target bundleno = 17 (0x11), region = 151 }
0x10ab   :  { %2189 = vsyncpa [#allocation3], 1 }
0x10ac   :  { %2191 = vsyncpa [#allocation3 + $0x1], 1 }
0x10ad   :  { %2192 = vsyncpa [#allocation6], 1 }
0x10ae   :  { %2193 = vsyncpa [#allocation9], 1 }
0x10af   :  { %2194 = vsyncpa [#allocation12], 1 }
0x10b0   :  { %2195 = vsyncpa [#allocation4], 1 }
0x10b1   :  { %2197 = vsyncpa [#allocation4 + $0x1], 1 }

</bundles_post_ra>
